<compile_context>
chip_gen: v5e
topology: v5e:2x2
jax: 0.10.0
libtpu: 0.0.40
codegen_flags: <defaults>
</compile_context>

<pallas_src>
import functools
import math

import jax
import jax.numpy as jnp
from jax.experimental import pallas as pl
from jax.experimental.pallas import tpu as pltpu

# ----------------------------- model config ---------------------------------
D_MODEL = 32
N_HEAD = 4
D_HEAD = D_MODEL // N_HEAD
D_FF = 64
SRC_VOCAB = 16
TGT_VOCAB = 16
N_ENC_LAYERS = 2
N_DEC_LAYERS = 2
LN_EPS = 1e-5
EMB_SCALE = math.sqrt(D_MODEL)
LANES = 128
NEG_INF = -1e30


# ----------------------------- host-side helpers -----------------------------
def sinusoidal_pe(seq_len, d_model):
    pos = jnp.arange(seq_len, dtype=jnp.float32)[:, None]
    i = jnp.arange(0, d_model, 2, dtype=jnp.float32)[None, :]
    div = jnp.exp(-math.log(10000.0) * i / d_model)
    pe = jnp.zeros((seq_len, d_model), jnp.float32)
    pe = pe.at[:, 0::2].set(jnp.sin(pos * div))
    pe = pe.at[:, 1::2].set(jnp.cos(pos * div))
    return pe


def _base_masks(B, S_src, S_tgt, src_key_padding_mask, tgt_attn_mask):
    """Per-batch additive attention masks (0 / NEG_INF), shapes (B, Sq, Sk)."""
    enc = jnp.zeros((B, S_src, S_src), jnp.float32)
    dec = jnp.zeros((B, S_tgt, S_tgt), jnp.float32)
    cross = jnp.zeros((B, S_tgt, S_src), jnp.float32)
    if src_key_padding_mask is not None:
        pad = jnp.where(jnp.asarray(src_key_padding_mask, bool), NEG_INF, 0.0)
        pad = pad.astype(jnp.float32)                       # True == padded key
        enc = enc + pad[:, None, :]
        cross = cross + pad[:, None, :]
    if tgt_attn_mask is not None:
        m = jnp.asarray(tgt_attn_mask)
        if m.dtype == jnp.bool_:                            # True == masked
            add = jnp.where(m, NEG_INF, 0.0).astype(jnp.float32)
        else:                                               # additive float mask
            add = m.astype(jnp.float32)
        dec = dec + add[None, :, :]
    return enc, dec, cross


def _stack_mask(base, B):
    """Expand (B, Sq, Sk) additive mask to the (head, batch)-stacked layout
    (H*B*Sq, H*B*Sk) used inside the kernel (rows ordered head-major, then
    batch, then position).  Off-(head,batch)-block entries get NEG_INF."""
    _, Sq, Sk = base.shape
    Rq, Rk = N_HEAD * B * Sq, N_HEAD * B * Sk
    iq, ik = jnp.arange(Rq), jnp.arange(Rk)
    hq, bq, sq = iq // (B * Sq), (iq // Sq) % B, iq % Sq
    hk, bk, sk = ik // (B * Sk), (ik // Sk) % B, ik % Sk
    valid = (hq[:, None] == hk[None, :]) & (bq[:, None] == bk[None, :])
    vals = base[bq[:, None], sq[:, None], sk[None, :]]
    return jnp.where(valid, vals, NEG_INF)


def _pack_slab(entries, dtype, row_align):
    """Pack named 2-D tensors into one (rows, 128) slab.  Returns the slab and
    {name: (row_offset, n_rows, n_cols)} with static Python-int offsets."""
    offsets, chunks, row = {}, [], 0
    for name, a in entries:
        a = jnp.asarray(a, jnp.float32)
        if a.ndim == 1:
            a = a.reshape(1, -1)
        r, c = a.shape
        pad_r = (-r) % row_align
        chunks.append(jnp.pad(a, ((0, pad_r), (0, LANES - c))).astype(dtype))
        offsets[name] = (row, r, c)
        row += r + pad_r
    return jnp.concatenate(chunks, axis=0), offsets


def _weight_entries(params):
    entries = []
    for l, lp in enumerate(params["enc"]):
        pre = f"e{l}_"
        for n in ("wqkv", "wo", "w1", "w2"):
            entries.append((pre + n, lp[n]))
    for l, lp in enumerate(params["dec"]):
        pre = f"d{l}_"
        for n in ("wqkv_s", "wo_s", "wq_c", "wkv_c", "wo_c", "w1", "w2"):
            entries.append((pre + n, lp[n]))
    entries.append(("gen_w", params["gen_w"]))
    return entries


def _f32_entries(params, B, S_src, S_tgt, src_key_padding_mask, tgt_attn_mask):
    enc_m, dec_m, cross_m = _base_masks(B, S_src, S_tgt,
                                        src_key_padding_mask, tgt_attn_mask)
    entries = [
        ("src_emb", params["src_emb"]),
        ("tgt_emb", params["tgt_emb"]),
        ("pe_src", jnp.tile(sinusoidal_pe(S_src, D_MODEL), (B, 1))),
        ("pe_tgt", jnp.tile(sinusoidal_pe(S_tgt, D_MODEL), (B, 1))),
        ("mask_enc", _stack_mask(enc_m, B)),
        ("mask_dec", _stack_mask(dec_m, B)),
        ("mask_cross", _stack_mask(cross_m, B)),
        ("gen_b", params["gen_b"]),
    ]
    for l, lp in enumerate(params["enc"]):
        pre = f"e{l}_"
        for n in ("bqkv", "bo", "b1", "b2", "ln1", "ln2"):
            entries.append((pre + n, lp[n]))
    for l, lp in enumerate(params["dec"]):
        pre = f"d{l}_"
        for n in ("bqkv_s", "bo_s", "bq_c", "bkv_c", "bo_c",
                  "b1", "b2", "ln1", "ln2", "ln3"):
            entries.append((pre + n, lp[n]))
    return entries


# ----------------------------- fused Pallas kernel ---------------------------
def _fused_transformer_kernel(src_tok_ref, tgt_tok_ref, wref, fref, out_ref,
                              *, woff, foff, n_src_rows, n_tgt_rows):
    f32, bf16 = jnp.float32, jnp.bfloat16

    def W(name):                                  # bf16 matmul weight slab
        r0, nr, nc = woff[name]
        return wref[r0:r0 + nr, 0:nc]

    def F(name):                                  # f32 bias/LN/PE/mask/embedding slab
        r0, nr, nc = foff[name]
        return fref[r0:r0 + nr, 0:nc]

    def matmul(x, wname):                         # bf16 MXU operands, f32 accumulation
        return jnp.dot(x.astype(bf16), W(wname), preferred_element_type=f32)

    def embed(tok_ref, n_rows, table_name, pe_name):
        # Token ids are SMEM scalars; gather embedding rows with dynamic pl.ds
        # loads from the f32 slab (no one-hot matmul, no narrow VMEM blocks).
        r0, _, _ = foff[table_name]
        rows = [fref[pl.ds(r0 + tok_ref[i], 1), :] for i in range(n_rows)]
        x = jnp.concatenate(rows, axis=0)[:, 0:D_MODEL]
        return x * EMB_SCALE + F(pe_name)

    def layer_norm(x, ln_name):
        ln = F(ln_name)                            # (2, D): gamma row 0, beta row 1
        mu = jnp.mean(x, axis=-1, keepdims=True)
        ms = jnp.mean(x * x, axis=-1, keepdims=True)   # independent reduction -> overlaps
        inv = jax.lax.rsqrt(ms - mu * mu + LN_EPS)
        return (x - mu) * inv * ln[0:1, :] + ln[1:2, :]

    scale = 1.0 / math.sqrt(D_HEAD)

    def mha(q, k, v, rows_q, wo_name, bo_name, mask_name):
        # Heads and batch folded into the sublane axis (rows ordered
        # head-major, then batch, then position): ONE masked score matmul,
        # ONE softmax, ONE PV matmul, ONE output projection per attention.
        qh = jnp.concatenate(
            [q[:, h * D_HEAD:(h + 1) * D_HEAD] for h in range(N_HEAD)], axis=0)   # (H*Rq, Dh)
        kh = jnp.concatenate(
            [k[:, h * D_HEAD:(h + 1) * D_HEAD] for h in range(N_HEAD)], axis=0)   # (H*Rk, Dh)
        vh = jnp.concatenate(
            [v[:, h * D_HEAD:(h + 1) * D_HEAD] for h in range(N_HEAD)], axis=0)   # (H*Rk, Dh)
        s = jnp.dot(qh.astype(bf16), kh.T.astype(bf16),
                    preferred_element_type=f32) * scale                            # (H*Rq, H*Rk)
        s = s + F(mask_name)      # precomputed (head,batch) block-diag + causal/user/pad mask
        m = jnp.max(s, axis=-1, keepdims=True)
        e = jnp.exp(s - m)
        pr = e * pl.reciprocal(jnp.sum(e, axis=-1, keepdims=True), approx=True)
        oh = jnp.dot(pr.astype(bf16), vh.astype(bf16), preferred_element_type=f32)  # (H*Rq, Dh)
        o = jnp.concatenate(
            [oh[h * rows_q:(h + 1) * rows_q, :] for h in range(N_HEAD)], axis=1)    # (Rq, D)
        return matmul(o, wo_name) + F(bo_name)

    # ---------------- encoder (batch stacked along sublanes) ----------------
    x = embed(src_tok_ref, n_src_rows, "src_emb", "pe_src")
    for l in range(N_ENC_LAYERS):
        pre = f"e{l}_"
        qkv = matmul(x, pre + "wqkv") + F(pre + "bqkv")
        a = mha(qkv[:, 0:D_MODEL], qkv[:, D_MODEL:2 * D_MODEL],
                qkv[:, 2 * D_MODEL:3 * D_MODEL],
                n_src_rows, pre + "wo", pre + "bo", "mask_enc")
        x = layer_norm(x + a, pre + "ln1")
        h = jnp.maximum(matmul(x, pre + "w1") + F(pre + "b1"), 0.0)
        x = layer_norm(x + matmul(h, pre + "w2") + F(pre + "b2"), pre + "ln2")
    memory = x

    # ---------------- decoder ----------------
    y = embed(tgt_tok_ref, n_tgt_rows, "tgt_emb", "pe_tgt")
    for l in range(N_DEC_LAYERS):
        pre = f"d{l}_"
        qkv = matmul(y, pre + "wqkv_s") + F(pre + "bqkv_s")
        a = mha(qkv[:, 0:D_MODEL], qkv[:, D_MODEL:2 * D_MODEL],
                qkv[:, 2 * D_MODEL:3 * D_MODEL],
                n_tgt_rows, pre + "wo_s", pre + "bo_s", "mask_dec")
        y = layer_norm(y + a, pre + "ln1")
        qc = matmul(y, pre + "wq_c") + F(pre + "bq_c")
        kvc = matmul(memory, pre + "wkv_c") + F(pre + "bkv_c")
        c = mha(qc, kvc[:, 0:D_MODEL], kvc[:, D_MODEL:2 * D_MODEL],
                n_tgt_rows, pre + "wo_c", pre + "bo_c", "mask_cross")
        y = layer_norm(y + c, pre + "ln2")
        h = jnp.maximum(matmul(y, pre + "w1") + F(pre + "b1"), 0.0)
        y = layer_norm(y + matmul(h, pre + "w2") + F(pre + "b2"), pre + "ln3")

    # ---------------- generator: linear + log_softmax ----------------
    logits = matmul(y, "gen_w") + F("gen_b")
    m = jnp.max(logits, axis=-1, keepdims=True)
    z = logits - m
    logp = z - jnp.log(jnp.sum(jnp.exp(z), axis=-1, keepdims=True))
    out_ref[...] = logp.astype(out_ref.dtype)


# ----------------------------- JAX wrapper ------------------------------------
def transformer_forward(params, src, tgt, src_key_padding_mask=None, tgt_attn_mask=None):
    B, S_src = src.shape
    _, S_tgt = tgt.shape

    # two resident slabs: bf16 matmul weights / f32 everything-else (incl. masks)
    wslab, woff = _pack_slab(_weight_entries(params), jnp.bfloat16, 16)
    fslab, foff = _pack_slab(
        _f32_entries(params, B, S_src, S_tgt, src_key_padding_mask, tgt_attn_mask),
        jnp.float32, 8)

    kernel = functools.partial(_fused_transformer_kernel, woff=woff, foff=foff,
                               n_src_rows=B * S_src, n_tgt_rows=B * S_tgt)

    grid_spec = pltpu.PrefetchScalarGridSpec(
        num_scalar_prefetch=2,            # src / tgt token ids live in SMEM
        grid=(1,),                        # whole batch in one invocation (stacked on sublanes)
        in_specs=[
            pl.BlockSpec(wslab.shape, lambda i, s, t: (0, 0)),
            pl.BlockSpec(fslab.shape, lambda i, s, t: (0, 0)),
        ],
        out_specs=pl.BlockSpec((B * S_tgt, TGT_VOCAB), lambda i, s, t: (0, 0)),
    )

    out = pl.pallas_call(
        kernel,
        grid_spec=grid_spec,
        out_shape=jax.ShapeDtypeStruct((B * S_tgt, TGT_VOCAB), jnp.float32),
        compiler_params=pltpu.CompilerParams(dimension_semantics=("arbitrary",)),
    )(src.astype(jnp.int32).reshape(-1), tgt.astype(jnp.int32).reshape(-1), wslab, fslab)
    return out.reshape(B, S_tgt, TGT_VOCAB)


# ----------------------------- pure-JAX reference -----------------------------
def reference_forward(params, src, tgt, src_key_padding_mask=None, tgt_attn_mask=None):
    B, S_src = src.shape
    _, S_tgt = tgt.shape
    enc_m, dec_m, cross_m = _base_masks(B, S_src, S_tgt,
                                        src_key_padding_mask, tgt_attn_mask)

    def ln(x, p):
        mu = jnp.mean(x, -1, keepdims=True)
        var = jnp.mean(x * x, -1, keepdims=True) - mu * mu
        return (x - mu) * jax.lax.rsqrt(var + LN_EPS) * p[0] + p[1]

    def mha(q, k, v, wo, bo, mask):
        qh = q.reshape(B, -1, N_HEAD, D_HEAD).transpose(0, 2, 1, 3)
        kh = k.reshape(B, -1, N_HEAD, D_HEAD).transpose(0, 2, 1, 3)
        vh = v.reshape(B, -1, N_HEAD, D_HEAD).transpose(0, 2, 1, 3)
        s = jnp.einsum("bhqd,bhkd->bhqk", qh, kh) / math.sqrt(D_HEAD)
        s = s + mask[:, None, :, :]
        p = jax.nn.softmax(s, axis=-1)
        o = jnp.einsum("bhqk,bhkd->bhqd", p, vh).transpose(0, 2, 1, 3).reshape(B, -1, D_MODEL)
        return o @ wo + bo

    x = params["src_emb"][src] * EMB_SCALE + sinusoidal_pe(S_src, D_MODEL)[None]
    for lp in params["enc"]:
        qkv = x @ lp["wqkv"] + lp["bqkv"]
        a = mha(qkv[..., :D_MODEL], qkv[..., D_MODEL:2 * D_MODEL], qkv[..., 2 * D_MODEL:],
                lp["wo"], lp["bo"], enc_m)
        x = ln(x + a, lp["ln1"])
        h = jax.nn.relu(x @ lp["w1"] + lp["b1"])
        x = ln(x + h @ lp["w2"] + lp["b2"], lp["ln2"])
    memory = x

    y = params["tgt_emb"][tgt] * EMB_SCALE + sinusoidal_pe(S_tgt, D_MODEL)[None]
    for lp in params["dec"]:
        qkv = y @ lp["wqkv_s"] + lp["bqkv_s"]
        a = mha(qkv[..., :D_MODEL], qkv[..., D_MODEL:2 * D_MODEL], qkv[..., 2 * D_MODEL:],
                lp["wo_s"], lp["bo_s"], dec_m)
        y = ln(y + a, lp["ln1"])
        qc = y @ lp["wq_c"] + lp["bq_c"]
        kv = memory @ lp["wkv_c"] + lp["bkv_c"]
        c = mha(qc, kv[..., :D_MODEL], kv[..., D_MODEL:], lp["wo_c"], lp["bo_c"], cross_m)
        y = ln(y + c, lp["ln2"])
        h = jax.nn.relu(y @ lp["w1"] + lp["b1"])
        y = ln(y + h @ lp["w2"] + lp["b2"], lp["ln3"])

    logits = y @ params["gen_w"] + params["gen_b"]
    return jax.nn.log_softmax(logits, axis=-1)


# ----------------------------- deterministic init -----------------------------
def init_params(key):
    keys = iter(jax.random.split(key, 128))

    def dense(shape, scale=0.02):
        return scale * jax.random.normal(next(keys), shape, jnp.float32)

    def ln():
        return jnp.concatenate([jnp.ones((1, D_MODEL), jnp.float32),
                                jnp.zeros((1, D_MODEL), jnp.float32)], axis=0)

    def enc_layer():
        return {
            "wqkv": dense((D_MODEL, 3 * D_MODEL)),
            "bqkv": jnp.zeros((1, 3 * D_MODEL), jnp.float32),
            "wo": dense((D_MODEL, D_MODEL)), "bo": jnp.zeros((1, D_MODEL), jnp.float32),
            "ln1": ln(),
            "w1": dense((D_MODEL, D_FF)), "b1": jnp.zeros((1, D_FF), jnp.float32),
            "w2": dense((D_FF, D_MODEL)), "b2": jnp.zeros((1, D_MODEL), jnp.float32),
            "ln2": ln(),
        }

    def dec_layer():
        return {
            "wqkv_s": dense((D_MODEL, 3 * D_MODEL)),
            "bqkv_s": jnp.zeros((1, 3 * D_MODEL), jnp.float32),
            "wo_s": dense((D_MODEL, D_MODEL)), "bo_s": jnp.zeros((1, D_MODEL), jnp.float32),
            "ln1": ln(),
            "wq_c": dense((D_MODEL, D_MODEL)), "bq_c": jnp.zeros((1, D_MODEL), jnp.float32),
            "wkv_c": dense((D_MODEL, 2 * D_MODEL)),
            "bkv_c": jnp.zeros((1, 2 * D_MODEL), jnp.float32),
            "wo_c": dense((D_MODEL, D_MODEL)), "bo_c": jnp.zeros((1, D_MODEL), jnp.float32),
            "ln2": ln(),
            "w1": dense((D_MODEL, D_FF)), "b1": jnp.zeros((1, D_FF), jnp.float32),
            "w2": dense((D_FF, D_MODEL)), "b2": jnp.zeros((1, D_MODEL), jnp.float32),
            "ln3": ln(),
        }

    return {
        "src_emb": dense((SRC_VOCAB, D_MODEL), scale=1.0 / math.sqrt(D_MODEL)),
        "tgt_emb": dense((TGT_VOCAB, D_MODEL), scale=1.0 / math.sqrt(D_MODEL)),
        "enc": [enc_layer() for _ in range(N_ENC_LAYERS)],
        "dec": [dec_layer() for _ in range(N_DEC_LAYERS)],
        "gen_w": dense((D_MODEL, TGT_VOCAB)),
        "gen_b": jnp.zeros((1, TGT_VOCAB), jnp.float32),
    }


# ----------------------------- main -------------------------------------------
if __name__ == "__main__":
    key = jax.random.PRNGKey(0)
    k_params, k_src, k_tgt = jax.random.split(key, 3)

    params = init_params(k_params)

    B, S_SRC, S_TGT = 2, 8, 8
    src = jax.random.randint(k_src, (B, S_SRC), 0, SRC_VOCAB, dtype=jnp.int32)
    tgt = jax.random.randint(k_tgt, (B, S_TGT), 0, TGT_VOCAB, dtype=jnp.int32)

    fwd = jax.jit(lambda s, t: transformer_forward(params, s, t,
                                                   src_key_padding_mask=None,
                                                   tgt_attn_mask=None))
    out = fwd(src, tgt)
    jax.block_until_ready(out)

    ref = reference_forward(params, src, tgt)

    assert out.shape == (B, S_TGT, TGT_VOCAB)
    assert bool(jnp.all(jnp.isfinite(out)))
    # rows of log-probabilities should sum (in prob space) to ~1
    assert bool(jnp.allclose(jnp.sum(jnp.exp(out), axis=-1), 1.0, atol=1e-3))
    # bf16 MXU operands + approximate softmax reciprocal vs. f32 reference
    assert bool(jnp.allclose(out, ref, atol=5e-2, rtol=0.0)), \
        float(jnp.max(jnp.abs(out - ref)))
    print("KERNEL_OK")
</pallas_src>

<mosaic_0001>
module attributes {stable_mosaic.version = 11 : i64} {
  func.func @_fused_transformer_kernel(%arg0: i32, %arg1: memref<16xi32, #tpu.memory_space<smem>>, %arg2: memref<16xi32, #tpu.memory_space<smem>>, %arg3: memref<864x128xbf16, #tpu.memory_space<vmem>>, %arg4: memref<520x128xf32, #tpu.memory_space<vmem>>, %arg5: memref<16x16xf32, #tpu.memory_space<vmem>>) attributes {dimension_semantics = [#tpu.dimension_semantics<arbitrary>], iteration_bounds = array<i64: 1>, scalar_prefetch = 2 : i64, scratch_operands = 0 : i64, tpu.core_type = #tpu.core_type<tc>, window_params = [{pipeline_mode = #tpu.pipeline_mode<synchronous>, transform_indices = @transform_0, window_bounds = array<i64: 864, 128>}, {pipeline_mode = #tpu.pipeline_mode<synchronous>, transform_indices = @transform_1, window_bounds = array<i64: 520, 128>}, {pipeline_mode = #tpu.pipeline_mode<synchronous>, transform_indices = @transform_2, window_bounds = array<i64: 16, 16>}]} {
    %c0 = arith.constant 0 : index
    %0 = memref.load %arg1[%c0] : memref<16xi32, #tpu.memory_space<smem>>
    %c0_i32 = arith.constant 0 : i32
    %1 = arith.addi %c0_i32, %0 : i32
    %2 = arith.index_cast %1 : i32 to index
    %c0_0 = arith.constant 0 : index
    %3 = vector.load %arg4[%2, %c0_0] : memref<520x128xf32, #tpu.memory_space<vmem>>, vector<1x128xf32>
    %c1 = arith.constant 1 : index
    %4 = memref.load %arg1[%c1] : memref<16xi32, #tpu.memory_space<smem>>
    %c0_i32_1 = arith.constant 0 : i32
    %5 = arith.addi %c0_i32_1, %4 : i32
    %6 = arith.index_cast %5 : i32 to index
    %c0_2 = arith.constant 0 : index
    %7 = vector.load %arg4[%6, %c0_2] : memref<520x128xf32, #tpu.memory_space<vmem>>, vector<1x128xf32>
    %c2 = arith.constant 2 : index
    %8 = memref.load %arg1[%c2] : memref<16xi32, #tpu.memory_space<smem>>
    %c0_i32_3 = arith.constant 0 : i32
    %9 = arith.addi %c0_i32_3, %8 : i32
    %10 = arith.index_cast %9 : i32 to index
    %c0_4 = arith.constant 0 : index
    %11 = vector.load %arg4[%10, %c0_4] : memref<520x128xf32, #tpu.memory_space<vmem>>, vector<1x128xf32>
    %c3 = arith.constant 3 : index
    %12 = memref.load %arg1[%c3] : memref<16xi32, #tpu.memory_space<smem>>
    %c0_i32_5 = arith.constant 0 : i32
    %13 = arith.addi %c0_i32_5, %12 : i32
    %14 = arith.index_cast %13 : i32 to index
    %c0_6 = arith.constant 0 : index
    %15 = vector.load %arg4[%14, %c0_6] : memref<520x128xf32, #tpu.memory_space<vmem>>, vector<1x128xf32>
    %c4 = arith.constant 4 : index
    %16 = memref.load %arg1[%c4] : memref<16xi32, #tpu.memory_space<smem>>
    %c0_i32_7 = arith.constant 0 : i32
    %17 = arith.addi %c0_i32_7, %16 : i32
    %18 = arith.index_cast %17 : i32 to index
    %c0_8 = arith.constant 0 : index
    %19 = vector.load %arg4[%18, %c0_8] : memref<520x128xf32, #tpu.memory_space<vmem>>, vector<1x128xf32>
    %c5 = arith.constant 5 : index
    %20 = memref.load %arg1[%c5] : memref<16xi32, #tpu.memory_space<smem>>
    %c0_i32_9 = arith.constant 0 : i32
    %21 = arith.addi %c0_i32_9, %20 : i32
    %22 = arith.index_cast %21 : i32 to index
    %c0_10 = arith.constant 0 : index
    %23 = vector.load %arg4[%22, %c0_10] : memref<520x128xf32, #tpu.memory_space<vmem>>, vector<1x128xf32>
    %c6 = arith.constant 6 : index
    %24 = memref.load %arg1[%c6] : memref<16xi32, #tpu.memory_space<smem>>
    %c0_i32_11 = arith.constant 0 : i32
    %25 = arith.addi %c0_i32_11, %24 : i32
    %26 = arith.index_cast %25 : i32 to index
    %c0_12 = arith.constant 0 : index
    %27 = vector.load %arg4[%26, %c0_12] : memref<520x128xf32, #tpu.memory_space<vmem>>, vector<1x128xf32>
    %c7 = arith.constant 7 : index
    %28 = memref.load %arg1[%c7] : memref<16xi32, #tpu.memory_space<smem>>
    %c0_i32_13 = arith.constant 0 : i32
    %29 = arith.addi %c0_i32_13, %28 : i32
    %30 = arith.index_cast %29 : i32 to index
    %c0_14 = arith.constant 0 : index
    %31 = vector.load %arg4[%30, %c0_14] : memref<520x128xf32, #tpu.memory_space<vmem>>, vector<1x128xf32>
    %c8 = arith.constant 8 : index
    %32 = memref.load %arg1[%c8] : memref<16xi32, #tpu.memory_space<smem>>
    %c0_i32_15 = arith.constant 0 : i32
    %33 = arith.addi %c0_i32_15, %32 : i32
    %34 = arith.index_cast %33 : i32 to index
    %c0_16 = arith.constant 0 : index
    %35 = vector.load %arg4[%34, %c0_16] : memref<520x128xf32, #tpu.memory_space<vmem>>, vector<1x128xf32>
    %c9 = arith.constant 9 : index
    %36 = memref.load %arg1[%c9] : memref<16xi32, #tpu.memory_space<smem>>
    %c0_i32_17 = arith.constant 0 : i32
    %37 = arith.addi %c0_i32_17, %36 : i32
    %38 = arith.index_cast %37 : i32 to index
    %c0_18 = arith.constant 0 : index
    %39 = vector.load %arg4[%38, %c0_18] : memref<520x128xf32, #tpu.memory_space<vmem>>, vector<1x128xf32>
    %c10 = arith.constant 10 : index
    %40 = memref.load %arg1[%c10] : memref<16xi32, #tpu.memory_space<smem>>
    %c0_i32_19 = arith.constant 0 : i32
    %41 = arith.addi %c0_i32_19, %40 : i32
    %42 = arith.index_cast %41 : i32 to index
    %c0_20 = arith.constant 0 : index
    %43 = vector.load %arg4[%42, %c0_20] : memref<520x128xf32, #tpu.memory_space<vmem>>, vector<1x128xf32>
    %c11 = arith.constant 11 : index
    %44 = memref.load %arg1[%c11] : memref<16xi32, #tpu.memory_space<smem>>
    %c0_i32_21 = arith.constant 0 : i32
    %45 = arith.addi %c0_i32_21, %44 : i32
    %46 = arith.index_cast %45 : i32 to index
    %c0_22 = arith.constant 0 : index
    %47 = vector.load %arg4[%46, %c0_22] : memref<520x128xf32, #tpu.memory_space<vmem>>, vector<1x128xf32>
    %c12 = arith.constant 12 : index
    %48 = memref.load %arg1[%c12] : memref<16xi32, #tpu.memory_space<smem>>
    %c0_i32_23 = arith.constant 0 : i32
    %49 = arith.addi %c0_i32_23, %48 : i32
    %50 = arith.index_cast %49 : i32 to index
    %c0_24 = arith.constant 0 : index
    %51 = vector.load %arg4[%50, %c0_24] : memref<520x128xf32, #tpu.memory_space<vmem>>, vector<1x128xf32>
    %c13 = arith.constant 13 : index
    %52 = memref.load %arg1[%c13] : memref<16xi32, #tpu.memory_space<smem>>
    %c0_i32_25 = arith.constant 0 : i32
    %53 = arith.addi %c0_i32_25, %52 : i32
    %54 = arith.index_cast %53 : i32 to index
    %c0_26 = arith.constant 0 : index
    %55 = vector.load %arg4[%54, %c0_26] : memref<520x128xf32, #tpu.memory_space<vmem>>, vector<1x128xf32>
    %c14 = arith.constant 14 : index
    %56 = memref.load %arg1[%c14] : memref<16xi32, #tpu.memory_space<smem>>
    %c0_i32_27 = arith.constant 0 : i32
    %57 = arith.addi %c0_i32_27, %56 : i32
    %58 = arith.index_cast %57 : i32 to index
    %c0_28 = arith.constant 0 : index
    %59 = vector.load %arg4[%58, %c0_28] : memref<520x128xf32, #tpu.memory_space<vmem>>, vector<1x128xf32>
    %c15 = arith.constant 15 : index
    %60 = memref.load %arg1[%c15] : memref<16xi32, #tpu.memory_space<smem>>
    %c0_i32_29 = arith.constant 0 : i32
    %61 = arith.addi %c0_i32_29, %60 : i32
    %62 = arith.index_cast %61 : i32 to index
    %c0_30 = arith.constant 0 : index
    %63 = vector.load %arg4[%62, %c0_30] : memref<520x128xf32, #tpu.memory_space<vmem>>, vector<1x128xf32>
    %64 = tpu.concatenate %3, %7, %11, %15, %19, %23, %27, %31, %35, %39, %43, %47, %51, %55, %59, %63 in 0 : vector<1x128xf32>, vector<1x128xf32>, vector<1x128xf32>, vector<1x128xf32>, vector<1x128xf32>, vector<1x128xf32>, vector<1x128xf32>, vector<1x128xf32>, vector<1x128xf32>, vector<1x128xf32>, vector<1x128xf32>, vector<1x128xf32>, vector<1x128xf32>, vector<1x128xf32>, vector<1x128xf32>, vector<1x128xf32> -> vector<16x128xf32>
    %65 = vector.extract_strided_slice %64 {offsets = [0, 0], sizes = [16, 32], strides = [1, 1]} : vector<16x128xf32> to vector<16x32xf32>
    %cst = arith.constant 5.65685415 : f32
    %66 = vector.broadcast %cst : f32 to vector<16x32xf32>
    %67 = arith.mulf %65, %66 : vector<16x32xf32>
    %c32 = arith.constant 32 : index
    %c0_31 = arith.constant 0 : index
    %68 = vector.load %arg4[%c32, %c0_31] : memref<520x128xf32, #tpu.memory_space<vmem>>, vector<16x32xf32>
    %69 = arith.addf %67, %68 : vector<16x32xf32>
    %70 = arith.truncf %69 : vector<16x32xf32> to vector<16x32xbf16>
    %c0_32 = arith.constant 0 : index
    %c0_33 = arith.constant 0 : index
    %71 = vector.load %arg3[%c0_32, %c0_33] : memref<864x128xbf16, #tpu.memory_space<vmem>>, vector<32x96xbf16>
    %cst_34 = arith.constant dense<0.000000e+00> : vector<16x96xf32>
    %72 = tpu.matmul %70, %71, %cst_34 {dimension_numbers = #tpu.dot_dimension_numbers<[1], [0], [0], [1], [0, 0, 1, 1], [], []>} : vector<16x32xbf16>, vector<32x96xbf16>, vector<16x96xf32> -> vector<16x96xf32>
    %c264 = arith.constant 264 : index
    %c0_35 = arith.constant 0 : index
    %73 = vector.load %arg4[%c264, %c0_35] : memref<520x128xf32, #tpu.memory_space<vmem>>, vector<1x96xf32>
    %74 = vector.broadcast %73 : vector<1x96xf32> to vector<16x96xf32>
    %75 = arith.addf %72, %74 : vector<16x96xf32>
    %76 = vector.extract_strided_slice %75 {offsets = [0, 0], sizes = [16, 32], strides = [1, 1]} : vector<16x96xf32> to vector<16x32xf32>
    %77 = vector.extract_strided_slice %75 {offsets = [0, 32], sizes = [16, 32], strides = [1, 1]} : vector<16x96xf32> to vector<16x32xf32>
    %78 = vector.extract_strided_slice %75 {offsets = [0, 64], sizes = [16, 32], strides = [1, 1]} : vector<16x96xf32> to vector<16x32xf32>
    %79 = vector.extract_strided_slice %76 {offsets = [0, 0], sizes = [16, 8], strides = [1, 1]} : vector<16x32xf32> to vector<16x8xf32>
    %80 = vector.extract_strided_slice %76 {offsets = [0, 8], sizes = [16, 8], strides = [1, 1]} : vector<16x32xf32> to vector<16x8xf32>
    %81 = vector.extract_strided_slice %76 {offsets = [0, 16], sizes = [16, 8], strides = [1, 1]} : vector<16x32xf32> to vector<16x8xf32>
    %82 = vector.extract_strided_slice %76 {offsets = [0, 24], sizes = [16, 8], strides = [1, 1]} : vector<16x32xf32> to vector<16x8xf32>
    %83 = tpu.concatenate %79, %80, %81, %82 in 0 : vector<16x8xf32>, vector<16x8xf32>, vector<16x8xf32>, vector<16x8xf32> -> vector<64x8xf32>
    %84 = vector.extract_strided_slice %77 {offsets = [0, 0], sizes = [16, 8], strides = [1, 1]} : vector<16x32xf32> to vector<16x8xf32>
    %85 = vector.extract_strided_slice %77 {offsets = [0, 8], sizes = [16, 8], strides = [1, 1]} : vector<16x32xf32> to vector<16x8xf32>
    %86 = vector.extract_strided_slice %77 {offsets = [0, 16], sizes = [16, 8], strides = [1, 1]} : vector<16x32xf32> to vector<16x8xf32>
    %87 = vector.extract_strided_slice %77 {offsets = [0, 24], sizes = [16, 8], strides = [1, 1]} : vector<16x32xf32> to vector<16x8xf32>
    %88 = tpu.concatenate %84, %85, %86, %87 in 0 : vector<16x8xf32>, vector<16x8xf32>, vector<16x8xf32>, vector<16x8xf32> -> vector<64x8xf32>
    %89 = vector.extract_strided_slice %78 {offsets = [0, 0], sizes = [16, 8], strides = [1, 1]} : vector<16x32xf32> to vector<16x8xf32>
    %90 = vector.extract_strided_slice %78 {offsets = [0, 8], sizes = [16, 8], strides = [1, 1]} : vector<16x32xf32> to vector<16x8xf32>
    %91 = vector.extract_strided_slice %78 {offsets = [0, 16], sizes = [16, 8], strides = [1, 1]} : vector<16x32xf32> to vector<16x8xf32>
    %92 = vector.extract_strided_slice %78 {offsets = [0, 24], sizes = [16, 8], strides = [1, 1]} : vector<16x32xf32> to vector<16x8xf32>
    %93 = tpu.concatenate %89, %90, %91, %92 in 0 : vector<16x8xf32>, vector<16x8xf32>, vector<16x8xf32>, vector<16x8xf32> -> vector<64x8xf32>
    %94 = arith.truncf %83 : vector<64x8xf32> to vector<64x8xbf16>
    %95 = tpu.transpose %88, [1, 0] : vector<64x8xf32> -> vector<8x64xf32>
    %96 = arith.truncf %95 : vector<8x64xf32> to vector<8x64xbf16>
    %cst_36 = arith.constant dense<0.000000e+00> : vector<64x64xf32>
    %97 = tpu.matmul %94, %96, %cst_36 {dimension_numbers = #tpu.dot_dimension_numbers<[1], [0], [0], [1], [0, 0, 1, 1], [], []>} : vector<64x8xbf16>, vector<8x64xbf16>, vector<64x64xf32> -> vector<64x64xf32>
    %cst_37 = arith.constant 0.353553385 : f32
    %98 = vector.broadcast %cst_37 : f32 to vector<64x64xf32>
    %99 = arith.mulf %97, %98 : vector<64x64xf32>
    %c64 = arith.constant 64 : index
    %c0_38 = arith.constant 0 : index
    %100 = vector.load %arg4[%c64, %c0_38] : memref<520x128xf32, #tpu.memory_space<vmem>>, vector<64x64xf32>
    %101 = arith.addf %99, %100 : vector<64x64xf32>
    %cst_39 = arith.constant dense<0xFF800000> : vector<64xf32>
    %102 = vector.multi_reduction <maximumf>, %101, %cst_39 [1] : vector<64x64xf32> to vector<64xf32>
    %103 = vector.shape_cast %102 : vector<64xf32> to vector<64x1xf32>
    %104 = vector.broadcast %103 : vector<64x1xf32> to vector<64x64xf32>
    %105 = arith.subf %101, %104 : vector<64x64xf32>
    %106 = math.exp %105 : vector<64x64xf32>
    %cst_40 = arith.constant dense<0.000000e+00> : vector<64xf32>
    %107 = vector.multi_reduction <add>, %106, %cst_40 [1] : vector<64x64xf32> to vector<64xf32>
    %108 = vector.shape_cast %107 : vector<64xf32> to vector<64x1xf32>
    %109 = tpu.reciprocal %108 {approx = true} : vector<64x1xf32> -> vector<64x1xf32>
    %110 = vector.broadcast %109 : vector<64x1xf32> to vector<64x64xf32>
    %111 = arith.mulf %106, %110 : vector<64x64xf32>
    %112 = arith.truncf %111 : vector<64x64xf32> to vector<64x64xbf16>
    %113 = arith.truncf %93 : vector<64x8xf32> to vector<64x8xbf16>
    %cst_41 = arith.constant dense<0.000000e+00> : vector<64x8xf32>
    %114 = tpu.matmul %112, %113, %cst_41 {dimension_numbers = #tpu.dot_dimension_numbers<[1], [0], [0], [1], [0, 0, 1, 1], [], []>} : vector<64x64xbf16>, vector<64x8xbf16>, vector<64x8xf32> -> vector<64x8xf32>
    %115 = vector.extract_strided_slice %114 {offsets = [0, 0], sizes = [16, 8], strides = [1, 1]} : vector<64x8xf32> to vector<16x8xf32>
    %116 = vector.extract_strided_slice %114 {offsets = [16, 0], sizes = [16, 8], strides = [1, 1]} : vector<64x8xf32> to vector<16x8xf32>
    %117 = vector.extract_strided_slice %114 {offsets = [32, 0], sizes = [16, 8], strides = [1, 1]} : vector<64x8xf32> to vector<16x8xf32>
    %118 = vector.extract_strided_slice %114 {offsets = [48, 0], sizes = [16, 8], strides = [1, 1]} : vector<64x8xf32> to vector<16x8xf32>
    %119 = tpu.concatenate %115, %116, %117, %118 in 1 : vector<16x8xf32>, vector<16x8xf32>, vector<16x8xf32>, vector<16x8xf32> -> vector<16x32xf32>
    %120 = arith.truncf %119 : vector<16x32xf32> to vector<16x32xbf16>
    %c32_42 = arith.constant 32 : index
    %c0_43 = arith.constant 0 : index
    %121 = vector.load %arg3[%c32_42, %c0_43] : memref<864x128xbf16, #tpu.memory_space<vmem>>, vector<32x32xbf16>
    %cst_44 = arith.constant dense<0.000000e+00> : vector<16x32xf32>
    %122 = tpu.matmul %120, %121, %cst_44 {dimension_numbers = #tpu.dot_dimension_numbers<[1], [0], [0], [1], [0, 0, 1, 1], [], []>} : vector<16x32xbf16>, vector<32x32xbf16>, vector<16x32xf32> -> vector<16x32xf32>
    %c272 = arith.constant 272 : index
    %c0_45 = arith.constant 0 : index
    %123 = vector.load %arg4[%c272, %c0_45] : memref<520x128xf32, #tpu.memory_space<vmem>>, vector<1x32xf32>
    %124 = vector.broadcast %123 : vector<1x32xf32> to vector<16x32xf32>
    %125 = arith.addf %122, %124 : vector<16x32xf32>
    %126 = arith.addf %69, %125 : vector<16x32xf32>
    %c296 = arith.constant 296 : index
    %c0_46 = arith.constant 0 : index
    %127 = vector.load %arg4[%c296, %c0_46] : memref<520x128xf32, #tpu.memory_space<vmem>>, vector<2x32xf32>
    %cst_47 = arith.constant dense<0.000000e+00> : vector<16xf32>
    %128 = vector.multi_reduction <add>, %126, %cst_47 [1] : vector<16x32xf32> to vector<16xf32>
    %129 = vector.shape_cast %128 : vector<16xf32> to vector<16x1xf32>
    %cst_48 = arith.constant 3.200000e+01 : f32
    %130 = vector.broadcast %cst_48 : f32 to vector<16x1xf32>
    %131 = arith.divf %129, %130 : vector<16x1xf32>
    %132 = arith.mulf %126, %126 : vector<16x32xf32>
    %cst_49 = arith.constant dense<0.000000e+00> : vector<16xf32>
    %133 = vector.multi_reduction <add>, %132, %cst_49 [1] : vector<16x32xf32> to vector<16xf32>
    %134 = vector.shape_cast %133 : vector<16xf32> to vector<16x1xf32>
    %cst_50 = arith.constant 3.200000e+01 : f32
    %135 = vector.broadcast %cst_50 : f32 to vector<16x1xf32>
    %136 = arith.divf %134, %135 : vector<16x1xf32>
    %137 = arith.mulf %131, %131 : vector<16x1xf32>
    %138 = arith.subf %136, %137 : vector<16x1xf32>
    %cst_51 = arith.constant 9.99999974E-6 : f32
    %139 = vector.broadcast %cst_51 : f32 to vector<16x1xf32>
    %140 = arith.addf %138, %139 : vector<16x1xf32>
    %141 = math.rsqrt %140 : vector<16x1xf32>
    %142 = vector.broadcast %131 : vector<16x1xf32> to vector<16x32xf32>
    %143 = arith.subf %126, %142 : vector<16x32xf32>
    %144 = vector.broadcast %141 : vector<16x1xf32> to vector<16x32xf32>
    %145 = arith.mulf %143, %144 : vector<16x32xf32>
    %146 = vector.extract_strided_slice %127 {offsets = [0, 0], sizes = [1, 32], strides = [1, 1]} : vector<2x32xf32> to vector<1x32xf32>
    %147 = vector.broadcast %146 : vector<1x32xf32> to vector<16x32xf32>
    %148 = arith.mulf %145, %147 : vector<16x32xf32>
    %149 = vector.extract_strided_slice %127 {offsets = [1, 0], sizes = [1, 32], strides = [1, 1]} : vector<2x32xf32> to vector<1x32xf32>
    %150 = vector.broadcast %149 : vector<1x32xf32> to vector<16x32xf32>
    %151 = arith.addf %148, %150 : vector<16x32xf32>
    %152 = arith.truncf %151 : vector<16x32xf32> to vector<16x32xbf16>
    %c64_52 = arith.constant 64 : index
    %c0_53 = arith.constant 0 : index
    %153 = vector.load %arg3[%c64_52, %c0_53] : memref<864x128xbf16, #tpu.memory_space<vmem>>, vector<32x64xbf16>
    %cst_54 = arith.constant dense<0.000000e+00> : vector<16x64xf32>
    %154 = tpu.matmul %152, %153, %cst_54 {dimension_numbers = #tpu.dot_dimension_numbers<[1], [0], [0], [1], [0, 0, 1, 1], [], []>} : vector<16x32xbf16>, vector<32x64xbf16>, vector<16x64xf32> -> vector<16x64xf32>
    %c280 = arith.constant 280 : index
    %c0_55 = arith.constant 0 : index
    %155 = vector.load %arg4[%c280, %c0_55] : memref<520x128xf32, #tpu.memory_space<vmem>>, vector<1x64xf32>
    %156 = vector.broadcast %155 : vector<1x64xf32> to vector<16x64xf32>
    %157 = arith.addf %154, %156 : vector<16x64xf32>
    %cst_56 = arith.constant 0.000000e+00 : f32
    %158 = vector.broadcast %cst_56 : f32 to vector<16x64xf32>
    %159 = arith.maximumf %157, %158 : vector<16x64xf32>
    %160 = arith.truncf %159 : vector<16x64xf32> to vector<16x64xbf16>
    %c96 = arith.constant 96 : index
    %c0_57 = arith.constant 0 : index
    %161 = vector.load %arg3[%c96, %c0_57] : memref<864x128xbf16, #tpu.memory_space<vmem>>, vector<64x32xbf16>
    %cst_58 = arith.constant dense<0.000000e+00> : vector<16x32xf32>
    %162 = tpu.matmul %160, %161, %cst_58 {dimension_numbers = #tpu.dot_dimension_numbers<[1], [0], [0], [1], [0, 0, 1, 1], [], []>} : vector<16x64xbf16>, vector<64x32xbf16>, vector<16x32xf32> -> vector<16x32xf32>
    %163 = arith.addf %151, %162 : vector<16x32xf32>
    %c288 = arith.constant 288 : index
    %c0_59 = arith.constant 0 : index
    %164 = vector.load %arg4[%c288, %c0_59] : memref<520x128xf32, #tpu.memory_space<vmem>>, vector<1x32xf32>
    %165 = vector.broadcast %164 : vector<1x32xf32> to vector<16x32xf32>
    %166 = arith.addf %163, %165 : vector<16x32xf32>
    %c304 = arith.constant 304 : index
    %c0_60 = arith.constant 0 : index
    %167 = vector.load %arg4[%c304, %c0_60] : memref<520x128xf32, #tpu.memory_space<vmem>>, vector<2x32xf32>
    %cst_61 = arith.constant dense<0.000000e+00> : vector<16xf32>
    %168 = vector.multi_reduction <add>, %166, %cst_61 [1] : vector<16x32xf32> to vector<16xf32>
    %169 = vector.shape_cast %168 : vector<16xf32> to vector<16x1xf32>
    %cst_62 = arith.constant 3.200000e+01 : f32
    %170 = vector.broadcast %cst_62 : f32 to vector<16x1xf32>
    %171 = arith.divf %169, %170 : vector<16x1xf32>
    %172 = arith.mulf %166, %166 : vector<16x32xf32>
    %cst_63 = arith.constant dense<0.000000e+00> : vector<16xf32>
    %173 = vector.multi_reduction <add>, %172, %cst_63 [1] : vector<16x32xf32> to vector<16xf32>
    %174 = vector.shape_cast %173 : vector<16xf32> to vector<16x1xf32>
    %cst_64 = arith.constant 3.200000e+01 : f32
    %175 = vector.broadcast %cst_64 : f32 to vector<16x1xf32>
    %176 = arith.divf %174, %175 : vector<16x1xf32>
    %177 = arith.mulf %171, %171 : vector<16x1xf32>
    %178 = arith.subf %176, %177 : vector<16x1xf32>
    %cst_65 = arith.constant 9.99999974E-6 : f32
    %179 = vector.broadcast %cst_65 : f32 to vector<16x1xf32>
    %180 = arith.addf %178, %179 : vector<16x1xf32>
    %181 = math.rsqrt %180 : vector<16x1xf32>
    %182 = vector.broadcast %171 : vector<16x1xf32> to vector<16x32xf32>
    %183 = arith.subf %166, %182 : vector<16x32xf32>
    %184 = vector.broadcast %181 : vector<16x1xf32> to vector<16x32xf32>
    %185 = arith.mulf %183, %184 : vector<16x32xf32>
    %186 = vector.extract_strided_slice %167 {offsets = [0, 0], sizes = [1, 32], strides = [1, 1]} : vector<2x32xf32> to vector<1x32xf32>
    %187 = vector.broadcast %186 : vector<1x32xf32> to vector<16x32xf32>
    %188 = arith.mulf %185, %187 : vector<16x32xf32>
    %189 = vector.extract_strided_slice %167 {offsets = [1, 0], sizes = [1, 32], strides = [1, 1]} : vector<2x32xf32> to vector<1x32xf32>
    %190 = vector.broadcast %189 : vector<1x32xf32> to vector<16x32xf32>
    %191 = arith.addf %188, %190 : vector<16x32xf32>
    %192 = arith.truncf %191 : vector<16x32xf32> to vector<16x32xbf16>
    %c160 = arith.constant 160 : index
    %c0_66 = arith.constant 0 : index
    %193 = vector.load %arg3[%c160, %c0_66] : memref<864x128xbf16, #tpu.memory_space<vmem>>, vector<32x96xbf16>
    %cst_67 = arith.constant dense<0.000000e+00> : vector<16x96xf32>
    %194 = tpu.matmul %192, %193, %cst_67 {dimension_numbers = #tpu.dot_dimension_numbers<[1], [0], [0], [1], [0, 0, 1, 1], [], []>} : vector<16x32xbf16>, vector<32x96xbf16>, vector<16x96xf32> -> vector<16x96xf32>
    %c312 = arith.constant 312 : index
    %c0_68 = arith.constant 0 : index
    %195 = vector.load %arg4[%c312, %c0_68] : memref<520x128xf32, #tpu.memory_space<vmem>>, vector<1x96xf32>
    %196 = vector.broadcast %195 : vector<1x96xf32> to vector<16x96xf32>
    %197 = arith.addf %194, %196 : vector<16x96xf32>
    %198 = vector.extract_strided_slice %197 {offsets = [0, 0], sizes = [16, 32], strides = [1, 1]} : vector<16x96xf32> to vector<16x32xf32>
    %199 = vector.extract_strided_slice %197 {offsets = [0, 32], sizes = [16, 32], strides = [1, 1]} : vector<16x96xf32> to vector<16x32xf32>
    %200 = vector.extract_strided_slice %197 {offsets = [0, 64], sizes = [16, 32], strides = [1, 1]} : vector<16x96xf32> to vector<16x32xf32>
    %201 = vector.extract_strided_slice %198 {offsets = [0, 0], sizes = [16, 8], strides = [1, 1]} : vector<16x32xf32> to vector<16x8xf32>
    %202 = vector.extract_strided_slice %198 {offsets = [0, 8], sizes = [16, 8], strides = [1, 1]} : vector<16x32xf32> to vector<16x8xf32>
    %203 = vector.extract_strided_slice %198 {offsets = [0, 16], sizes = [16, 8], strides = [1, 1]} : vector<16x32xf32> to vector<16x8xf32>
    %204 = vector.extract_strided_slice %198 {offsets = [0, 24], sizes = [16, 8], strides = [1, 1]} : vector<16x32xf32> to vector<16x8xf32>
    %205 = tpu.concatenate %201, %202, %203, %204 in 0 : vector<16x8xf32>, vector<16x8xf32>, vector<16x8xf32>, vector<16x8xf32> -> vector<64x8xf32>
    %206 = vector.extract_strided_slice %199 {offsets = [0, 0], sizes = [16, 8], strides = [1, 1]} : vector<16x32xf32> to vector<16x8xf32>
    %207 = vector.extract_strided_slice %199 {offsets = [0, 8], sizes = [16, 8], strides = [1, 1]} : vector<16x32xf32> to vector<16x8xf32>
    %208 = vector.extract_strided_slice %199 {offsets = [0, 16], sizes = [16, 8], strides = [1, 1]} : vector<16x32xf32> to vector<16x8xf32>
    %209 = vector.extract_strided_slice %199 {offsets = [0, 24], sizes = [16, 8], strides = [1, 1]} : vector<16x32xf32> to vector<16x8xf32>
    %210 = tpu.concatenate %206, %207, %208, %209 in 0 : vector<16x8xf32>, vector<16x8xf32>, vector<16x8xf32>, vector<16x8xf32> -> vector<64x8xf32>
    %211 = vector.extract_strided_slice %200 {offsets = [0, 0], sizes = [16, 8], strides = [1, 1]} : vector<16x32xf32> to vector<16x8xf32>
    %212 = vector.extract_strided_slice %200 {offsets = [0, 8], sizes = [16, 8], strides = [1, 1]} : vector<16x32xf32> to vector<16x8xf32>
    %213 = vector.extract_strided_slice %200 {offsets = [0, 16], sizes = [16, 8], strides = [1, 1]} : vector<16x32xf32> to vector<16x8xf32>
    %214 = vector.extract_strided_slice %200 {offsets = [0, 24], sizes = [16, 8], strides = [1, 1]} : vector<16x32xf32> to vector<16x8xf32>
    %215 = tpu.concatenate %211, %212, %213, %214 in 0 : vector<16x8xf32>, vector<16x8xf32>, vector<16x8xf32>, vector<16x8xf32> -> vector<64x8xf32>
    %216 = arith.truncf %205 : vector<64x8xf32> to vector<64x8xbf16>
    %217 = tpu.transpose %210, [1, 0] : vector<64x8xf32> -> vector<8x64xf32>
    %218 = arith.truncf %217 : vector<8x64xf32> to vector<8x64xbf16>
    %cst_69 = arith.constant dense<0.000000e+00> : vector<64x64xf32>
    %219 = tpu.matmul %216, %218, %cst_69 {dimension_numbers = #tpu.dot_dimension_numbers<[1], [0], [0], [1], [0, 0, 1, 1], [], []>} : vector<64x8xbf16>, vector<8x64xbf16>, vector<64x64xf32> -> vector<64x64xf32>
    %cst_70 = arith.constant 0.353553385 : f32
    %220 = vector.broadcast %cst_70 : f32 to vector<64x64xf32>
    %221 = arith.mulf %219, %220 : vector<64x64xf32>
    %c64_71 = arith.constant 64 : index
    %c0_72 = arith.constant 0 : index
    %222 = vector.load %arg4[%c64_71, %c0_72] : memref<520x128xf32, #tpu.memory_space<vmem>>, vector<64x64xf32>
    %223 = arith.addf %221, %222 : vector<64x64xf32>
    %cst_73 = arith.constant dense<0xFF800000> : vector<64xf32>
    %224 = vector.multi_reduction <maximumf>, %223, %cst_73 [1] : vector<64x64xf32> to vector<64xf32>
    %225 = vector.shape_cast %224 : vector<64xf32> to vector<64x1xf32>
    %226 = vector.broadcast %225 : vector<64x1xf32> to vector<64x64xf32>
    %227 = arith.subf %223, %226 : vector<64x64xf32>
    %228 = math.exp %227 : vector<64x64xf32>
    %cst_74 = arith.constant dense<0.000000e+00> : vector<64xf32>
    %229 = vector.multi_reduction <add>, %228, %cst_74 [1] : vector<64x64xf32> to vector<64xf32>
    %230 = vector.shape_cast %229 : vector<64xf32> to vector<64x1xf32>
    %231 = tpu.reciprocal %230 {approx = true} : vector<64x1xf32> -> vector<64x1xf32>
    %232 = vector.broadcast %231 : vector<64x1xf32> to vector<64x64xf32>
    %233 = arith.mulf %228, %232 : vector<64x64xf32>
    %234 = arith.truncf %233 : vector<64x64xf32> to vector<64x64xbf16>
    %235 = arith.truncf %215 : vector<64x8xf32> to vector<64x8xbf16>
    %cst_75 = arith.constant dense<0.000000e+00> : vector<64x8xf32>
    %236 = tpu.matmul %234, %235, %cst_75 {dimension_numbers = #tpu.dot_dimension_numbers<[1], [0], [0], [1], [0, 0, 1, 1], [], []>} : vector<64x64xbf16>, vector<64x8xbf16>, vector<64x8xf32> -> vector<64x8xf32>
    %237 = vector.extract_strided_slice %236 {offsets = [0, 0], sizes = [16, 8], strides = [1, 1]} : vector<64x8xf32> to vector<16x8xf32>
    %238 = vector.extract_strided_slice %236 {offsets = [16, 0], sizes = [16, 8], strides = [1, 1]} : vector<64x8xf32> to vector<16x8xf32>
    %239 = vector.extract_strided_slice %236 {offsets = [32, 0], sizes = [16, 8], strides = [1, 1]} : vector<64x8xf32> to vector<16x8xf32>
    %240 = vector.extract_strided_slice %236 {offsets = [48, 0], sizes = [16, 8], strides = [1, 1]} : vector<64x8xf32> to vector<16x8xf32>
    %241 = tpu.concatenate %237, %238, %239, %240 in 1 : vector<16x8xf32>, vector<16x8xf32>, vector<16x8xf32>, vector<16x8xf32> -> vector<16x32xf32>
    %242 = arith.truncf %241 : vector<16x32xf32> to vector<16x32xbf16>
    %c192 = arith.constant 192 : index
    %c0_76 = arith.constant 0 : index
    %243 = vector.load %arg3[%c192, %c0_76] : memref<864x128xbf16, #tpu.memory_space<vmem>>, vector<32x32xbf16>
    %cst_77 = arith.constant dense<0.000000e+00> : vector<16x32xf32>
    %244 = tpu.matmul %242, %243, %cst_77 {dimension_numbers = #tpu.dot_dimension_numbers<[1], [0], [0], [1], [0, 0, 1, 1], [], []>} : vector<16x32xbf16>, vector<32x32xbf16>, vector<16x32xf32> -> vector<16x32xf32>
    %c320 = arith.constant 320 : index
    %c0_78 = arith.constant 0 : index
    %245 = vector.load %arg4[%c320, %c0_78] : memref<520x128xf32, #tpu.memory_space<vmem>>, vector<1x32xf32>
    %246 = vector.broadcast %245 : vector<1x32xf32> to vector<16x32xf32>
    %247 = arith.addf %244, %246 : vector<16x32xf32>
    %248 = arith.addf %191, %247 : vector<16x32xf32>
    %c344 = arith.constant 344 : index
    %c0_79 = arith.constant 0 : index
    %249 = vector.load %arg4[%c344, %c0_79] : memref<520x128xf32, #tpu.memory_space<vmem>>, vector<2x32xf32>
    %cst_80 = arith.constant dense<0.000000e+00> : vector<16xf32>
    %250 = vector.multi_reduction <add>, %248, %cst_80 [1] : vector<16x32xf32> to vector<16xf32>
    %251 = vector.shape_cast %250 : vector<16xf32> to vector<16x1xf32>
    %cst_81 = arith.constant 3.200000e+01 : f32
    %252 = vector.broadcast %cst_81 : f32 to vector<16x1xf32>
    %253 = arith.divf %251, %252 : vector<16x1xf32>
    %254 = arith.mulf %248, %248 : vector<16x32xf32>
    %cst_82 = arith.constant dense<0.000000e+00> : vector<16xf32>
    %255 = vector.multi_reduction <add>, %254, %cst_82 [1] : vector<16x32xf32> to vector<16xf32>
    %256 = vector.shape_cast %255 : vector<16xf32> to vector<16x1xf32>
    %cst_83 = arith.constant 3.200000e+01 : f32
    %257 = vector.broadcast %cst_83 : f32 to vector<16x1xf32>
    %258 = arith.divf %256, %257 : vector<16x1xf32>
    %259 = arith.mulf %253, %253 : vector<16x1xf32>
    %260 = arith.subf %258, %259 : vector<16x1xf32>
    %cst_84 = arith.constant 9.99999974E-6 : f32
    %261 = vector.broadcast %cst_84 : f32 to vector<16x1xf32>
    %262 = arith.addf %260, %261 : vector<16x1xf32>
    %263 = math.rsqrt %262 : vector<16x1xf32>
    %264 = vector.broadcast %253 : vector<16x1xf32> to vector<16x32xf32>
    %265 = arith.subf %248, %264 : vector<16x32xf32>
    %266 = vector.broadcast %263 : vector<16x1xf32> to vector<16x32xf32>
    %267 = arith.mulf %265, %266 : vector<16x32xf32>
    %268 = vector.extract_strided_slice %249 {offsets = [0, 0], sizes = [1, 32], strides = [1, 1]} : vector<2x32xf32> to vector<1x32xf32>
    %269 = vector.broadcast %268 : vector<1x32xf32> to vector<16x32xf32>
    %270 = arith.mulf %267, %269 : vector<16x32xf32>
    %271 = vector.extract_strided_slice %249 {offsets = [1, 0], sizes = [1, 32], strides = [1, 1]} : vector<2x32xf32> to vector<1x32xf32>
    %272 = vector.broadcast %271 : vector<1x32xf32> to vector<16x32xf32>
    %273 = arith.addf %270, %272 : vector<16x32xf32>
    %274 = arith.truncf %273 : vector<16x32xf32> to vector<16x32xbf16>
    %c224 = arith.constant 224 : index
    %c0_85 = arith.constant 0 : index
    %275 = vector.load %arg3[%c224, %c0_85] : memref<864x128xbf16, #tpu.memory_space<vmem>>, vector<32x64xbf16>
    %cst_86 = arith.constant dense<0.000000e+00> : vector<16x64xf32>
    %276 = tpu.matmul %274, %275, %cst_86 {dimension_numbers = #tpu.dot_dimension_numbers<[1], [0], [0], [1], [0, 0, 1, 1], [], []>} : vector<16x32xbf16>, vector<32x64xbf16>, vector<16x64xf32> -> vector<16x64xf32>
    %c328 = arith.constant 328 : index
    %c0_87 = arith.constant 0 : index
    %277 = vector.load %arg4[%c328, %c0_87] : memref<520x128xf32, #tpu.memory_space<vmem>>, vector<1x64xf32>
    %278 = vector.broadcast %277 : vector<1x64xf32> to vector<16x64xf32>
    %279 = arith.addf %276, %278 : vector<16x64xf32>
    %cst_88 = arith.constant 0.000000e+00 : f32
    %280 = vector.broadcast %cst_88 : f32 to vector<16x64xf32>
    %281 = arith.maximumf %279, %280 : vector<16x64xf32>
    %282 = arith.truncf %281 : vector<16x64xf32> to vector<16x64xbf16>
    %c256 = arith.constant 256 : index
    %c0_89 = arith.constant 0 : index
    %283 = vector.load %arg3[%c256, %c0_89] : memref<864x128xbf16, #tpu.memory_space<vmem>>, vector<64x32xbf16>
    %cst_90 = arith.constant dense<0.000000e+00> : vector<16x32xf32>
    %284 = tpu.matmul %282, %283, %cst_90 {dimension_numbers = #tpu.dot_dimension_numbers<[1], [0], [0], [1], [0, 0, 1, 1], [], []>} : vector<16x64xbf16>, vector<64x32xbf16>, vector<16x32xf32> -> vector<16x32xf32>
    %285 = arith.addf %273, %284 : vector<16x32xf32>
    %c336 = arith.constant 336 : index
    %c0_91 = arith.constant 0 : index
    %286 = vector.load %arg4[%c336, %c0_91] : memref<520x128xf32, #tpu.memory_space<vmem>>, vector<1x32xf32>
    %287 = vector.broadcast %286 : vector<1x32xf32> to vector<16x32xf32>
    %288 = arith.addf %285, %287 : vector<16x32xf32>
    %c352 = arith.constant 352 : index
    %c0_92 = arith.constant 0 : index
    %289 = vector.load %arg4[%c352, %c0_92] : memref<520x128xf32, #tpu.memory_space<vmem>>, vector<2x32xf32>
    %cst_93 = arith.constant dense<0.000000e+00> : vector<16xf32>
    %290 = vector.multi_reduction <add>, %288, %cst_93 [1] : vector<16x32xf32> to vector<16xf32>
    %291 = vector.shape_cast %290 : vector<16xf32> to vector<16x1xf32>
    %cst_94 = arith.constant 3.200000e+01 : f32
    %292 = vector.broadcast %cst_94 : f32 to vector<16x1xf32>
    %293 = arith.divf %291, %292 : vector<16x1xf32>
    %294 = arith.mulf %288, %288 : vector<16x32xf32>
    %cst_95 = arith.constant dense<0.000000e+00> : vector<16xf32>
    %295 = vector.multi_reduction <add>, %294, %cst_95 [1] : vector<16x32xf32> to vector<16xf32>
    %296 = vector.shape_cast %295 : vector<16xf32> to vector<16x1xf32>
    %cst_96 = arith.constant 3.200000e+01 : f32
    %297 = vector.broadcast %cst_96 : f32 to vector<16x1xf32>
    %298 = arith.divf %296, %297 : vector<16x1xf32>
    %299 = arith.mulf %293, %293 : vector<16x1xf32>
    %300 = arith.subf %298, %299 : vector<16x1xf32>
    %cst_97 = arith.constant 9.99999974E-6 : f32
    %301 = vector.broadcast %cst_97 : f32 to vector<16x1xf32>
    %302 = arith.addf %300, %301 : vector<16x1xf32>
    %303 = math.rsqrt %302 : vector<16x1xf32>
    %304 = vector.broadcast %293 : vector<16x1xf32> to vector<16x32xf32>
    %305 = arith.subf %288, %304 : vector<16x32xf32>
    %306 = vector.broadcast %303 : vector<16x1xf32> to vector<16x32xf32>
    %307 = arith.mulf %305, %306 : vector<16x32xf32>
    %308 = vector.extract_strided_slice %289 {offsets = [0, 0], sizes = [1, 32], strides = [1, 1]} : vector<2x32xf32> to vector<1x32xf32>
    %309 = vector.broadcast %308 : vector<1x32xf32> to vector<16x32xf32>
    %310 = arith.mulf %307, %309 : vector<16x32xf32>
    %311 = vector.extract_strided_slice %289 {offsets = [1, 0], sizes = [1, 32], strides = [1, 1]} : vector<2x32xf32> to vector<1x32xf32>
    %312 = vector.broadcast %311 : vector<1x32xf32> to vector<16x32xf32>
    %313 = arith.addf %310, %312 : vector<16x32xf32>
    %c0_98 = arith.constant 0 : index
    %314 = memref.load %arg2[%c0_98] : memref<16xi32, #tpu.memory_space<smem>>
    %c16_i32 = arith.constant 16 : i32
    %315 = arith.addi %c16_i32, %314 : i32
    %316 = arith.index_cast %315 : i32 to index
    %c0_99 = arith.constant 0 : index
    %317 = vector.load %arg4[%316, %c0_99] : memref<520x128xf32, #tpu.memory_space<vmem>>, vector<1x128xf32>
    %c1_100 = arith.constant 1 : index
    %318 = memref.load %arg2[%c1_100] : memref<16xi32, #tpu.memory_space<smem>>
    %c16_i32_101 = arith.constant 16 : i32
    %319 = arith.addi %c16_i32_101, %318 : i32
    %320 = arith.index_cast %319 : i32 to index
    %c0_102 = arith.constant 0 : index
    %321 = vector.load %arg4[%320, %c0_102] : memref<520x128xf32, #tpu.memory_space<vmem>>, vector<1x128xf32>
    %c2_103 = arith.constant 2 : index
    %322 = memref.load %arg2[%c2_103] : memref<16xi32, #tpu.memory_space<smem>>
    %c16_i32_104 = arith.constant 16 : i32
    %323 = arith.addi %c16_i32_104, %322 : i32
    %324 = arith.index_cast %323 : i32 to index
    %c0_105 = arith.constant 0 : index
    %325 = vector.load %arg4[%324, %c0_105] : memref<520x128xf32, #tpu.memory_space<vmem>>, vector<1x128xf32>
    %c3_106 = arith.constant 3 : index
    %326 = memref.load %arg2[%c3_106] : memref<16xi32, #tpu.memory_space<smem>>
    %c16_i32_107 = arith.constant 16 : i32
    %327 = arith.addi %c16_i32_107, %326 : i32
    %328 = arith.index_cast %327 : i32 to index
    %c0_108 = arith.constant 0 : index
    %329 = vector.load %arg4[%328, %c0_108] : memref<520x128xf32, #tpu.memory_space<vmem>>, vector<1x128xf32>
    %c4_109 = arith.constant 4 : index
    %330 = memref.load %arg2[%c4_109] : memref<16xi32, #tpu.memory_space<smem>>
    %c16_i32_110 = arith.constant 16 : i32
    %331 = arith.addi %c16_i32_110, %330 : i32
    %332 = arith.index_cast %331 : i32 to index
    %c0_111 = arith.constant 0 : index
    %333 = vector.load %arg4[%332, %c0_111] : memref<520x128xf32, #tpu.memory_space<vmem>>, vector<1x128xf32>
    %c5_112 = arith.constant 5 : index
    %334 = memref.load %arg2[%c5_112] : memref<16xi32, #tpu.memory_space<smem>>
    %c16_i32_113 = arith.constant 16 : i32
    %335 = arith.addi %c16_i32_113, %334 : i32
    %336 = arith.index_cast %335 : i32 to index
    %c0_114 = arith.constant 0 : index
    %337 = vector.load %arg4[%336, %c0_114] : memref<520x128xf32, #tpu.memory_space<vmem>>, vector<1x128xf32>
    %c6_115 = arith.constant 6 : index
    %338 = memref.load %arg2[%c6_115] : memref<16xi32, #tpu.memory_space<smem>>
    %c16_i32_116 = arith.constant 16 : i32
    %339 = arith.addi %c16_i32_116, %338 : i32
    %340 = arith.index_cast %339 : i32 to index
    %c0_117 = arith.constant 0 : index
    %341 = vector.load %arg4[%340, %c0_117] : memref<520x128xf32, #tpu.memory_space<vmem>>, vector<1x128xf32>
    %c7_118 = arith.constant 7 : index
    %342 = memref.load %arg2[%c7_118] : memref<16xi32, #tpu.memory_space<smem>>
    %c16_i32_119 = arith.constant 16 : i32
    %343 = arith.addi %c16_i32_119, %342 : i32
    %344 = arith.index_cast %343 : i32 to index
    %c0_120 = arith.constant 0 : index
    %345 = vector.load %arg4[%344, %c0_120] : memref<520x128xf32, #tpu.memory_space<vmem>>, vector<1x128xf32>
    %c8_121 = arith.constant 8 : index
    %346 = memref.load %arg2[%c8_121] : memref<16xi32, #tpu.memory_space<smem>>
    %c16_i32_122 = arith.constant 16 : i32
    %347 = arith.addi %c16_i32_122, %346 : i32
    %348 = arith.index_cast %347 : i32 to index
    %c0_123 = arith.constant 0 : index
    %349 = vector.load %arg4[%348, %c0_123] : memref<520x128xf32, #tpu.memory_space<vmem>>, vector<1x128xf32>
    %c9_124 = arith.constant 9 : index
    %350 = memref.load %arg2[%c9_124] : memref<16xi32, #tpu.memory_space<smem>>
    %c16_i32_125 = arith.constant 16 : i32
    %351 = arith.addi %c16_i32_125, %350 : i32
    %352 = arith.index_cast %351 : i32 to index
    %c0_126 = arith.constant 0 : index
    %353 = vector.load %arg4[%352, %c0_126] : memref<520x128xf32, #tpu.memory_space<vmem>>, vector<1x128xf32>
    %c10_127 = arith.constant 10 : index
    %354 = memref.load %arg2[%c10_127] : memref<16xi32, #tpu.memory_space<smem>>
    %c16_i32_128 = arith.constant 16 : i32
    %355 = arith.addi %c16_i32_128, %354 : i32
    %356 = arith.index_cast %355 : i32 to index
    %c0_129 = arith.constant 0 : index
    %357 = vector.load %arg4[%356, %c0_129] : memref<520x128xf32, #tpu.memory_space<vmem>>, vector<1x128xf32>
    %c11_130 = arith.constant 11 : index
    %358 = memref.load %arg2[%c11_130] : memref<16xi32, #tpu.memory_space<smem>>
    %c16_i32_131 = arith.constant 16 : i32
    %359 = arith.addi %c16_i32_131, %358 : i32
    %360 = arith.index_cast %359 : i32 to index
    %c0_132 = arith.constant 0 : index
    %361 = vector.load %arg4[%360, %c0_132] : memref<520x128xf32, #tpu.memory_space<vmem>>, vector<1x128xf32>
    %c12_133 = arith.constant 12 : index
    %362 = memref.load %arg2[%c12_133] : memref<16xi32, #tpu.memory_space<smem>>
    %c16_i32_134 = arith.constant 16 : i32
    %363 = arith.addi %c16_i32_134, %362 : i32
    %364 = arith.index_cast %363 : i32 to index
    %c0_135 = arith.constant 0 : index
    %365 = vector.load %arg4[%364, %c0_135] : memref<520x128xf32, #tpu.memory_space<vmem>>, vector<1x128xf32>
    %c13_136 = arith.constant 13 : index
    %366 = memref.load %arg2[%c13_136] : memref<16xi32, #tpu.memory_space<smem>>
    %c16_i32_137 = arith.constant 16 : i32
    %367 = arith.addi %c16_i32_137, %366 : i32
    %368 = arith.index_cast %367 : i32 to index
    %c0_138 = arith.constant 0 : index
    %369 = vector.load %arg4[%368, %c0_138] : memref<520x128xf32, #tpu.memory_space<vmem>>, vector<1x128xf32>
    %c14_139 = arith.constant 14 : index
    %370 = memref.load %arg2[%c14_139] : memref<16xi32, #tpu.memory_space<smem>>
    %c16_i32_140 = arith.constant 16 : i32
    %371 = arith.addi %c16_i32_140, %370 : i32
    %372 = arith.index_cast %371 : i32 to index
    %c0_141 = arith.constant 0 : index
    %373 = vector.load %arg4[%372, %c0_141] : memref<520x128xf32, #tpu.memory_space<vmem>>, vector<1x128xf32>
    %c15_142 = arith.constant 15 : index
    %374 = memref.load %arg2[%c15_142] : memref<16xi32, #tpu.memory_space<smem>>
    %c16_i32_143 = arith.constant 16 : i32
    %375 = arith.addi %c16_i32_143, %374 : i32
    %376 = arith.index_cast %375 : i32 to index
    %c0_144 = arith.constant 0 : index
    %377 = vector.load %arg4[%376, %c0_144] : memref<520x128xf32, #tpu.memory_space<vmem>>, vector<1x128xf32>
    %378 = tpu.concatenate %317, %321, %325, %329, %333, %337, %341, %345, %349, %353, %357, %361, %365, %369, %373, %377 in 0 : vector<1x128xf32>, vector<1x128xf32>, vector<1x128xf32>, vector<1x128xf32>, vector<1x128xf32>, vector<1x128xf32>, vector<1x128xf32>, vector<1x128xf32>, vector<1x128xf32>, vector<1x128xf32>, vector<1x128xf32>, vector<1x128xf32>, vector<1x128xf32>, vector<1x128xf32>, vector<1x128xf32>, vector<1x128xf32> -> vector<16x128xf32>
    %379 = vector.extract_strided_slice %378 {offsets = [0, 0], sizes = [16, 32], strides = [1, 1]} : vector<16x128xf32> to vector<16x32xf32>
    %cst_145 = arith.constant 5.65685415 : f32
    %380 = vector.broadcast %cst_145 : f32 to vector<16x32xf32>
    %381 = arith.mulf %379, %380 : vector<16x32xf32>
    %c48 = arith.constant 48 : index
    %c0_146 = arith.constant 0 : index
    %382 = vector.load %arg4[%c48, %c0_146] : memref<520x128xf32, #tpu.memory_space<vmem>>, vector<16x32xf32>
    %383 = arith.addf %381, %382 : vector<16x32xf32>
    %384 = arith.truncf %383 : vector<16x32xf32> to vector<16x32xbf16>
    %c320_147 = arith.constant 320 : index
    %c0_148 = arith.constant 0 : index
    %385 = vector.load %arg3[%c320_147, %c0_148] : memref<864x128xbf16, #tpu.memory_space<vmem>>, vector<32x96xbf16>
    %cst_149 = arith.constant dense<0.000000e+00> : vector<16x96xf32>
    %386 = tpu.matmul %384, %385, %cst_149 {dimension_numbers = #tpu.dot_dimension_numbers<[1], [0], [0], [1], [0, 0, 1, 1], [], []>} : vector<16x32xbf16>, vector<32x96xbf16>, vector<16x96xf32> -> vector<16x96xf32>
    %c360 = arith.constant 360 : index
    %c0_150 = arith.constant 0 : index
    %387 = vector.load %arg4[%c360, %c0_150] : memref<520x128xf32, #tpu.memory_space<vmem>>, vector<1x96xf32>
    %388 = vector.broadcast %387 : vector<1x96xf32> to vector<16x96xf32>
    %389 = arith.addf %386, %388 : vector<16x96xf32>
    %390 = vector.extract_strided_slice %389 {offsets = [0, 0], sizes = [16, 32], strides = [1, 1]} : vector<16x96xf32> to vector<16x32xf32>
    %391 = vector.extract_strided_slice %389 {offsets = [0, 32], sizes = [16, 32], strides = [1, 1]} : vector<16x96xf32> to vector<16x32xf32>
    %392 = vector.extract_strided_slice %389 {offsets = [0, 64], sizes = [16, 32], strides = [1, 1]} : vector<16x96xf32> to vector<16x32xf32>
    %393 = vector.extract_strided_slice %390 {offsets = [0, 0], sizes = [16, 8], strides = [1, 1]} : vector<16x32xf32> to vector<16x8xf32>
    %394 = vector.extract_strided_slice %390 {offsets = [0, 8], sizes = [16, 8], strides = [1, 1]} : vector<16x32xf32> to vector<16x8xf32>
    %395 = vector.extract_strided_slice %390 {offsets = [0, 16], sizes = [16, 8], strides = [1, 1]} : vector<16x32xf32> to vector<16x8xf32>
    %396 = vector.extract_strided_slice %390 {offsets = [0, 24], sizes = [16, 8], strides = [1, 1]} : vector<16x32xf32> to vector<16x8xf32>
    %397 = tpu.concatenate %393, %394, %395, %396 in 0 : vector<16x8xf32>, vector<16x8xf32>, vector<16x8xf32>, vector<16x8xf32> -> vector<64x8xf32>
    %398 = vector.extract_strided_slice %391 {offsets = [0, 0], sizes = [16, 8], strides = [1, 1]} : vector<16x32xf32> to vector<16x8xf32>
    %399 = vector.extract_strided_slice %391 {offsets = [0, 8], sizes = [16, 8], strides = [1, 1]} : vector<16x32xf32> to vector<16x8xf32>
    %400 = vector.extract_strided_slice %391 {offsets = [0, 16], sizes = [16, 8], strides = [1, 1]} : vector<16x32xf32> to vector<16x8xf32>
    %401 = vector.extract_strided_slice %391 {offsets = [0, 24], sizes = [16, 8], strides = [1, 1]} : vector<16x32xf32> to vector<16x8xf32>
    %402 = tpu.concatenate %398, %399, %400, %401 in 0 : vector<16x8xf32>, vector<16x8xf32>, vector<16x8xf32>, vector<16x8xf32> -> vector<64x8xf32>
    %403 = vector.extract_strided_slice %392 {offsets = [0, 0], sizes = [16, 8], strides = [1, 1]} : vector<16x32xf32> to vector<16x8xf32>
    %404 = vector.extract_strided_slice %392 {offsets = [0, 8], sizes = [16, 8], strides = [1, 1]} : vector<16x32xf32> to vector<16x8xf32>
    %405 = vector.extract_strided_slice %392 {offsets = [0, 16], sizes = [16, 8], strides = [1, 1]} : vector<16x32xf32> to vector<16x8xf32>
    %406 = vector.extract_strided_slice %392 {offsets = [0, 24], sizes = [16, 8], strides = [1, 1]} : vector<16x32xf32> to vector<16x8xf32>
    %407 = tpu.concatenate %403, %404, %405, %406 in 0 : vector<16x8xf32>, vector<16x8xf32>, vector<16x8xf32>, vector<16x8xf32> -> vector<64x8xf32>
    %408 = arith.truncf %397 : vector<64x8xf32> to vector<64x8xbf16>
    %409 = tpu.transpose %402, [1, 0] : vector<64x8xf32> -> vector<8x64xf32>
    %410 = arith.truncf %409 : vector<8x64xf32> to vector<8x64xbf16>
    %cst_151 = arith.constant dense<0.000000e+00> : vector<64x64xf32>
    %411 = tpu.matmul %408, %410, %cst_151 {dimension_numbers = #tpu.dot_dimension_numbers<[1], [0], [0], [1], [0, 0, 1, 1], [], []>} : vector<64x8xbf16>, vector<8x64xbf16>, vector<64x64xf32> -> vector<64x64xf32>
    %cst_152 = arith.constant 0.353553385 : f32
    %412 = vector.broadcast %cst_152 : f32 to vector<64x64xf32>
    %413 = arith.mulf %411, %412 : vector<64x64xf32>
    %c128 = arith.constant 128 : index
    %c0_153 = arith.constant 0 : index
    %414 = vector.load %arg4[%c128, %c0_153] : memref<520x128xf32, #tpu.memory_space<vmem>>, vector<64x64xf32>
    %415 = arith.addf %413, %414 : vector<64x64xf32>
    %cst_154 = arith.constant dense<0xFF800000> : vector<64xf32>
    %416 = vector.multi_reduction <maximumf>, %415, %cst_154 [1] : vector<64x64xf32> to vector<64xf32>
    %417 = vector.shape_cast %416 : vector<64xf32> to vector<64x1xf32>
    %418 = vector.broadcast %417 : vector<64x1xf32> to vector<64x64xf32>
    %419 = arith.subf %415, %418 : vector<64x64xf32>
    %420 = math.exp %419 : vector<64x64xf32>
    %cst_155 = arith.constant dense<0.000000e+00> : vector<64xf32>
    %421 = vector.multi_reduction <add>, %420, %cst_155 [1] : vector<64x64xf32> to vector<64xf32>
    %422 = vector.shape_cast %421 : vector<64xf32> to vector<64x1xf32>
    %423 = tpu.reciprocal %422 {approx = true} : vector<64x1xf32> -> vector<64x1xf32>
    %424 = vector.broadcast %423 : vector<64x1xf32> to vector<64x64xf32>
    %425 = arith.mulf %420, %424 : vector<64x64xf32>
    %426 = arith.truncf %425 : vector<64x64xf32> to vector<64x64xbf16>
    %427 = arith.truncf %407 : vector<64x8xf32> to vector<64x8xbf16>
    %cst_156 = arith.constant dense<0.000000e+00> : vector<64x8xf32>
    %428 = tpu.matmul %426, %427, %cst_156 {dimension_numbers = #tpu.dot_dimension_numbers<[1], [0], [0], [1], [0, 0, 1, 1], [], []>} : vector<64x64xbf16>, vector<64x8xbf16>, vector<64x8xf32> -> vector<64x8xf32>
    %429 = vector.extract_strided_slice %428 {offsets = [0, 0], sizes = [16, 8], strides = [1, 1]} : vector<64x8xf32> to vector<16x8xf32>
    %430 = vector.extract_strided_slice %428 {offsets = [16, 0], sizes = [16, 8], strides = [1, 1]} : vector<64x8xf32> to vector<16x8xf32>
    %431 = vector.extract_strided_slice %428 {offsets = [32, 0], sizes = [16, 8], strides = [1, 1]} : vector<64x8xf32> to vector<16x8xf32>
    %432 = vector.extract_strided_slice %428 {offsets = [48, 0], sizes = [16, 8], strides = [1, 1]} : vector<64x8xf32> to vector<16x8xf32>
    %433 = tpu.concatenate %429, %430, %431, %432 in 1 : vector<16x8xf32>, vector<16x8xf32>, vector<16x8xf32>, vector<16x8xf32> -> vector<16x32xf32>
    %434 = arith.truncf %433 : vector<16x32xf32> to vector<16x32xbf16>
    %c352_157 = arith.constant 352 : index
    %c0_158 = arith.constant 0 : index
    %435 = vector.load %arg3[%c352_157, %c0_158] : memref<864x128xbf16, #tpu.memory_space<vmem>>, vector<32x32xbf16>
    %cst_159 = arith.constant dense<0.000000e+00> : vector<16x32xf32>
    %436 = tpu.matmul %434, %435, %cst_159 {dimension_numbers = #tpu.dot_dimension_numbers<[1], [0], [0], [1], [0, 0, 1, 1], [], []>} : vector<16x32xbf16>, vector<32x32xbf16>, vector<16x32xf32> -> vector<16x32xf32>
    %c368 = arith.constant 368 : index
    %c0_160 = arith.constant 0 : index
    %437 = vector.load %arg4[%c368, %c0_160] : memref<520x128xf32, #tpu.memory_space<vmem>>, vector<1x32xf32>
    %438 = vector.broadcast %437 : vector<1x32xf32> to vector<16x32xf32>
    %439 = arith.addf %436, %438 : vector<16x32xf32>
    %440 = arith.addf %383, %439 : vector<16x32xf32>
    %c416 = arith.constant 416 : index
    %c0_161 = arith.constant 0 : index
    %441 = vector.load %arg4[%c416, %c0_161] : memref<520x128xf32, #tpu.memory_space<vmem>>, vector<2x32xf32>
    %cst_162 = arith.constant dense<0.000000e+00> : vector<16xf32>
    %442 = vector.multi_reduction <add>, %440, %cst_162 [1] : vector<16x32xf32> to vector<16xf32>
    %443 = vector.shape_cast %442 : vector<16xf32> to vector<16x1xf32>
    %cst_163 = arith.constant 3.200000e+01 : f32
    %444 = vector.broadcast %cst_163 : f32 to vector<16x1xf32>
    %445 = arith.divf %443, %444 : vector<16x1xf32>
    %446 = arith.mulf %440, %440 : vector<16x32xf32>
    %cst_164 = arith.constant dense<0.000000e+00> : vector<16xf32>
    %447 = vector.multi_reduction <add>, %446, %cst_164 [1] : vector<16x32xf32> to vector<16xf32>
    %448 = vector.shape_cast %447 : vector<16xf32> to vector<16x1xf32>
    %cst_165 = arith.constant 3.200000e+01 : f32
    %449 = vector.broadcast %cst_165 : f32 to vector<16x1xf32>
    %450 = arith.divf %448, %449 : vector<16x1xf32>
    %451 = arith.mulf %445, %445 : vector<16x1xf32>
    %452 = arith.subf %450, %451 : vector<16x1xf32>
    %cst_166 = arith.constant 9.99999974E-6 : f32
    %453 = vector.broadcast %cst_166 : f32 to vector<16x1xf32>
    %454 = arith.addf %452, %453 : vector<16x1xf32>
    %455 = math.rsqrt %454 : vector<16x1xf32>
    %456 = vector.broadcast %445 : vector<16x1xf32> to vector<16x32xf32>
    %457 = arith.subf %440, %456 : vector<16x32xf32>
    %458 = vector.broadcast %455 : vector<16x1xf32> to vector<16x32xf32>
    %459 = arith.mulf %457, %458 : vector<16x32xf32>
    %460 = vector.extract_strided_slice %441 {offsets = [0, 0], sizes = [1, 32], strides = [1, 1]} : vector<2x32xf32> to vector<1x32xf32>
    %461 = vector.broadcast %460 : vector<1x32xf32> to vector<16x32xf32>
    %462 = arith.mulf %459, %461 : vector<16x32xf32>
    %463 = vector.extract_strided_slice %441 {offsets = [1, 0], sizes = [1, 32], strides = [1, 1]} : vector<2x32xf32> to vector<1x32xf32>
    %464 = vector.broadcast %463 : vector<1x32xf32> to vector<16x32xf32>
    %465 = arith.addf %462, %464 : vector<16x32xf32>
    %466 = arith.truncf %465 : vector<16x32xf32> to vector<16x32xbf16>
    %c384 = arith.constant 384 : index
    %c0_167 = arith.constant 0 : index
    %467 = vector.load %arg3[%c384, %c0_167] : memref<864x128xbf16, #tpu.memory_space<vmem>>, vector<32x32xbf16>
    %cst_168 = arith.constant dense<0.000000e+00> : vector<16x32xf32>
    %468 = tpu.matmul %466, %467, %cst_168 {dimension_numbers = #tpu.dot_dimension_numbers<[1], [0], [0], [1], [0, 0, 1, 1], [], []>} : vector<16x32xbf16>, vector<32x32xbf16>, vector<16x32xf32> -> vector<16x32xf32>
    %c376 = arith.constant 376 : index
    %c0_169 = arith.constant 0 : index
    %469 = vector.load %arg4[%c376, %c0_169] : memref<520x128xf32, #tpu.memory_space<vmem>>, vector<1x32xf32>
    %470 = vector.broadcast %469 : vector<1x32xf32> to vector<16x32xf32>
    %471 = arith.addf %468, %470 : vector<16x32xf32>
    %472 = arith.truncf %313 : vector<16x32xf32> to vector<16x32xbf16>
    %c416_170 = arith.constant 416 : index
    %c0_171 = arith.constant 0 : index
    %473 = vector.load %arg3[%c416_170, %c0_171] : memref<864x128xbf16, #tpu.memory_space<vmem>>, vector<32x64xbf16>
    %cst_172 = arith.constant dense<0.000000e+00> : vector<16x64xf32>
    %474 = tpu.matmul %472, %473, %cst_172 {dimension_numbers = #tpu.dot_dimension_numbers<[1], [0], [0], [1], [0, 0, 1, 1], [], []>} : vector<16x32xbf16>, vector<32x64xbf16>, vector<16x64xf32> -> vector<16x64xf32>
    %c384_173 = arith.constant 384 : index
    %c0_174 = arith.constant 0 : index
    %475 = vector.load %arg4[%c384_173, %c0_174] : memref<520x128xf32, #tpu.memory_space<vmem>>, vector<1x64xf32>
    %476 = vector.broadcast %475 : vector<1x64xf32> to vector<16x64xf32>
    %477 = arith.addf %474, %476 : vector<16x64xf32>
    %478 = vector.extract_strided_slice %477 {offsets = [0, 0], sizes = [16, 32], strides = [1, 1]} : vector<16x64xf32> to vector<16x32xf32>
    %479 = vector.extract_strided_slice %477 {offsets = [0, 32], sizes = [16, 32], strides = [1, 1]} : vector<16x64xf32> to vector<16x32xf32>
    %480 = vector.extract_strided_slice %471 {offsets = [0, 0], sizes = [16, 8], strides = [1, 1]} : vector<16x32xf32> to vector<16x8xf32>
    %481 = vector.extract_strided_slice %471 {offsets = [0, 8], sizes = [16, 8], strides = [1, 1]} : vector<16x32xf32> to vector<16x8xf32>
    %482 = vector.extract_strided_slice %471 {offsets = [0, 16], sizes = [16, 8], strides = [1, 1]} : vector<16x32xf32> to vector<16x8xf32>
    %483 = vector.extract_strided_slice %471 {offsets = [0, 24], sizes = [16, 8], strides = [1, 1]} : vector<16x32xf32> to vector<16x8xf32>
    %484 = tpu.concatenate %480, %481, %482, %483 in 0 : vector<16x8xf32>, vector<16x8xf32>, vector<16x8xf32>, vector<16x8xf32> -> vector<64x8xf32>
    %485 = vector.extract_strided_slice %478 {offsets = [0, 0], sizes = [16, 8], strides = [1, 1]} : vector<16x32xf32> to vector<16x8xf32>
    %486 = vector.extract_strided_slice %478 {offsets = [0, 8], sizes = [16, 8], strides = [1, 1]} : vector<16x32xf32> to vector<16x8xf32>
    %487 = vector.extract_strided_slice %478 {offsets = [0, 16], sizes = [16, 8], strides = [1, 1]} : vector<16x32xf32> to vector<16x8xf32>
    %488 = vector.extract_strided_slice %478 {offsets = [0, 24], sizes = [16, 8], strides = [1, 1]} : vector<16x32xf32> to vector<16x8xf32>
    %489 = tpu.concatenate %485, %486, %487, %488 in 0 : vector<16x8xf32>, vector<16x8xf32>, vector<16x8xf32>, vector<16x8xf32> -> vector<64x8xf32>
    %490 = vector.extract_strided_slice %479 {offsets = [0, 0], sizes = [16, 8], strides = [1, 1]} : vector<16x32xf32> to vector<16x8xf32>
    %491 = vector.extract_strided_slice %479 {offsets = [0, 8], sizes = [16, 8], strides = [1, 1]} : vector<16x32xf32> to vector<16x8xf32>
    %492 = vector.extract_strided_slice %479 {offsets = [0, 16], sizes = [16, 8], strides = [1, 1]} : vector<16x32xf32> to vector<16x8xf32>
    %493 = vector.extract_strided_slice %479 {offsets = [0, 24], sizes = [16, 8], strides = [1, 1]} : vector<16x32xf32> to vector<16x8xf32>
    %494 = tpu.concatenate %490, %491, %492, %493 in 0 : vector<16x8xf32>, vector<16x8xf32>, vector<16x8xf32>, vector<16x8xf32> -> vector<64x8xf32>
    %495 = arith.truncf %484 : vector<64x8xf32> to vector<64x8xbf16>
    %496 = tpu.transpose %489, [1, 0] : vector<64x8xf32> -> vector<8x64xf32>
    %497 = arith.truncf %496 : vector<8x64xf32> to vector<8x64xbf16>
    %cst_175 = arith.constant dense<0.000000e+00> : vector<64x64xf32>
    %498 = tpu.matmul %495, %497, %cst_175 {dimension_numbers = #tpu.dot_dimension_numbers<[1], [0], [0], [1], [0, 0, 1, 1], [], []>} : vector<64x8xbf16>, vector<8x64xbf16>, vector<64x64xf32> -> vector<64x64xf32>
    %cst_176 = arith.constant 0.353553385 : f32
    %499 = vector.broadcast %cst_176 : f32 to vector<64x64xf32>
    %500 = arith.mulf %498, %499 : vector<64x64xf32>
    %c192_177 = arith.constant 192 : index
    %c0_178 = arith.constant 0 : index
    %501 = vector.load %arg4[%c192_177, %c0_178] : memref<520x128xf32, #tpu.memory_space<vmem>>, vector<64x64xf32>
    %502 = arith.addf %500, %501 : vector<64x64xf32>
    %cst_179 = arith.constant dense<0xFF800000> : vector<64xf32>
    %503 = vector.multi_reduction <maximumf>, %502, %cst_179 [1] : vector<64x64xf32> to vector<64xf32>
    %504 = vector.shape_cast %503 : vector<64xf32> to vector<64x1xf32>
    %505 = vector.broadcast %504 : vector<64x1xf32> to vector<64x64xf32>
    %506 = arith.subf %502, %505 : vector<64x64xf32>
    %507 = math.exp %506 : vector<64x64xf32>
    %cst_180 = arith.constant dense<0.000000e+00> : vector<64xf32>
    %508 = vector.multi_reduction <add>, %507, %cst_180 [1] : vector<64x64xf32> to vector<64xf32>
    %509 = vector.shape_cast %508 : vector<64xf32> to vector<64x1xf32>
    %510 = tpu.reciprocal %509 {approx = true} : vector<64x1xf32> -> vector<64x1xf32>
    %511 = vector.broadcast %510 : vector<64x1xf32> to vector<64x64xf32>
    %512 = arith.mulf %507, %511 : vector<64x64xf32>
    %513 = arith.truncf %512 : vector<64x64xf32> to vector<64x64xbf16>
    %514 = arith.truncf %494 : vector<64x8xf32> to vector<64x8xbf16>
    %cst_181 = arith.constant dense<0.000000e+00> : vector<64x8xf32>
    %515 = tpu.matmul %513, %514, %cst_181 {dimension_numbers = #tpu.dot_dimension_numbers<[1], [0], [0], [1], [0, 0, 1, 1], [], []>} : vector<64x64xbf16>, vector<64x8xbf16>, vector<64x8xf32> -> vector<64x8xf32>
    %516 = vector.extract_strided_slice %515 {offsets = [0, 0], sizes = [16, 8], strides = [1, 1]} : vector<64x8xf32> to vector<16x8xf32>
    %517 = vector.extract_strided_slice %515 {offsets = [16, 0], sizes = [16, 8], strides = [1, 1]} : vector<64x8xf32> to vector<16x8xf32>
    %518 = vector.extract_strided_slice %515 {offsets = [32, 0], sizes = [16, 8], strides = [1, 1]} : vector<64x8xf32> to vector<16x8xf32>
    %519 = vector.extract_strided_slice %515 {offsets = [48, 0], sizes = [16, 8], strides = [1, 1]} : vector<64x8xf32> to vector<16x8xf32>
    %520 = tpu.concatenate %516, %517, %518, %519 in 1 : vector<16x8xf32>, vector<16x8xf32>, vector<16x8xf32>, vector<16x8xf32> -> vector<16x32xf32>
    %521 = arith.truncf %520 : vector<16x32xf32> to vector<16x32xbf16>
    %c448 = arith.constant 448 : index
    %c0_182 = arith.constant 0 : index
    %522 = vector.load %arg3[%c448, %c0_182] : memref<864x128xbf16, #tpu.memory_space<vmem>>, vector<32x32xbf16>
    %cst_183 = arith.constant dense<0.000000e+00> : vector<16x32xf32>
    %523 = tpu.matmul %521, %522, %cst_183 {dimension_numbers = #tpu.dot_dimension_numbers<[1], [0], [0], [1], [0, 0, 1, 1], [], []>} : vector<16x32xbf16>, vector<32x32xbf16>, vector<16x32xf32> -> vector<16x32xf32>
    %c392 = arith.constant 392 : index
    %c0_184 = arith.constant 0 : index
    %524 = vector.load %arg4[%c392, %c0_184] : memref<520x128xf32, #tpu.memory_space<vmem>>, vector<1x32xf32>
    %525 = vector.broadcast %524 : vector<1x32xf32> to vector<16x32xf32>
    %526 = arith.addf %523, %525 : vector<16x32xf32>
    %527 = arith.addf %465, %526 : vector<16x32xf32>
    %c424 = arith.constant 424 : index
    %c0_185 = arith.constant 0 : index
    %528 = vector.load %arg4[%c424, %c0_185] : memref<520x128xf32, #tpu.memory_space<vmem>>, vector<2x32xf32>
    %cst_186 = arith.constant dense<0.000000e+00> : vector<16xf32>
    %529 = vector.multi_reduction <add>, %527, %cst_186 [1] : vector<16x32xf32> to vector<16xf32>
    %530 = vector.shape_cast %529 : vector<16xf32> to vector<16x1xf32>
    %cst_187 = arith.constant 3.200000e+01 : f32
    %531 = vector.broadcast %cst_187 : f32 to vector<16x1xf32>
    %532 = arith.divf %530, %531 : vector<16x1xf32>
    %533 = arith.mulf %527, %527 : vector<16x32xf32>
    %cst_188 = arith.constant dense<0.000000e+00> : vector<16xf32>
    %534 = vector.multi_reduction <add>, %533, %cst_188 [1] : vector<16x32xf32> to vector<16xf32>
    %535 = vector.shape_cast %534 : vector<16xf32> to vector<16x1xf32>
    %cst_189 = arith.constant 3.200000e+01 : f32
    %536 = vector.broadcast %cst_189 : f32 to vector<16x1xf32>
    %537 = arith.divf %535, %536 : vector<16x1xf32>
    %538 = arith.mulf %532, %532 : vector<16x1xf32>
    %539 = arith.subf %537, %538 : vector<16x1xf32>
    %cst_190 = arith.constant 9.99999974E-6 : f32
    %540 = vector.broadcast %cst_190 : f32 to vector<16x1xf32>
    %541 = arith.addf %539, %540 : vector<16x1xf32>
    %542 = math.rsqrt %541 : vector<16x1xf32>
    %543 = vector.broadcast %532 : vector<16x1xf32> to vector<16x32xf32>
    %544 = arith.subf %527, %543 : vector<16x32xf32>
    %545 = vector.broadcast %542 : vector<16x1xf32> to vector<16x32xf32>
    %546 = arith.mulf %544, %545 : vector<16x32xf32>
    %547 = vector.extract_strided_slice %528 {offsets = [0, 0], sizes = [1, 32], strides = [1, 1]} : vector<2x32xf32> to vector<1x32xf32>
    %548 = vector.broadcast %547 : vector<1x32xf32> to vector<16x32xf32>
    %549 = arith.mulf %546, %548 : vector<16x32xf32>
    %550 = vector.extract_strided_slice %528 {offsets = [1, 0], sizes = [1, 32], strides = [1, 1]} : vector<2x32xf32> to vector<1x32xf32>
    %551 = vector.broadcast %550 : vector<1x32xf32> to vector<16x32xf32>
    %552 = arith.addf %549, %551 : vector<16x32xf32>
    %553 = arith.truncf %552 : vector<16x32xf32> to vector<16x32xbf16>
    %c480 = arith.constant 480 : index
    %c0_191 = arith.constant 0 : index
    %554 = vector.load %arg3[%c480, %c0_191] : memref<864x128xbf16, #tpu.memory_space<vmem>>, vector<32x64xbf16>
    %cst_192 = arith.constant dense<0.000000e+00> : vector<16x64xf32>
    %555 = tpu.matmul %553, %554, %cst_192 {dimension_numbers = #tpu.dot_dimension_numbers<[1], [0], [0], [1], [0, 0, 1, 1], [], []>} : vector<16x32xbf16>, vector<32x64xbf16>, vector<16x64xf32> -> vector<16x64xf32>
    %c400 = arith.constant 400 : index
    %c0_193 = arith.constant 0 : index
    %556 = vector.load %arg4[%c400, %c0_193] : memref<520x128xf32, #tpu.memory_space<vmem>>, vector<1x64xf32>
    %557 = vector.broadcast %556 : vector<1x64xf32> to vector<16x64xf32>
    %558 = arith.addf %555, %557 : vector<16x64xf32>
    %cst_194 = arith.constant 0.000000e+00 : f32
    %559 = vector.broadcast %cst_194 : f32 to vector<16x64xf32>
    %560 = arith.maximumf %558, %559 : vector<16x64xf32>
    %561 = arith.truncf %560 : vector<16x64xf32> to vector<16x64xbf16>
    %c512 = arith.constant 512 : index
    %c0_195 = arith.constant 0 : index
    %562 = vector.load %arg3[%c512, %c0_195] : memref<864x128xbf16, #tpu.memory_space<vmem>>, vector<64x32xbf16>
    %cst_196 = arith.constant dense<0.000000e+00> : vector<16x32xf32>
    %563 = tpu.matmul %561, %562, %cst_196 {dimension_numbers = #tpu.dot_dimension_numbers<[1], [0], [0], [1], [0, 0, 1, 1], [], []>} : vector<16x64xbf16>, vector<64x32xbf16>, vector<16x32xf32> -> vector<16x32xf32>
    %564 = arith.addf %552, %563 : vector<16x32xf32>
    %c408 = arith.constant 408 : index
    %c0_197 = arith.constant 0 : index
    %565 = vector.load %arg4[%c408, %c0_197] : memref<520x128xf32, #tpu.memory_space<vmem>>, vector<1x32xf32>
    %566 = vector.broadcast %565 : vector<1x32xf32> to vector<16x32xf32>
    %567 = arith.addf %564, %566 : vector<16x32xf32>
    %c432 = arith.constant 432 : index
    %c0_198 = arith.constant 0 : index
    %568 = vector.load %arg4[%c432, %c0_198] : memref<520x128xf32, #tpu.memory_space<vmem>>, vector<2x32xf32>
    %cst_199 = arith.constant dense<0.000000e+00> : vector<16xf32>
    %569 = vector.multi_reduction <add>, %567, %cst_199 [1] : vector<16x32xf32> to vector<16xf32>
    %570 = vector.shape_cast %569 : vector<16xf32> to vector<16x1xf32>
    %cst_200 = arith.constant 3.200000e+01 : f32
    %571 = vector.broadcast %cst_200 : f32 to vector<16x1xf32>
    %572 = arith.divf %570, %571 : vector<16x1xf32>
    %573 = arith.mulf %567, %567 : vector<16x32xf32>
    %cst_201 = arith.constant dense<0.000000e+00> : vector<16xf32>
    %574 = vector.multi_reduction <add>, %573, %cst_201 [1] : vector<16x32xf32> to vector<16xf32>
    %575 = vector.shape_cast %574 : vector<16xf32> to vector<16x1xf32>
    %cst_202 = arith.constant 3.200000e+01 : f32
    %576 = vector.broadcast %cst_202 : f32 to vector<16x1xf32>
    %577 = arith.divf %575, %576 : vector<16x1xf32>
    %578 = arith.mulf %572, %572 : vector<16x1xf32>
    %579 = arith.subf %577, %578 : vector<16x1xf32>
    %cst_203 = arith.constant 9.99999974E-6 : f32
    %580 = vector.broadcast %cst_203 : f32 to vector<16x1xf32>
    %581 = arith.addf %579, %580 : vector<16x1xf32>
    %582 = math.rsqrt %581 : vector<16x1xf32>
    %583 = vector.broadcast %572 : vector<16x1xf32> to vector<16x32xf32>
    %584 = arith.subf %567, %583 : vector<16x32xf32>
    %585 = vector.broadcast %582 : vector<16x1xf32> to vector<16x32xf32>
    %586 = arith.mulf %584, %585 : vector<16x32xf32>
    %587 = vector.extract_strided_slice %568 {offsets = [0, 0], sizes = [1, 32], strides = [1, 1]} : vector<2x32xf32> to vector<1x32xf32>
    %588 = vector.broadcast %587 : vector<1x32xf32> to vector<16x32xf32>
    %589 = arith.mulf %586, %588 : vector<16x32xf32>
    %590 = vector.extract_strided_slice %568 {offsets = [1, 0], sizes = [1, 32], strides = [1, 1]} : vector<2x32xf32> to vector<1x32xf32>
    %591 = vector.broadcast %590 : vector<1x32xf32> to vector<16x32xf32>
    %592 = arith.addf %589, %591 : vector<16x32xf32>
    %593 = arith.truncf %592 : vector<16x32xf32> to vector<16x32xbf16>
    %c576 = arith.constant 576 : index
    %c0_204 = arith.constant 0 : index
    %594 = vector.load %arg3[%c576, %c0_204] : memref<864x128xbf16, #tpu.memory_space<vmem>>, vector<32x96xbf16>
    %cst_205 = arith.constant dense<0.000000e+00> : vector<16x96xf32>
    %595 = tpu.matmul %593, %594, %cst_205 {dimension_numbers = #tpu.dot_dimension_numbers<[1], [0], [0], [1], [0, 0, 1, 1], [], []>} : vector<16x32xbf16>, vector<32x96xbf16>, vector<16x96xf32> -> vector<16x96xf32>
    %c440 = arith.constant 440 : index
    %c0_206 = arith.constant 0 : index
    %596 = vector.load %arg4[%c440, %c0_206] : memref<520x128xf32, #tpu.memory_space<vmem>>, vector<1x96xf32>
    %597 = vector.broadcast %596 : vector<1x96xf32> to vector<16x96xf32>
    %598 = arith.addf %595, %597 : vector<16x96xf32>
    %599 = vector.extract_strided_slice %598 {offsets = [0, 0], sizes = [16, 32], strides = [1, 1]} : vector<16x96xf32> to vector<16x32xf32>
    %600 = vector.extract_strided_slice %598 {offsets = [0, 32], sizes = [16, 32], strides = [1, 1]} : vector<16x96xf32> to vector<16x32xf32>
    %601 = vector.extract_strided_slice %598 {offsets = [0, 64], sizes = [16, 32], strides = [1, 1]} : vector<16x96xf32> to vector<16x32xf32>
    %602 = vector.extract_strided_slice %599 {offsets = [0, 0], sizes = [16, 8], strides = [1, 1]} : vector<16x32xf32> to vector<16x8xf32>
    %603 = vector.extract_strided_slice %599 {offsets = [0, 8], sizes = [16, 8], strides = [1, 1]} : vector<16x32xf32> to vector<16x8xf32>
    %604 = vector.extract_strided_slice %599 {offsets = [0, 16], sizes = [16, 8], strides = [1, 1]} : vector<16x32xf32> to vector<16x8xf32>
    %605 = vector.extract_strided_slice %599 {offsets = [0, 24], sizes = [16, 8], strides = [1, 1]} : vector<16x32xf32> to vector<16x8xf32>
    %606 = tpu.concatenate %602, %603, %604, %605 in 0 : vector<16x8xf32>, vector<16x8xf32>, vector<16x8xf32>, vector<16x8xf32> -> vector<64x8xf32>
    %607 = vector.extract_strided_slice %600 {offsets = [0, 0], sizes = [16, 8], strides = [1, 1]} : vector<16x32xf32> to vector<16x8xf32>
    %608 = vector.extract_strided_slice %600 {offsets = [0, 8], sizes = [16, 8], strides = [1, 1]} : vector<16x32xf32> to vector<16x8xf32>
    %609 = vector.extract_strided_slice %600 {offsets = [0, 16], sizes = [16, 8], strides = [1, 1]} : vector<16x32xf32> to vector<16x8xf32>
    %610 = vector.extract_strided_slice %600 {offsets = [0, 24], sizes = [16, 8], strides = [1, 1]} : vector<16x32xf32> to vector<16x8xf32>
    %611 = tpu.concatenate %607, %608, %609, %610 in 0 : vector<16x8xf32>, vector<16x8xf32>, vector<16x8xf32>, vector<16x8xf32> -> vector<64x8xf32>
    %612 = vector.extract_strided_slice %601 {offsets = [0, 0], sizes = [16, 8], strides = [1, 1]} : vector<16x32xf32> to vector<16x8xf32>
    %613 = vector.extract_strided_slice %601 {offsets = [0, 8], sizes = [16, 8], strides = [1, 1]} : vector<16x32xf32> to vector<16x8xf32>
    %614 = vector.extract_strided_slice %601 {offsets = [0, 16], sizes = [16, 8], strides = [1, 1]} : vector<16x32xf32> to vector<16x8xf32>
    %615 = vector.extract_strided_slice %601 {offsets = [0, 24], sizes = [16, 8], strides = [1, 1]} : vector<16x32xf32> to vector<16x8xf32>
    %616 = tpu.concatenate %612, %613, %614, %615 in 0 : vector<16x8xf32>, vector<16x8xf32>, vector<16x8xf32>, vector<16x8xf32> -> vector<64x8xf32>
    %617 = arith.truncf %606 : vector<64x8xf32> to vector<64x8xbf16>
    %618 = tpu.transpose %611, [1, 0] : vector<64x8xf32> -> vector<8x64xf32>
    %619 = arith.truncf %618 : vector<8x64xf32> to vector<8x64xbf16>
    %cst_207 = arith.constant dense<0.000000e+00> : vector<64x64xf32>
    %620 = tpu.matmul %617, %619, %cst_207 {dimension_numbers = #tpu.dot_dimension_numbers<[1], [0], [0], [1], [0, 0, 1, 1], [], []>} : vector<64x8xbf16>, vector<8x64xbf16>, vector<64x64xf32> -> vector<64x64xf32>
    %cst_208 = arith.constant 0.353553385 : f32
    %621 = vector.broadcast %cst_208 : f32 to vector<64x64xf32>
    %622 = arith.mulf %620, %621 : vector<64x64xf32>
    %c128_209 = arith.constant 128 : index
    %c0_210 = arith.constant 0 : index
    %623 = vector.load %arg4[%c128_209, %c0_210] : memref<520x128xf32, #tpu.memory_space<vmem>>, vector<64x64xf32>
    %624 = arith.addf %622, %623 : vector<64x64xf32>
    %cst_211 = arith.constant dense<0xFF800000> : vector<64xf32>
    %625 = vector.multi_reduction <maximumf>, %624, %cst_211 [1] : vector<64x64xf32> to vector<64xf32>
    %626 = vector.shape_cast %625 : vector<64xf32> to vector<64x1xf32>
    %627 = vector.broadcast %626 : vector<64x1xf32> to vector<64x64xf32>
    %628 = arith.subf %624, %627 : vector<64x64xf32>
    %629 = math.exp %628 : vector<64x64xf32>
    %cst_212 = arith.constant dense<0.000000e+00> : vector<64xf32>
    %630 = vector.multi_reduction <add>, %629, %cst_212 [1] : vector<64x64xf32> to vector<64xf32>
    %631 = vector.shape_cast %630 : vector<64xf32> to vector<64x1xf32>
    %632 = tpu.reciprocal %631 {approx = true} : vector<64x1xf32> -> vector<64x1xf32>
    %633 = vector.broadcast %632 : vector<64x1xf32> to vector<64x64xf32>
    %634 = arith.mulf %629, %633 : vector<64x64xf32>
    %635 = arith.truncf %634 : vector<64x64xf32> to vector<64x64xbf16>
    %636 = arith.truncf %616 : vector<64x8xf32> to vector<64x8xbf16>
    %cst_213 = arith.constant dense<0.000000e+00> : vector<64x8xf32>
    %637 = tpu.matmul %635, %636, %cst_213 {dimension_numbers = #tpu.dot_dimension_numbers<[1], [0], [0], [1], [0, 0, 1, 1], [], []>} : vector<64x64xbf16>, vector<64x8xbf16>, vector<64x8xf32> -> vector<64x8xf32>
    %638 = vector.extract_strided_slice %637 {offsets = [0, 0], sizes = [16, 8], strides = [1, 1]} : vector<64x8xf32> to vector<16x8xf32>
    %639 = vector.extract_strided_slice %637 {offsets = [16, 0], sizes = [16, 8], strides = [1, 1]} : vector<64x8xf32> to vector<16x8xf32>
    %640 = vector.extract_strided_slice %637 {offsets = [32, 0], sizes = [16, 8], strides = [1, 1]} : vector<64x8xf32> to vector<16x8xf32>
    %641 = vector.extract_strided_slice %637 {offsets = [48, 0], sizes = [16, 8], strides = [1, 1]} : vector<64x8xf32> to vector<16x8xf32>
    %642 = tpu.concatenate %638, %639, %640, %641 in 1 : vector<16x8xf32>, vector<16x8xf32>, vector<16x8xf32>, vector<16x8xf32> -> vector<16x32xf32>
    %643 = arith.truncf %642 : vector<16x32xf32> to vector<16x32xbf16>
    %c608 = arith.constant 608 : index
    %c0_214 = arith.constant 0 : index
    %644 = vector.load %arg3[%c608, %c0_214] : memref<864x128xbf16, #tpu.memory_space<vmem>>, vector<32x32xbf16>
    %cst_215 = arith.constant dense<0.000000e+00> : vector<16x32xf32>
    %645 = tpu.matmul %643, %644, %cst_215 {dimension_numbers = #tpu.dot_dimension_numbers<[1], [0], [0], [1], [0, 0, 1, 1], [], []>} : vector<16x32xbf16>, vector<32x32xbf16>, vector<16x32xf32> -> vector<16x32xf32>
    %c448_216 = arith.constant 448 : index
    %c0_217 = arith.constant 0 : index
    %646 = vector.load %arg4[%c448_216, %c0_217] : memref<520x128xf32, #tpu.memory_space<vmem>>, vector<1x32xf32>
    %647 = vector.broadcast %646 : vector<1x32xf32> to vector<16x32xf32>
    %648 = arith.addf %645, %647 : vector<16x32xf32>
    %649 = arith.addf %592, %648 : vector<16x32xf32>
    %c496 = arith.constant 496 : index
    %c0_218 = arith.constant 0 : index
    %650 = vector.load %arg4[%c496, %c0_218] : memref<520x128xf32, #tpu.memory_space<vmem>>, vector<2x32xf32>
    %cst_219 = arith.constant dense<0.000000e+00> : vector<16xf32>
    %651 = vector.multi_reduction <add>, %649, %cst_219 [1] : vector<16x32xf32> to vector<16xf32>
    %652 = vector.shape_cast %651 : vector<16xf32> to vector<16x1xf32>
    %cst_220 = arith.constant 3.200000e+01 : f32
    %653 = vector.broadcast %cst_220 : f32 to vector<16x1xf32>
    %654 = arith.divf %652, %653 : vector<16x1xf32>
    %655 = arith.mulf %649, %649 : vector<16x32xf32>
    %cst_221 = arith.constant dense<0.000000e+00> : vector<16xf32>
    %656 = vector.multi_reduction <add>, %655, %cst_221 [1] : vector<16x32xf32> to vector<16xf32>
    %657 = vector.shape_cast %656 : vector<16xf32> to vector<16x1xf32>
    %cst_222 = arith.constant 3.200000e+01 : f32
    %658 = vector.broadcast %cst_222 : f32 to vector<16x1xf32>
    %659 = arith.divf %657, %658 : vector<16x1xf32>
    %660 = arith.mulf %654, %654 : vector<16x1xf32>
    %661 = arith.subf %659, %660 : vector<16x1xf32>
    %cst_223 = arith.constant 9.99999974E-6 : f32
    %662 = vector.broadcast %cst_223 : f32 to vector<16x1xf32>
    %663 = arith.addf %661, %662 : vector<16x1xf32>
    %664 = math.rsqrt %663 : vector<16x1xf32>
    %665 = vector.broadcast %654 : vector<16x1xf32> to vector<16x32xf32>
    %666 = arith.subf %649, %665 : vector<16x32xf32>
    %667 = vector.broadcast %664 : vector<16x1xf32> to vector<16x32xf32>
    %668 = arith.mulf %666, %667 : vector<16x32xf32>
    %669 = vector.extract_strided_slice %650 {offsets = [0, 0], sizes = [1, 32], strides = [1, 1]} : vector<2x32xf32> to vector<1x32xf32>
    %670 = vector.broadcast %669 : vector<1x32xf32> to vector<16x32xf32>
    %671 = arith.mulf %668, %670 : vector<16x32xf32>
    %672 = vector.extract_strided_slice %650 {offsets = [1, 0], sizes = [1, 32], strides = [1, 1]} : vector<2x32xf32> to vector<1x32xf32>
    %673 = vector.broadcast %672 : vector<1x32xf32> to vector<16x32xf32>
    %674 = arith.addf %671, %673 : vector<16x32xf32>
    %675 = arith.truncf %674 : vector<16x32xf32> to vector<16x32xbf16>
    %c640 = arith.constant 640 : index
    %c0_224 = arith.constant 0 : index
    %676 = vector.load %arg3[%c640, %c0_224] : memref<864x128xbf16, #tpu.memory_space<vmem>>, vector<32x32xbf16>
    %cst_225 = arith.constant dense<0.000000e+00> : vector<16x32xf32>
    %677 = tpu.matmul %675, %676, %cst_225 {dimension_numbers = #tpu.dot_dimension_numbers<[1], [0], [0], [1], [0, 0, 1, 1], [], []>} : vector<16x32xbf16>, vector<32x32xbf16>, vector<16x32xf32> -> vector<16x32xf32>
    %c456 = arith.constant 456 : index
    %c0_226 = arith.constant 0 : index
    %678 = vector.load %arg4[%c456, %c0_226] : memref<520x128xf32, #tpu.memory_space<vmem>>, vector<1x32xf32>
    %679 = vector.broadcast %678 : vector<1x32xf32> to vector<16x32xf32>
    %680 = arith.addf %677, %679 : vector<16x32xf32>
    %681 = arith.truncf %313 : vector<16x32xf32> to vector<16x32xbf16>
    %c672 = arith.constant 672 : index
    %c0_227 = arith.constant 0 : index
    %682 = vector.load %arg3[%c672, %c0_227] : memref<864x128xbf16, #tpu.memory_space<vmem>>, vector<32x64xbf16>
    %cst_228 = arith.constant dense<0.000000e+00> : vector<16x64xf32>
    %683 = tpu.matmul %681, %682, %cst_228 {dimension_numbers = #tpu.dot_dimension_numbers<[1], [0], [0], [1], [0, 0, 1, 1], [], []>} : vector<16x32xbf16>, vector<32x64xbf16>, vector<16x64xf32> -> vector<16x64xf32>
    %c464 = arith.constant 464 : index
    %c0_229 = arith.constant 0 : index
    %684 = vector.load %arg4[%c464, %c0_229] : memref<520x128xf32, #tpu.memory_space<vmem>>, vector<1x64xf32>
    %685 = vector.broadcast %684 : vector<1x64xf32> to vector<16x64xf32>
    %686 = arith.addf %683, %685 : vector<16x64xf32>
    %687 = vector.extract_strided_slice %686 {offsets = [0, 0], sizes = [16, 32], strides = [1, 1]} : vector<16x64xf32> to vector<16x32xf32>
    %688 = vector.extract_strided_slice %686 {offsets = [0, 32], sizes = [16, 32], strides = [1, 1]} : vector<16x64xf32> to vector<16x32xf32>
    %689 = vector.extract_strided_slice %680 {offsets = [0, 0], sizes = [16, 8], strides = [1, 1]} : vector<16x32xf32> to vector<16x8xf32>
    %690 = vector.extract_strided_slice %680 {offsets = [0, 8], sizes = [16, 8], strides = [1, 1]} : vector<16x32xf32> to vector<16x8xf32>
    %691 = vector.extract_strided_slice %680 {offsets = [0, 16], sizes = [16, 8], strides = [1, 1]} : vector<16x32xf32> to vector<16x8xf32>
    %692 = vector.extract_strided_slice %680 {offsets = [0, 24], sizes = [16, 8], strides = [1, 1]} : vector<16x32xf32> to vector<16x8xf32>
    %693 = tpu.concatenate %689, %690, %691, %692 in 0 : vector<16x8xf32>, vector<16x8xf32>, vector<16x8xf32>, vector<16x8xf32> -> vector<64x8xf32>
    %694 = vector.extract_strided_slice %687 {offsets = [0, 0], sizes = [16, 8], strides = [1, 1]} : vector<16x32xf32> to vector<16x8xf32>
    %695 = vector.extract_strided_slice %687 {offsets = [0, 8], sizes = [16, 8], strides = [1, 1]} : vector<16x32xf32> to vector<16x8xf32>
    %696 = vector.extract_strided_slice %687 {offsets = [0, 16], sizes = [16, 8], strides = [1, 1]} : vector<16x32xf32> to vector<16x8xf32>
    %697 = vector.extract_strided_slice %687 {offsets = [0, 24], sizes = [16, 8], strides = [1, 1]} : vector<16x32xf32> to vector<16x8xf32>
    %698 = tpu.concatenate %694, %695, %696, %697 in 0 : vector<16x8xf32>, vector<16x8xf32>, vector<16x8xf32>, vector<16x8xf32> -> vector<64x8xf32>
    %699 = vector.extract_strided_slice %688 {offsets = [0, 0], sizes = [16, 8], strides = [1, 1]} : vector<16x32xf32> to vector<16x8xf32>
    %700 = vector.extract_strided_slice %688 {offsets = [0, 8], sizes = [16, 8], strides = [1, 1]} : vector<16x32xf32> to vector<16x8xf32>
    %701 = vector.extract_strided_slice %688 {offsets = [0, 16], sizes = [16, 8], strides = [1, 1]} : vector<16x32xf32> to vector<16x8xf32>
    %702 = vector.extract_strided_slice %688 {offsets = [0, 24], sizes = [16, 8], strides = [1, 1]} : vector<16x32xf32> to vector<16x8xf32>
    %703 = tpu.concatenate %699, %700, %701, %702 in 0 : vector<16x8xf32>, vector<16x8xf32>, vector<16x8xf32>, vector<16x8xf32> -> vector<64x8xf32>
    %704 = arith.truncf %693 : vector<64x8xf32> to vector<64x8xbf16>
    %705 = tpu.transpose %698, [1, 0] : vector<64x8xf32> -> vector<8x64xf32>
    %706 = arith.truncf %705 : vector<8x64xf32> to vector<8x64xbf16>
    %cst_230 = arith.constant dense<0.000000e+00> : vector<64x64xf32>
    %707 = tpu.matmul %704, %706, %cst_230 {dimension_numbers = #tpu.dot_dimension_numbers<[1], [0], [0], [1], [0, 0, 1, 1], [], []>} : vector<64x8xbf16>, vector<8x64xbf16>, vector<64x64xf32> -> vector<64x64xf32>
    %cst_231 = arith.constant 0.353553385 : f32
    %708 = vector.broadcast %cst_231 : f32 to vector<64x64xf32>
    %709 = arith.mulf %707, %708 : vector<64x64xf32>
    %c192_232 = arith.constant 192 : index
    %c0_233 = arith.constant 0 : index
    %710 = vector.load %arg4[%c192_232, %c0_233] : memref<520x128xf32, #tpu.memory_space<vmem>>, vector<64x64xf32>
    %711 = arith.addf %709, %710 : vector<64x64xf32>
    %cst_234 = arith.constant dense<0xFF800000> : vector<64xf32>
    %712 = vector.multi_reduction <maximumf>, %711, %cst_234 [1] : vector<64x64xf32> to vector<64xf32>
    %713 = vector.shape_cast %712 : vector<64xf32> to vector<64x1xf32>
    %714 = vector.broadcast %713 : vector<64x1xf32> to vector<64x64xf32>
    %715 = arith.subf %711, %714 : vector<64x64xf32>
    %716 = math.exp %715 : vector<64x64xf32>
    %cst_235 = arith.constant dense<0.000000e+00> : vector<64xf32>
    %717 = vector.multi_reduction <add>, %716, %cst_235 [1] : vector<64x64xf32> to vector<64xf32>
    %718 = vector.shape_cast %717 : vector<64xf32> to vector<64x1xf32>
    %719 = tpu.reciprocal %718 {approx = true} : vector<64x1xf32> -> vector<64x1xf32>
    %720 = vector.broadcast %719 : vector<64x1xf32> to vector<64x64xf32>
    %721 = arith.mulf %716, %720 : vector<64x64xf32>
    %722 = arith.truncf %721 : vector<64x64xf32> to vector<64x64xbf16>
    %723 = arith.truncf %703 : vector<64x8xf32> to vector<64x8xbf16>
    %cst_236 = arith.constant dense<0.000000e+00> : vector<64x8xf32>
    %724 = tpu.matmul %722, %723, %cst_236 {dimension_numbers = #tpu.dot_dimension_numbers<[1], [0], [0], [1], [0, 0, 1, 1], [], []>} : vector<64x64xbf16>, vector<64x8xbf16>, vector<64x8xf32> -> vector<64x8xf32>
    %725 = vector.extract_strided_slice %724 {offsets = [0, 0], sizes = [16, 8], strides = [1, 1]} : vector<64x8xf32> to vector<16x8xf32>
    %726 = vector.extract_strided_slice %724 {offsets = [16, 0], sizes = [16, 8], strides = [1, 1]} : vector<64x8xf32> to vector<16x8xf32>
    %727 = vector.extract_strided_slice %724 {offsets = [32, 0], sizes = [16, 8], strides = [1, 1]} : vector<64x8xf32> to vector<16x8xf32>
    %728 = vector.extract_strided_slice %724 {offsets = [48, 0], sizes = [16, 8], strides = [1, 1]} : vector<64x8xf32> to vector<16x8xf32>
    %729 = tpu.concatenate %725, %726, %727, %728 in 1 : vector<16x8xf32>, vector<16x8xf32>, vector<16x8xf32>, vector<16x8xf32> -> vector<16x32xf32>
    %730 = arith.truncf %729 : vector<16x32xf32> to vector<16x32xbf16>
    %c704 = arith.constant 704 : index
    %c0_237 = arith.constant 0 : index
    %731 = vector.load %arg3[%c704, %c0_237] : memref<864x128xbf16, #tpu.memory_space<vmem>>, vector<32x32xbf16>
    %cst_238 = arith.constant dense<0.000000e+00> : vector<16x32xf32>
    %732 = tpu.matmul %730, %731, %cst_238 {dimension_numbers = #tpu.dot_dimension_numbers<[1], [0], [0], [1], [0, 0, 1, 1], [], []>} : vector<16x32xbf16>, vector<32x32xbf16>, vector<16x32xf32> -> vector<16x32xf32>
    %c472 = arith.constant 472 : index
    %c0_239 = arith.constant 0 : index
    %733 = vector.load %arg4[%c472, %c0_239] : memref<520x128xf32, #tpu.memory_space<vmem>>, vector<1x32xf32>
    %734 = vector.broadcast %733 : vector<1x32xf32> to vector<16x32xf32>
    %735 = arith.addf %732, %734 : vector<16x32xf32>
    %736 = arith.addf %674, %735 : vector<16x32xf32>
    %c504 = arith.constant 504 : index
    %c0_240 = arith.constant 0 : index
    %737 = vector.load %arg4[%c504, %c0_240] : memref<520x128xf32, #tpu.memory_space<vmem>>, vector<2x32xf32>
    %cst_241 = arith.constant dense<0.000000e+00> : vector<16xf32>
    %738 = vector.multi_reduction <add>, %736, %cst_241 [1] : vector<16x32xf32> to vector<16xf32>
    %739 = vector.shape_cast %738 : vector<16xf32> to vector<16x1xf32>
    %cst_242 = arith.constant 3.200000e+01 : f32
    %740 = vector.broadcast %cst_242 : f32 to vector<16x1xf32>
    %741 = arith.divf %739, %740 : vector<16x1xf32>
    %742 = arith.mulf %736, %736 : vector<16x32xf32>
    %cst_243 = arith.constant dense<0.000000e+00> : vector<16xf32>
    %743 = vector.multi_reduction <add>, %742, %cst_243 [1] : vector<16x32xf32> to vector<16xf32>
    %744 = vector.shape_cast %743 : vector<16xf32> to vector<16x1xf32>
    %cst_244 = arith.constant 3.200000e+01 : f32
    %745 = vector.broadcast %cst_244 : f32 to vector<16x1xf32>
    %746 = arith.divf %744, %745 : vector<16x1xf32>
    %747 = arith.mulf %741, %741 : vector<16x1xf32>
    %748 = arith.subf %746, %747 : vector<16x1xf32>
    %cst_245 = arith.constant 9.99999974E-6 : f32
    %749 = vector.broadcast %cst_245 : f32 to vector<16x1xf32>
    %750 = arith.addf %748, %749 : vector<16x1xf32>
    %751 = math.rsqrt %750 : vector<16x1xf32>
    %752 = vector.broadcast %741 : vector<16x1xf32> to vector<16x32xf32>
    %753 = arith.subf %736, %752 : vector<16x32xf32>
    %754 = vector.broadcast %751 : vector<16x1xf32> to vector<16x32xf32>
    %755 = arith.mulf %753, %754 : vector<16x32xf32>
    %756 = vector.extract_strided_slice %737 {offsets = [0, 0], sizes = [1, 32], strides = [1, 1]} : vector<2x32xf32> to vector<1x32xf32>
    %757 = vector.broadcast %756 : vector<1x32xf32> to vector<16x32xf32>
    %758 = arith.mulf %755, %757 : vector<16x32xf32>
    %759 = vector.extract_strided_slice %737 {offsets = [1, 0], sizes = [1, 32], strides = [1, 1]} : vector<2x32xf32> to vector<1x32xf32>
    %760 = vector.broadcast %759 : vector<1x32xf32> to vector<16x32xf32>
    %761 = arith.addf %758, %760 : vector<16x32xf32>
    %762 = arith.truncf %761 : vector<16x32xf32> to vector<16x32xbf16>
    %c736 = arith.constant 736 : index
    %c0_246 = arith.constant 0 : index
    %763 = vector.load %arg3[%c736, %c0_246] : memref<864x128xbf16, #tpu.memory_space<vmem>>, vector<32x64xbf16>
    %cst_247 = arith.constant dense<0.000000e+00> : vector<16x64xf32>
    %764 = tpu.matmul %762, %763, %cst_247 {dimension_numbers = #tpu.dot_dimension_numbers<[1], [0], [0], [1], [0, 0, 1, 1], [], []>} : vector<16x32xbf16>, vector<32x64xbf16>, vector<16x64xf32> -> vector<16x64xf32>
    %c480_248 = arith.constant 480 : index
    %c0_249 = arith.constant 0 : index
    %765 = vector.load %arg4[%c480_248, %c0_249] : memref<520x128xf32, #tpu.memory_space<vmem>>, vector<1x64xf32>
    %766 = vector.broadcast %765 : vector<1x64xf32> to vector<16x64xf32>
    %767 = arith.addf %764, %766 : vector<16x64xf32>
    %cst_250 = arith.constant 0.000000e+00 : f32
    %768 = vector.broadcast %cst_250 : f32 to vector<16x64xf32>
    %769 = arith.maximumf %767, %768 : vector<16x64xf32>
    %770 = arith.truncf %769 : vector<16x64xf32> to vector<16x64xbf16>
    %c768 = arith.constant 768 : index
    %c0_251 = arith.constant 0 : index
    %771 = vector.load %arg3[%c768, %c0_251] : memref<864x128xbf16, #tpu.memory_space<vmem>>, vector<64x32xbf16>
    %cst_252 = arith.constant dense<0.000000e+00> : vector<16x32xf32>
    %772 = tpu.matmul %770, %771, %cst_252 {dimension_numbers = #tpu.dot_dimension_numbers<[1], [0], [0], [1], [0, 0, 1, 1], [], []>} : vector<16x64xbf16>, vector<64x32xbf16>, vector<16x32xf32> -> vector<16x32xf32>
    %773 = arith.addf %761, %772 : vector<16x32xf32>
    %c488 = arith.constant 488 : index
    %c0_253 = arith.constant 0 : index
    %774 = vector.load %arg4[%c488, %c0_253] : memref<520x128xf32, #tpu.memory_space<vmem>>, vector<1x32xf32>
    %775 = vector.broadcast %774 : vector<1x32xf32> to vector<16x32xf32>
    %776 = arith.addf %773, %775 : vector<16x32xf32>
    %c512_254 = arith.constant 512 : index
    %c0_255 = arith.constant 0 : index
    %777 = vector.load %arg4[%c512_254, %c0_255] : memref<520x128xf32, #tpu.memory_space<vmem>>, vector<2x32xf32>
    %cst_256 = arith.constant dense<0.000000e+00> : vector<16xf32>
    %778 = vector.multi_reduction <add>, %776, %cst_256 [1] : vector<16x32xf32> to vector<16xf32>
    %779 = vector.shape_cast %778 : vector<16xf32> to vector<16x1xf32>
    %cst_257 = arith.constant 3.200000e+01 : f32
    %780 = vector.broadcast %cst_257 : f32 to vector<16x1xf32>
    %781 = arith.divf %779, %780 : vector<16x1xf32>
    %782 = arith.mulf %776, %776 : vector<16x32xf32>
    %cst_258 = arith.constant dense<0.000000e+00> : vector<16xf32>
    %783 = vector.multi_reduction <add>, %782, %cst_258 [1] : vector<16x32xf32> to vector<16xf32>
    %784 = vector.shape_cast %783 : vector<16xf32> to vector<16x1xf32>
    %cst_259 = arith.constant 3.200000e+01 : f32
    %785 = vector.broadcast %cst_259 : f32 to vector<16x1xf32>
    %786 = arith.divf %784, %785 : vector<16x1xf32>
    %787 = arith.mulf %781, %781 : vector<16x1xf32>
    %788 = arith.subf %786, %787 : vector<16x1xf32>
    %cst_260 = arith.constant 9.99999974E-6 : f32
    %789 = vector.broadcast %cst_260 : f32 to vector<16x1xf32>
    %790 = arith.addf %788, %789 : vector<16x1xf32>
    %791 = math.rsqrt %790 : vector<16x1xf32>
    %792 = vector.broadcast %781 : vector<16x1xf32> to vector<16x32xf32>
    %793 = arith.subf %776, %792 : vector<16x32xf32>
    %794 = vector.broadcast %791 : vector<16x1xf32> to vector<16x32xf32>
    %795 = arith.mulf %793, %794 : vector<16x32xf32>
    %796 = vector.extract_strided_slice %777 {offsets = [0, 0], sizes = [1, 32], strides = [1, 1]} : vector<2x32xf32> to vector<1x32xf32>
    %797 = vector.broadcast %796 : vector<1x32xf32> to vector<16x32xf32>
    %798 = arith.mulf %795, %797 : vector<16x32xf32>
    %799 = vector.extract_strided_slice %777 {offsets = [1, 0], sizes = [1, 32], strides = [1, 1]} : vector<2x32xf32> to vector<1x32xf32>
    %800 = vector.broadcast %799 : vector<1x32xf32> to vector<16x32xf32>
    %801 = arith.addf %798, %800 : vector<16x32xf32>
    %802 = arith.truncf %801 : vector<16x32xf32> to vector<16x32xbf16>
    %c832 = arith.constant 832 : index
    %c0_261 = arith.constant 0 : index
    %803 = vector.load %arg3[%c832, %c0_261] : memref<864x128xbf16, #tpu.memory_space<vmem>>, vector<32x16xbf16>
    %cst_262 = arith.constant dense<0.000000e+00> : vector<16x16xf32>
    %804 = tpu.matmul %802, %803, %cst_262 {dimension_numbers = #tpu.dot_dimension_numbers<[1], [0], [0], [1], [0, 0, 1, 1], [], []>} : vector<16x32xbf16>, vector<32x16xbf16>, vector<16x16xf32> -> vector<16x16xf32>
    %c256_263 = arith.constant 256 : index
    %c0_264 = arith.constant 0 : index
    %805 = vector.load %arg4[%c256_263, %c0_264] : memref<520x128xf32, #tpu.memory_space<vmem>>, vector<1x16xf32>
    %806 = vector.broadcast %805 : vector<1x16xf32> to vector<16x16xf32>
    %807 = arith.addf %804, %806 : vector<16x16xf32>
    %cst_265 = arith.constant dense<0xFF800000> : vector<16xf32>
    %808 = vector.multi_reduction <maximumf>, %807, %cst_265 [1] : vector<16x16xf32> to vector<16xf32>
    %809 = vector.shape_cast %808 : vector<16xf32> to vector<16x1xf32>
    %810 = vector.broadcast %809 : vector<16x1xf32> to vector<16x16xf32>
    %811 = arith.subf %807, %810 : vector<16x16xf32>
    %812 = math.exp %811 : vector<16x16xf32>
    %cst_266 = arith.constant dense<0.000000e+00> : vector<16xf32>
    %813 = vector.multi_reduction <add>, %812, %cst_266 [1] : vector<16x16xf32> to vector<16xf32>
    %814 = vector.shape_cast %813 : vector<16xf32> to vector<16x1xf32>
    %815 = math.log %814 : vector<16x1xf32>
    %816 = vector.broadcast %815 : vector<16x1xf32> to vector<16x16xf32>
    %817 = arith.subf %811, %816 : vector<16x16xf32>
    %c0_267 = arith.constant 0 : index
    %c0_268 = arith.constant 0 : index
    %818 = vector.load %arg5[%c0_267, %c0_268] : memref<16x16xf32, #tpu.memory_space<vmem>>, vector<16x16xf32>
    tpu.vector_store %arg5[%c0_267, %c0_268], %817 {strides = array<i32>} : memref<16x16xf32, #tpu.memory_space<vmem>>, vector<16x16xf32>,
    return
  }
  func.func @transform_0(%arg0: i32, %arg1: memref<16xi32, #tpu.memory_space<smem>>, %arg2: memref<16xi32, #tpu.memory_space<smem>>) -> (i32, i32) {
    %c0_i32 = arith.constant 0 : i32
    %c0_i32_0 = arith.constant 0 : i32
    %c0_i32_1 = arith.constant 0 : i32
    return %c0_i32, %c0_i32_0 : i32, i32
  }
  func.func @transform_1(%arg0: i32, %arg1: memref<16xi32, #tpu.memory_space<smem>>, %arg2: memref<16xi32, #tpu.memory_space<smem>>) -> (i32, i32) {
    %c0_i32 = arith.constant 0 : i32
    %c0_i32_0 = arith.constant 0 : i32
    %c0_i32_1 = arith.constant 0 : i32
    return %c0_i32, %c0_i32_0 : i32, i32
  }
  func.func @transform_2(%arg0: i32, %arg1: memref<16xi32, #tpu.memory_space<smem>>, %arg2: memref<16xi32, #tpu.memory_space<smem>>) -> (i32, i32) {
    %c0_i32 = arith.constant 0 : i32
    %c0_i32_0 = arith.constant 0 : i32
    %c0_i32_1 = arith.constant 0 : i32
    return %c0_i32, %c0_i32_0 : i32, i32
  }
}

</mosaic_0001>

<bundles_post_ra>
// kernel: _lambda_.1
= control target key start
LH: loop header
LB: loop body
LE: loop exit
PB: predicated region body
PF: predicated region fallthrough
CT: control target
= control target key end

     0   :  { %s4677_s21 = smov [#allocation3]   ;;  %s4678_s22 = smov [#allocation4]   ;;  %s6023_s0 = inlined_call_operand.vmem [shape: s32[16], index: 0, kind: input, shape index: {}]   ;;  %s6024_s2 = inlined_call_operand.vmem [shape: bf16[864,128], index: 2, kind: input, shape index: {}]   ;;  %s6025_s3 = inlined_call_operand.vmem [shape: f32[520,128], index: 3, kind: input, shape index: {}]   ;;  %s6026_s4 = inlined_call_operand.hbm [shape: f32[16,16], index: 4, kind: output, shape index: {}]   ;;  %s6027_s1 = inlined_call_operand.vmem [shape: s32[16], index: 1, kind: input, shape index: {}]  }
   0x1   :  { %s10_s17 = sshll.u32 %s6023_s0, 4  ;;  %s15_s20 = sshll.u32 %s6027_s1, 4  ;;  %s11_s17 = int_to_ptr.vmem [resolvable:$true] %s10_s17  ;;  %s16_s20 = int_to_ptr.vmem [resolvable:$true] %s15_s20 }
   0x2   :  { %13 = dma.vmem_to_smem %s11_s17, 16, %s4677_s21, [#allocation2] }
   0x3   :  { %18 = dma.vmem_to_smem %s16_s20, 16, %s4678_s22, [#allocation2] }
   0x4   :  { %4673 = dma.done.wait [#allocation2], 32 }
   0x5   :  { %4674 = vsyncadd [#allocation2], 4294967264 }
   0x6   :  { %21 = sfence }
   0x7   :  { %v4127_v0 = vld [vmem:[%s6024_s2 + $0x8] sm:$0xff]  ;;  %s28_s25 = sld [smem:[#allocation3]]  ;;  %v4126_v1 = vld [vmem:[%s6024_s2] sm:$0xff]  ;;  %vm118_vm0 = vcmask 1040384   ;;  %vm120_vm1 = vcmask 1041408   ;;  %vm122_vm2 = vcmask 1042432  }
   0x8   :  { %s3793_s26 = sld [smem:[#allocation3 + $0x1]]  ;;  %174 = vmatpush.bf16.msra.mxu0 %v4127_v0  ;;  %vm124_vm3 = vcmask 1043456   ;;  %vm126_vm4 = vcmask 1044480   ;;  %vm6029_vm5 = vcmask 1045504   ;;  %vm6028_vm6 = vcmask 1046528   ;;  %v141_v43 = vld [vmem:[%s6025_s3 + $0x20] sm:$0xff] }
   0x9   :  { %s3794_s1 = sld [smem:[#allocation3 + $0x2]]  ;;  %v142_v46 = vld [vmem:[%s6025_s3 + $0x28] sm:$0xff] }
   0xa   :  { %s3795_s28 = sld [smem:[#allocation3 + $0x3]] }
   0xb   :  { %s3796_s29 = sld [smem:[#allocation3 + $0x4]] }
   0xc   :  { %s3797_s30 = sld [smem:[#allocation3 + $0x5]]  ;;  %175 = vmatpush.bf16.msra.mxu0 %v4126_v1 }
   0xd   :  { %s29_s7 = scalar_lea.vmem %s6025_s3, %s28_s25  ;;  %s4730_s8 = sld [smem:[#allocation3 + $0x6]] }
   0xe   :  { %v30_v2 = vld [vmem:[%s29_s7] sm:$0x1]  ;;  %s32_s11 = scalar_lea.vmem %s6025_s3, %s3793_s26  ;;  %s4735_s12 = sld [smem:[#allocation3 + $0x7]] }
   0xf   :  { %v33_v3 = vld [vmem:[%s32_s11] sm:$0x1]  ;;  %s35_s15 = scalar_lea.vmem %s6025_s3, %s3794_s1  ;;  %s4740_s16 = sld [smem:[#allocation3 + $0x8]] }
  0x10   :  { %v36_v4 = vld [vmem:[%s35_s15] sm:$0x1]  ;;  %s38_s19 = scalar_lea.vmem %s6025_s3, %s3795_s28  ;;  %s4745_s20 = sld [smem:[#allocation3 + $0x9]]  ;;  %v77_v5 = vrot.slane %v33_v3, 7 }
  0x11   :  { %v39_v6 = vld [vmem:[%s38_s19] sm:$0x1]  ;;  %s41_s23 = scalar_lea.vmem %s6025_s3, %s3796_s29  ;;  %s4750_s24 = sld [smem:[#allocation3 + $0xa]]  ;;  %v80_v7 = vrot.slane %v36_v4, 6 }
  0x12   :  { %v42_v8 = vld [vmem:[%s41_s23] sm:$0x1]  ;;  %s44_s0 = scalar_lea.vmem %s6025_s3, %s3797_s30  ;;  %s4755_s27 = sld [smem:[#allocation3 + $0xb]]  ;;  %v83_v9 = vrot.slane %v39_v6, 5  ;;  %v119_v10 = vsel %vm118_vm0, %v30_v2, %v77_v5 }
  0x13   :  { %v45_v11 = vld [vmem:[%s44_s0] sm:$0x1]  ;;  %s47_s29 = scalar_lea.vmem %s6025_s3, %s4730_s8  ;;  %s4762_s5 = sld [smem:[#allocation3 + $0xc]]  ;;  %v86_v12 = vrot.slane %v42_v8, 4  ;;  %v121_v13 = vsel %vm120_vm1, %v119_v10, %v80_v7 }
  0x14   :  { %v48_v14 = vld [vmem:[%s47_s29] sm:$0x1]  ;;  %s50_s7 = scalar_lea.vmem %s6025_s3, %s4735_s12  ;;  %s4769_s9 = sld [smem:[#allocation3 + $0xd]]  ;;  %v89_v15 = vrot.slane %v45_v11, 3  ;;  %v123_v16 = vsel %vm122_vm2, %v121_v13, %v83_v9 }
  0x15   :  { %v51_v17 = vld [vmem:[%s50_s7] sm:$0x1]  ;;  %s53_s11 = scalar_lea.vmem %s6025_s3, %s4740_s16  ;;  %s3806_s13 = sld [smem:[#allocation3 + $0xe]]  ;;  %v92_v18 = vrot.slane %v48_v14, 2  ;;  %v125_v19 = vsel %vm124_vm3, %v123_v16, %v86_v12 }
  0x16   :  { %v54_v20 = vld [vmem:[%s53_s11] sm:$0x1]  ;;  %s56_s15 = scalar_lea.vmem %s6025_s3, %s4745_s20  ;;  %s3807_s17 = sld [smem:[#allocation3 + $0xf]]  ;;  %v95_v21 = vrot.slane %v51_v17, 1  ;;  %v127_v22 = vsel %vm126_vm4, %v125_v19, %v89_v15 }
  0x17   :  { %v57_v23 = vld [vmem:[%s56_s15] sm:$0x1]  ;;  %s59_s16 = scalar_lea.vmem %s6025_s3, %s4750_s24  ;;  %v129_v24 = vsel %vm6029_vm5, %v127_v22, %v92_v18 }
  0x18   :  { %v60_v25 = vld [vmem:[%s59_s16] sm:$0x1]  ;;  %s62_s23 = scalar_lea.vmem %s6025_s3, %s4755_s27  ;;  %v98_v26 = vrot.slane %v57_v23, 7  ;;  %v131_v27 = vsel %vm6028_vm6, %v129_v24, %v95_v21 }
  0x19   :  { %v63_v28 = vld [vmem:[%s62_s23] sm:$0x1]  ;;  %s65_s26 = scalar_lea.vmem %s6025_s3, %s4762_s5  ;;  %v101_v29 = vrot.slane %v60_v25, 6  ;;  %v139_v30 = vmul.f32 5.656854, %v131_v27 }
  0x1a   :  { %v66_v31 = vld [vmem:[%s65_s26] sm:$0x1]  ;;  %s68_s1 = scalar_lea.vmem %s6025_s3, %s4769_s9  ;;  %v104_v32 = vrot.slane %v63_v28, 5  ;;  %v132_v33 = vsel %vm118_vm0, %v54_v20, %v98_v26 }
  0x1b   :  { %v69_v34 = vld [vmem:[%s68_s1] sm:$0x1]  ;;  %s71_s29 = scalar_lea.vmem %s6025_s3, %s3806_s13  ;;  %v107_v35 = vrot.slane %v66_v31, 4  ;;  %v133_v36 = vsel %vm120_vm1, %v132_v33, %v101_v29  ;;  %v4819_v50 = vadd.f32 %v141_v43, %v139_v30 }
  0x1c   :  { %v72_v37 = vld [vmem:[%s71_s29] sm:$0x1]  ;;  %s74_s6 = scalar_lea.vmem %s6025_s3, %s3807_s17  ;;  %v110_v38 = vrot.slane %v69_v34, 3  ;;  %v134_v39 = vsel %vm122_vm2, %v133_v36, %v104_v32 }
  0x1d   :  { %v75_v40 = vld [vmem:[%s74_s6] sm:$0x1]  ;;  %v113_v41 = vrot.slane %v72_v37, 2  ;;  %v135_v42 = vsel %vm124_vm3, %v134_v39, %v107_v35 }
  0x1e   :  { %v116_v44 = vrot.slane %v75_v40, 1  ;;  %v136_v45 = vsel %vm126_vm4, %v135_v42, %v110_v38 }
  0x1f   :  { %v137_v47 = vsel %vm6029_vm5, %v136_v45, %v113_v41 }
  0x20   :  { %v138_v48 = vsel %vm6028_vm6, %v137_v47, %v116_v44 }
  0x21   :  { %v140_v49 = vmul.f32 5.656854, %v138_v48 }
  0x22   :  { %22 = vsyncpa [#allocation6], 0  ;;  %vm164_vm7 = vcmask 261120   ;;  %v4344_v53 = vld [vmem:[%s6025_s3 + $0x108] ss:$0 sm:$0xff]  ;;  %s4679_s12 = smov 104  }
  0x23   :  { %v4821_v51 = vadd.f32 %v142_v46, %v140_v49  ;;  %s4680_s14 = smov 112   ;;  %s4681_s15 = smov 120   ;;  %vm263_vm8 = vcmask 64512   ;;  %v4856_v17 = vld [vmem:[%s6025_s3 + $0x40] sm:$0xff]  ;;  %vm332_vm9 = vcmask 523264   ;;  %v4863_v22 = vld [vmem:[%s6025_s3 + $0x48] sm:$0xff] }
  0x24   :  { %s4682_s17 = smov 96   ;;  %s6036_s18 = smov 64   ;;  %v4870_v27 = vld [vmem:[%s6025_s3 + $0x50] sm:$0xff]  ;;  %v4877_v32 = vld [vmem:[%s6025_s3 + $0x58] sm:$0xff]  ;;  %v4887_v37 = vld [vmem:[%s6025_s3 + $0x60] sm:$0xff]  ;;  %vm508_vm10 = vcmask 130048  }
  0x25   :  { %v145_v52 = vpack.c.bf16 %v4821_v51, %v4819_v50  ;;  %v4894_v42 = vld [vmem:[%s6025_s3 + $0x68] sm:$0xff]  ;;  %v4901_v47 = vld [vmem:[%s6025_s3 + $0x70] sm:$0xff]  ;;  %s6034_s6 = smov 8   ;;  %s6032_s7 = smov 16   ;;  %vm511_vm11 = vcmask 195584  }
  0x26   :  { %s6030_s9 = smov 24   ;;  %s5135_s11 = sld [smem:[#allocation4 + $0x1]] }
  0x27   :  { %3816 = vmatmul.msk.bf16.vlgmr.msra.gmra.mxu0 %vm164_vm7, %v145_v52  ;;  %s5137_s13 = sld [smem:[#allocation4 + $0x9]] }
  0x28   :  { %s5143_s19 = sld [smem:[#allocation4 + $0x2]] }
  0x29   :  { %s5145_s16 = sld [smem:[#allocation4]] }
  0x2a   :  { %s5153_s23 = sld [smem:[#allocation4 + $0xa]] }
  0x2b   :  { %s5155_s20 = sld [smem:[#allocation4 + $0x8]] }
  0x2c   :  { %s5160_s0 = sld [smem:[#allocation4 + $0x3]]  ;;  %s3763_s29 = scalar_lea.vmem %s6025_s3, %s5135_s11 }
  0x2d   :  { %s5162_s24 = sld [smem:[#allocation4 + $0xb]]  ;;  %s3779_s8 = scalar_lea.vmem %s6025_s3, %s5137_s13 }
  0x2e   :  { %s5168_s1 = sld [smem:[#allocation4 + $0x4]]  ;;  %s3765_s25 = scalar_lea.vmem %s6025_s3, %s5143_s19 }
  0x2f   :  { %s5181_s10 = sld [smem:[#allocation4 + $0xc]]  ;;  %s3761_s28 = scalar_lea.vmem %s6025_s3, %s5145_s16 }
  0x30   :  { %s5188_s26 = sld [smem:[#allocation4 + $0x5]]  ;;  %s3781_s30 = scalar_lea.vmem %s6025_s3, %s5153_s23 }
  0x31   :  { %s5204_s19 = sld [smem:[#allocation4 + $0x6]]  ;;  %s6044_s23 = smov 64  }
  0x32   :  { %s5230_s27 = sld [smem:[#allocation4 + $0xf]] }
  0x33   :  { %s3783_s22 = scalar_lea.vmem %s6025_s3, %s5162_s24 }
  0x36   :  { %s3771_s5 = scalar_lea.vmem %s6025_s3, %s5188_s26  ;;  %s6046_s26 = smov 16  }
  0x38   :  { %s3791_s24 = scalar_lea.vmem %s6025_s3, %s5230_s27 }
  0xa4   :  { %v177_v54 = vpop.f32.mrf.mxu0 }
  0xa5   :  { %v178_v55 = vadd.f32 %v4344_v53, %v177_v54  ;;  %v4908_v54 = vld [vmem:[%s6025_s3 + $0x78] sm:$0xff] }
  0xa7   :  { %196 = vrot.lane.b32.xlu2 %v178_v55, %s4679_s12  ;;  %190 = vrot.lane.b32.xlu1 %v178_v55, %s4680_s14 }
  0xa8   :  { %184 = vrot.lane.b32.xlu0 %v178_v55, %s4681_s15 }
  0xac   :  { %v179_v56 = vpop.f32.mrf.mxu0 }
  0xad   :  { %v180_v57 = vadd.f32 %v4344_v53, %v179_v56 }
  0xaf   :  { %198 = vrot.lane.b32.xlu2 %v180_v57, %s4679_s12  ;;  %192 = vrot.lane.b32.xlu1 %v180_v57, %s4680_s14  ;;  %v202_v58 = vpack.c.bf16 %v180_v57, %v178_v55 }
  0xb0   :  { %186 = vrot.lane.b32.xlu0 %v180_v57, %s4681_s15 }
  0xb7   :  { %208 = vrot.lane.b32.xlu1 %v180_v57, %s4682_s17 }
  0xb8   :  { %206 = vrot.lane.b32.xlu0 %v178_v55, %s4682_s17 }
 0x101   :  { %v197_v59 = vpop.permute.xlu2 %196 }
 0x109   :  { %v199_v62 = vpop.permute.xlu2 %198 }
 0x10a   :  { %v205_v1 = vpack.c.bf16 %v199_v62, %v197_v59 }
 0x119   :  { %v191_v60 = vpop.permute.xlu1 %190 }
 0x11a   :  { %v185_v61 = vpop.permute.xlu0 %184  ;;  %214 = vrot.lane.b32.xlu1 %v191_v60, %s4682_s17 }
 0x11b   :  { %210 = vrot.lane.b32.xlu2 %v185_v61, %s4682_s17 }
 0x121   :  { %v193_v63 = vpop.permute.xlu1 %192 }
 0x122   :  { %v187_v0 = vpop.permute.xlu0 %186  ;;  %220 = vrot.lane.b32.xlu1 %v199_v62, %s4682_s17  ;;  %v4848_v15 = vpack.c.bf16 %v193_v63, %v191_v60 }
 0x123   :  { %216 = vrot.lane.b32.xlu2 %v193_v63, %s4682_s17  ;;  %212 = vrot.lane.b32.xlu0 %v187_v0, %s4682_s17  ;;  %v203_v14 = vpack.c.bf16 %v187_v0, %v185_v61 }
 0x129   :  { %v209_v3 = vpop.permute.xlu1 %208 }
 0x12a   :  { %v207_v2 = vpop.permute.xlu0 %206 }
 0x12b   :  { %218 = vrot.lane.b32.xlu0 %v197_v59, %s4682_s17 }
 0x133   :  { %435 = vrot.lane.b32.xlu0 %v205_v1, %s6036_s18 }
 0x149   :  { %230 = vxpose.xlu2.b32.start [1/8] (short) (narrow) %v207_v2, 8 }
 0x151   :  { %231 = vxpose.xlu2.b32.cont [2/8] (short) (narrow) %v209_v3, 8 }
 0x175   :  { %v211_v4 = vpop.permute.xlu2 %210 }
 0x176   :  { %232 = vxpose.xlu2.b32.cont [3/8] (short) (narrow) %v211_v4, 8 }
 0x17d   :  { %v217_v8 = vpop.permute.xlu2 %216 }
 0x18c   :  { %v215_v6 = vpop.permute.xlu1 %214 }
 0x194   :  { %v221_v10 = vpop.permute.xlu1 %220 }
 0x195   :  { %v213_v5 = vpop.permute.xlu0 %212 }
 0x196   :  { %233 = vxpose.xlu2.b32.cont [4/8] (short) (narrow) %v213_v5, 8 }
 0x19d   :  { %v219_v7 = vpop.permute.xlu0 %218 }
 0x19e   :  { %234 = vxpose.xlu2.b32.cont [5/8] (short) (narrow) %v215_v6, 8 }
 0x1a5   :  { %v436_v9 = vpop.permute.xlu0 %435 }
 0x1a6   :  { %235 = vxpose.xlu2.b32.cont [6/8] (short) (narrow) %v217_v8, 8  ;;  %457 = vmatpush.bf16.msra.mxu2 %v436_v9 }
 0x1ae   :  { %236 = vxpose.xlu2.b32.cont [7/8] (short) (narrow) %v219_v7, 8 }
 0x1b6   :  { %237 = vxpose.xlu2.b32.end [8/8] (short) (narrow) %v221_v10, 8 }
 0x217   :  { %v246_v11 = vpop.trf.xlu2 }
 0x218   :  { %v262_v12 = vpack.c.bf16 %v246_v11, %v246_v11 }
 0x21a   :  { %v277_v13 = vsel %vm124_vm3, %v262_v12, 0 }
 0x21b   :  { %286 = vmatpush.bf16.msra.mxu1 %v277_v13 }
 0x21e   :  { %3817 = vmatmul.msk.bf16.vlgmr.msra.gmra.mxu1 %vm263_vm8, %v202_v58 }
 0x21f   :  { %429 = vrot.lane.b32.xlu2 %v202_v58, %s6036_s18 }
 0x22e   :  { %3818 = vmatmul.msk.bf16.gmra.mxu1 %vm263_vm8, %v203_v14 }
 0x23e   :  { %3819 = vmatmul.msk.bf16.gmra.mxu1 %vm263_vm8, %v4848_v15 }
 0x24e   :  { %3820 = vmatmul.msk.bf16.gmra.mxu1 %vm263_vm8, %v205_v1 }
 0x29b   :  { %v288_v16 = vpop.f32.mrf.mxu1 }
 0x29c   :  { %v308_v18 = vmul.f32 0.35355338, %v288_v16 }
 0x29e   :  { %v324_v19 = vadd.f32 %v4856_v17, %v308_v18 }
 0x2a0   :  { %v333_v20 = vsel %vm332_vm9, %v324_v19, -inf }
 0x2a1   :  { %334 = vmax.xlane.f32.xlu0 %v333_v20 }
 0x2a3   :  { %v290_v21 = vpop.f32.mrf.mxu1 }
 0x2a4   :  { %v309_v23 = vmul.f32 0.35355338, %v290_v21 }
 0x2a6   :  { %v325_v24 = vadd.f32 %v4863_v22, %v309_v23 }
 0x2a8   :  { %v336_v25 = vsel %vm332_vm9, %v325_v24, -inf }
 0x2a9   :  { %337 = vmax.xlane.f32.xlu1 %v336_v25 }
 0x2ab   :  { %v293_v26 = vpop.f32.mrf.mxu1 }
 0x2ac   :  { %v310_v28 = vmul.f32 0.35355338, %v293_v26 }
 0x2ae   :  { %v326_v29 = vadd.f32 %v4870_v27, %v310_v28 }
 0x2b0   :  { %v339_v30 = vsel %vm332_vm9, %v326_v29, -inf }
 0x2b1   :  { %340 = vmax.xlane.f32.xlu0 %v339_v30 }
 0x2b3   :  { %v295_v31 = vpop.f32.mrf.mxu1 }
 0x2b4   :  { %v311_v33 = vmul.f32 0.35355338, %v295_v31 }
 0x2b6   :  { %v4880_v34 = vadd.f32 %v4877_v32, %v311_v33 }
 0x2b8   :  { %v342_v35 = vsel %vm332_vm9, %v4880_v34, -inf }
 0x2b9   :  { %343 = vmax.xlane.f32.xlu1 %v342_v35 }
 0x2bb   :  { %v298_v36 = vpop.f32.mrf.mxu1 }
 0x2bc   :  { %v312_v38 = vmul.f32 0.35355338, %v298_v36 }
 0x2be   :  { %v328_v39 = vadd.f32 %v4887_v37, %v312_v38 }
 0x2c0   :  { %v345_v40 = vsel %vm332_vm9, %v328_v39, -inf }
 0x2c1   :  { %346 = vmax.xlane.f32.xlu0 %v345_v40 }
 0x2c3   :  { %v300_v41 = vpop.f32.mrf.mxu1 }
 0x2c4   :  { %v313_v43 = vmul.f32 0.35355338, %v300_v41 }
 0x2c6   :  { %v329_v44 = vadd.f32 %v4894_v42, %v313_v43 }
 0x2c8   :  { %v348_v45 = vsel %vm332_vm9, %v329_v44, -inf }
 0x2c9   :  { %349 = vmax.xlane.f32.xlu1 %v348_v45 }
 0x2cb   :  { %v303_v46 = vpop.f32.mrf.mxu1 }
 0x2cc   :  { %v314_v48 = vmul.f32 0.35355338, %v303_v46 }
 0x2ce   :  { %v330_v49 = vadd.f32 %v4901_v47, %v314_v48  ;;  %v430_v48 = vpop.permute.xlu2 %429 }
 0x2d0   :  { %v351_v52 = vsel %vm332_vm9, %v330_v49, -inf }
 0x2d1   :  { %352 = vmax.xlane.f32.xlu0 %v351_v52 }
 0x2d3   :  { %v305_v53 = vpop.f32.mrf.mxu1 }
 0x2d4   :  { %v315_v55 = vmul.f32 0.35355338, %v305_v53 }
 0x2d6   :  { %v331_v56 = vadd.f32 %v4908_v54, %v315_v55 }
 0x2d8   :  { %v354_v57 = vsel %vm332_vm9, %v331_v56, -inf }
 0x2d9   :  { %355 = vmax.xlane.f32.xlu1 %v354_v57 }
 0x2e5   :  { %431 = vrot.lane.b32.xlu0 %v203_v14, %s6036_s18 }
 0x314   :  { %v335_v58 = vpop.xlane.xlu0 %334 }
 0x315   :  { %v357_v59 = vsub.f32 %v324_v19, %v335_v58 }
 0x317   :  { %v365_v60 = vmul.f32 1.442695, %v357_v59 }
 0x319   :  { %4367 = vpow2.f32 %v365_v60 }
 0x31c   :  { %v338_v61 = vpop.xlane.xlu1 %337 }
 0x31d   :  { %v358_v62 = vsub.f32 %v325_v24, %v338_v61 }
 0x31f   :  { %v4913_v63 = vpop.eup %4367  ;;  %v367_v0 = vmul.f32 1.442695, %v358_v62 }
 0x320   :  { %v381_v1 = vsel %vm332_vm9, %v4913_v63, 0.0 }
 0x321   :  { %4369 = vpow2.f32 %v367_v0  ;;  %382 = vadd.xlane.f32.xlu1 %v381_v1 }
 0x324   :  { %v341_v2 = vpop.xlane.xlu0 %340 }
 0x325   :  { %v359_v3 = vsub.f32 %v326_v29, %v341_v2 }
 0x327   :  { %v4370_v4 = vpop.eup %4369  ;;  %v369_v5 = vmul.f32 1.442695, %v359_v3 }
 0x328   :  { %v384_v6 = vsel %vm332_vm9, %v4370_v4, 0.0 }
 0x329   :  { %4371 = vpow2.f32 %v369_v5  ;;  %385 = vadd.xlane.f32.xlu1 %v384_v6 }
 0x32c   :  { %v344_v9 = vpop.xlane.xlu1 %343 }
 0x32d   :  { %v360_v29 = vsub.f32 %v4880_v34, %v344_v9 }
 0x32f   :  { %v4372_v7 = vpop.eup %4371  ;;  %v371_v30 = vmul.f32 1.442695, %v360_v29 }
 0x330   :  { %v387_v8 = vsel %vm332_vm9, %v4372_v7, 0.0 }
 0x331   :  { %388 = vadd.xlane.f32.xlu0 %v387_v8 }
 0x334   :  { %v347_v10 = vpop.xlane.xlu0 %346 }
 0x335   :  { %v361_v11 = vsub.f32 %v328_v39, %v347_v10 }
 0x337   :  { %v373_v12 = vmul.f32 1.442695, %v361_v11 }
 0x339   :  { %4373 = vpow2.f32 %v373_v12 }
 0x33c   :  { %v350_v13 = vpop.xlane.xlu1 %349 }
 0x33d   :  { %v362_v14 = vsub.f32 %v329_v44, %v350_v13 }
 0x33f   :  { %v4374_v16 = vpop.eup %4373  ;;  %v375_v18 = vmul.f32 1.442695, %v362_v14 }
 0x340   :  { %v393_v19 = vsel %vm332_vm9, %v4374_v16, 0.0 }
 0x341   :  { %4375 = vpow2.f32 %v375_v18  ;;  %394 = vadd.xlane.f32.xlu0 %v393_v19 }
 0x342   :  { %433 = vrot.lane.b32.xlu1 %v4848_v15, %s6036_s18 }
 0x344   :  { %v353_v31 = vpop.xlane.xlu0 %352 }
 0x345   :  { %v363_v33 = vsub.f32 %v330_v49, %v353_v31 }
 0x347   :  { %v4376_v20 = vpop.eup %4375  ;;  %v377_v35 = vmul.f32 1.442695, %v363_v33 }
 0x348   :  { %v396_v21 = vsel %vm332_vm9, %v4376_v20, 0.0 }
 0x349   :  { %397 = vadd.xlane.f32.xlu0 %v396_v21 }
 0x34c   :  { %v356_v23 = vpop.xlane.xlu1 %355 }
 0x34d   :  { %v364_v24 = vsub.f32 %v331_v56, %v356_v23 }
 0x34f   :  { %v379_v25 = vmul.f32 1.442695, %v364_v24 }
 0x351   :  { %4377 = vpow2.f32 %v379_v25  ;;  %v4129_v25 = vld [vmem:[%s6024_s2 + $0x18] sm:$0xff] }
 0x352   :  { %4379 = vpow2.f32 %v371_v30  ;;  %542 = vmatpush.bf16.msra.mxu3 %v4129_v25 }
 0x353   :  { %4381 = vpow2.f32 %v377_v35 }
 0x357   :  { %v4378_v26 = vpop.eup %4377  ;;  %v432_v44 = vpop.permute.xlu0 %431 }
 0x358   :  { %v402_v28 = vsel %vm332_vm9, %v4378_v26, 0.0  ;;  %v4380_v15 = vpop.eup %4379 }
 0x359   :  { %403 = vadd.xlane.f32.xlu0 %v402_v28  ;;  %v390_v36 = vsel %vm332_vm9, %v4380_v15, 0.0  ;;  %v4382_v38 = vpop.eup %4381 }
 0x35a   :  { %v399_v39 = vsel %vm332_vm9, %v4382_v38, 0.0 }
 0x36c   :  { %391 = vadd.xlane.f32.xlu1 %v390_v36 }
 0x374   :  { %400 = vadd.xlane.f32.xlu1 %v399_v39 }
 0x394   :  { %v383_v40 = vpop.xlane.xlu1 %382 }
 0x39c   :  { %v386_v41 = vpop.xlane.xlu1 %385 }
 0x39d   :  { %4383 = vrcp.f32 %v386_v41 }
 0x39e   :  { %4385 = vrcp.f32 %v383_v40 }
 0x3a3   :  { %v4384_v34 = vpop.eup %4383 }
 0x3a4   :  { %v4386_v45 = vpop.eup %4385  ;;  %v414_v46 = vmul.f32 %v4384_v34, %v4370_v4  ;;  %v389_v53 = vpop.xlane.xlu0 %388 }
 0x3a5   :  { %v413_v49 = vmul.f32 %v4386_v45, %v4913_v63  ;;  %4387 = vrcp.f32 %v389_v53 }
 0x3a7   :  { %v421_v52 = vpack.c.bf16 %v414_v46, %v413_v49  ;;  %v4345_v46 = vld [vmem:[%s6025_s3 + $0x110] ss:$0 sm:$0xff] }
 0x3ab   :  { %v4388_v57 = vpop.eup %4387 }
 0x3ac   :  { %v415_v59 = vmul.f32 %v4388_v57, %v4372_v7 }
 0x3b4   :  { %v434_v43 = vpop.permute.xlu1 %433  ;;  %v395_v55 = vpop.xlane.xlu0 %394 }
 0x3b5   :  { %458 = vmatpush.bf16.msra.mxu2 %v434_v43 }
 0x3b9   :  { %459 = vmatpush.bf16.msra.mxu2 %v432_v44 }
 0x3bc   :  { %v398_v61 = vpop.xlane.xlu0 %397 }
 0x3bd   :  { %460 = vmatpush.bf16.msra.mxu2 %v430_v48 }
 0x3c0   :  { %3821 = vmatmul.msk.bf16.vlgmr.msra.gmra.mxu2 %vm332_vm9, %v421_v52 }
 0x3cc   :  { %v404_v5 = vpop.xlane.xlu0 %403 }
 0x3df   :  { %v392_v56 = vpop.xlane.xlu1 %391 }
 0x3e0   :  { %4389 = vrcp.f32 %v392_v56 }
 0x3e1   :  { %4391 = vrcp.f32 %v398_v61 }
 0x3e2   :  { %4393 = vrcp.f32 %v395_v55 }
 0x3e6   :  { %v4390_v58 = vpop.eup %4389 }
 0x3e7   :  { %v416_v60 = vmul.f32 %v4390_v58, %v4380_v15  ;;  %v4392_v63 = vpop.eup %4391  ;;  %v401_v3 = vpop.xlane.xlu1 %400 }
 0x3e8   :  { %v4394_v0 = vpop.eup %4393  ;;  %v418_v1 = vmul.f32 %v4392_v63, %v4376_v20  ;;  %4395 = vrcp.f32 %v401_v3  ;;  %v4687_v63 = vmov 32.0  }
 0x3e9   :  { %v422_v62 = vpack.c.bf16 %v416_v60, %v415_v59  ;;  %v417_v2 = vmul.f32 %v4394_v0, %v4374_v16  ;;  %4397 = vrcp.f32 %v404_v5 }
 0x3ea   :  { %4399 = vrcp.f32 %v4687_v63 }
 0x3eb   :  { %3822 = vmatmul.msk.bf16.gmra.mxu2 %vm332_vm9, %v422_v62  ;;  %v423_v4 = vpack.c.bf16 %v418_v1, %v417_v2 }
 0x3ee   :  { %v4396_v6 = vpop.eup %4395 }
 0x3ef   :  { %v4398_v7 = vpop.eup %4397  ;;  %v419_v8 = vmul.f32 %v4396_v6, %v4382_v38 }
 0x3f0   :  { %v420_v9 = vmul.f32 %v4398_v7, %v4378_v26  ;;  %v4128_v26 = vld [vmem:[%s6024_s2 + $0x10] sm:$0xff]  ;;  %v4131_v7 = vld [vmem:[%s6024_s2 + $0x28] sm:$0xff] }
 0x3f1   :  { %543 = vmatpush.bf16.msra.mxu3 %v4128_v26  ;;  %642 = vmatpush.bf16.msrb.mxu0 %v4131_v7 }
 0x3f2   :  { %v424_v10 = vpack.c.bf16 %v420_v9, %v419_v8 }
 0x3fb   :  { %3823 = vmatmul.msk.bf16.gmra.mxu2 %vm332_vm9, %v423_v4 }
 0x40b   :  { %3824 = vmatmul.msk.bf16.gmra.mxu2 %vm332_vm9, %v424_v10  ;;  %v4130_v10 = vld [vmem:[%s6024_s2 + $0x20] sm:$0xff] }
 0x40c   :  { %643 = vmatpush.bf16.msrb.mxu0 %v4130_v10 }
 0x443   :  { %v462_v11 = vpop.f32.mrf.mxu2 }
 0x44b   :  { %v464_v12 = vpop.f32.mrf.mxu2 }
 0x46e   :  { %v467_v13 = vpop.f32.mrf.mxu2 }
 0x476   :  { %v469_v14 = vpop.f32.mrf.mxu2 }
 0x477   :  { %v4194_v18 = vpack.i.bf16 %v469_v14, %v467_v13 }
 0x479   :  { %4195 = vrot.lane.b32.xlu1 %v4194_v18, %s6034_s6 }
 0x47e   :  { %v472_v16 = vpop.f32.mrf.mxu2 }
 0x486   :  { %v474_v19 = vpop.f32.mrf.mxu2 }
 0x487   :  { %v4199_v20 = vpack.i.bf16 %v474_v19, %v472_v16 }
 0x489   :  { %4200 = vrot.lane.b32.xlu0 %v4199_v20, %s6032_s7 }
 0x48e   :  { %v477_v21 = vpop.f32.mrf.mxu2 }
 0x496   :  { %v479_v23 = vpop.f32.mrf.mxu2 }
 0x497   :  { %v4204_v24 = vpack.i.bf16 %v479_v23, %v477_v21 }
 0x499   :  { %4205 = vrot.lane.b32.xlu0 %v4204_v24, %s6030_s9 }
 0x4eb   :  { %v4196_v29 = vpop.permute.xlu1 %4195 }
 0x4ec   :  { %v4198_v30 = vunpack.i.h.bf16 %v4196_v29  ;;  %v4197_v31 = vunpack.i.l.bf16 %v4196_v29 }
 0x4ee   :  { %v507_v36 = vsel %vm263_vm8, %v464_v12, %v4198_v30  ;;  %v506_v38 = vsel %vm263_vm8, %v462_v11, %v4197_v31 }
 0x4fb   :  { %v4201_v28 = vpop.permute.xlu0 %4200 }
 0x4fc   :  { %v4203_v33 = vunpack.i.h.bf16 %v4201_v28  ;;  %v4202_v35 = vunpack.i.l.bf16 %v4201_v28 }
 0x4fe   :  { %v509_v41 = vsel %vm508_vm10, %v506_v38, %v4202_v35  ;;  %v510_v43 = vsel %vm508_vm10, %v507_v36, %v4203_v33  ;;  %v552_v36 = vld [vmem:[%s6025_s3 + $0x128] sm:$0x3] }
 0x50b   :  { %v4206_v15 = vpop.permute.xlu0 %4205 }
 0x50c   :  { %v4208_v39 = vunpack.i.h.bf16 %v4206_v15  ;;  %v4207_v40 = vunpack.i.l.bf16 %v4206_v15 }
 0x50e   :  { %v512_v34 = vsel %vm511_vm11, %v509_v41, %v4207_v40  ;;  %v513_v44 = vsel %vm511_vm11, %v510_v43, %v4208_v39  ;;  %v608_v41 = vperm.slane %v552_v36, 0 }
 0x50f   :  { %v514_v45 = vpack.c.bf16 %v513_v44, %v512_v34 }
 0x511   :  { %3833 = vmatmul.msk.bf16.vlgmr.msra.gmra.mxu3 %vm164_vm7, %v514_v45 }
 0x594   :  { %v545_v48 = vpop.f32.mrf.mxu3 }
 0x595   :  { %v546_v49 = vadd.f32 %v4345_v46, %v545_v48  ;;  %v611_v48 = vperm.slane %v552_v36, 1 }
 0x597   :  { %v550_v52 = vadd.f32 %v546_v49, %v4819_v50  ;;  %v4400_v50 = vpop.eup %4399 }
 0x598   :  { %v560_v0 = vmul.f32 32.0, %v4400_v50  ;;  %vm564_vm12 = vweird.f32 %v4400_v50 }
 0x599   :  { %v553_v53 = vsel %vm164_vm7, %v550_v52, 0.0  ;;  %v568_v55 = vmul.f32 %v550_v52, %v550_v52 }
 0x59a   :  { %554 = vadd.xlane.f32.xlu1 %v553_v53  ;;  %v561_v1 = vsub.f32 1.0, %v560_v0 }
 0x59b   :  { %v570_v56 = vsel %vm164_vm7, %v568_v55, 0.0 }
 0x59c   :  { %v547_v57 = vpop.f32.mrf.mxu3  ;;  %571 = vadd.xlane.f32.xlu2 %v570_v56  ;;  %v562_v2 = vmul.f32 %v4400_v50, %v561_v1 }
 0x59d   :  { %v548_v58 = vadd.f32 %v4345_v46, %v547_v57  ;;  %v4134_v57 = vld [vmem:[%s6024_s2 + $0x40] sm:$0xff] }
 0x59e   :  { %v563_v3 = vadd.f32 %v4400_v50, %v562_v2 }
 0x59f   :  { %v551_v59 = vadd.f32 %v548_v58, %v4821_v51  ;;  %v4133_v58 = vld [vmem:[%s6024_s2 + $0x38] sm:$0xff] }
 0x5a0   :  { %v4957_v4 = vsel %vm564_vm12, %v4400_v50, %v563_v3  ;;  %v4347_v3 = vld [vmem:[%s6025_s3 + $0x120] ss:$0 sm:$0xff] }
 0x5a1   :  { %v556_v60 = vsel %vm164_vm7, %v551_v59, 0.0  ;;  %v569_v61 = vmul.f32 %v551_v59, %v551_v59 }
 0x5a2   :  { %557 = vadd.xlane.f32.xlu0 %v556_v60 }
 0x5a3   :  { %v573_v62 = vsel %vm164_vm7, %v569_v61, 0.0  ;;  %v4346_v61 = vld [vmem:[%s6025_s3 + $0x118] ss:$0 sm:$0xff] }
 0x5a4   :  { %574 = vadd.xlane.f32.xlu1 %v573_v62 }
 0x60d   :  { %v555_v5 = vpop.xlane.xlu1 %554 }
 0x60e   :  { %v566_v51 = vmul.f32 %v4957_v4, %v555_v5 }
 0x60f   :  { %v572_v6 = vpop.xlane.xlu2 %571 }
 0x610   :  { %v578_v8 = vmul.f32 %v566_v51, %v566_v51  ;;  %v576_v9 = vmul.f32 %v572_v6, %v4957_v4  ;;  %v604_v38 = vsub.f32 %v550_v52, %v566_v51  ;;  %v4135_v52 = vld [vmem:[%s6024_s2 + $0x48] sm:$0xff] }
 0x611   :  { %692 = vmatpush.bf16.msrb.mxu3 %v4135_v52 }
 0x612   :  { %v580_v11 = vsub.f32 %v576_v9, %v578_v8 }
 0x614   :  { %v582_v12 = vadd.f32 1e-05, %v580_v11 }
 0x615   :  { %v558_v13 = vpop.xlane.xlu0 %557  ;;  %693 = vmatpush.bf16.msrb.mxu3 %v4134_v57 }
 0x616   :  { %4401 = vrsqrt.f32 %v582_v12  ;;  %v567_v14 = vmul.f32 %v4957_v4, %v558_v13  ;;  %vm590_vm14 = vweird.f32 %v582_v12 }
 0x617   :  { %v575_v18 = vpop.xlane.xlu1 %574 }
 0x618   :  { %v579_v16 = vmul.f32 %v567_v14, %v567_v14  ;;  %v577_v19 = vmul.f32 %v575_v18, %v4957_v4  ;;  %v605_v34 = vsub.f32 %v551_v59, %v567_v14  ;;  %v4132_v59 = vld [vmem:[%s6024_s2 + $0x30] sm:$0xff] }
 0x619   :  { %694 = vmatpush.bf16.msrb.mxu3 %v4133_v58 }
 0x61a   :  { %v581_v20 = vsub.f32 %v577_v19, %v579_v16 }
 0x61c   :  { %v4402_v21 = vpop.eup %4401  ;;  %v583_v23 = vadd.f32 1e-05, %v581_v20 }
 0x61d   :  { %v585_v24 = vmul.f32 %v4402_v21, %v582_v12  ;;  %vm591_vm13 = vweird.f32 %v4402_v21  ;;  %695 = vmatpush.bf16.msrb.mxu3 %v4132_v59 }
 0x61e   :  { %4403 = vrsqrt.f32 %v583_v23  ;;  %vm592_vm15 = vmor %vm590_vm14, %vm591_vm13  ;;  %vm600_vm6 = vweird.f32 %v583_v23 }
 0x61f   :  { %v586_v25 = vmul.f32 %v4402_v21, %v585_v24 }
 0x621   :  { %v587_v26 = vmul.f32 0.5, %v586_v25 }
 0x623   :  { %v588_v28 = vsub.f32 1.5, %v587_v26  ;;  %v4136_v26 = vld [vmem:[%s6024_s2 + $0x50] sm:$0xff] }
 0x624   :  { %v4404_v29 = vpop.eup %4403 }
 0x625   :  { %v589_v30 = vmul.f32 %v4402_v21, %v588_v28  ;;  %v595_v31 = vmul.f32 %v4404_v29, %v583_v23  ;;  %vm601_vm12 = vweird.f32 %v4404_v29 }
 0x626   :  { %vm602_vm5 = vmor %vm600_vm6, %vm601_vm12 }
 0x627   :  { %v596_v33 = vmul.f32 %v4404_v29, %v595_v31  ;;  %v593_v35 = vsel %vm592_vm15, %v4402_v21, %v589_v30  ;;  %v4137_v21 = vld [vmem:[%s6024_s2 + $0x58] sm:$0xff] }
 0x628   :  { %v606_v40 = vmul.f32 %v604_v38, %v593_v35  ;;  %791 = vmatpush.bf16.msra.mxu0 %v4137_v21 }
 0x629   :  { %v597_v15 = vmul.f32 0.5, %v596_v33 }
 0x62a   :  { %v609_v46 = vmul.f32 %v608_v41, %v606_v40 }
 0x62b   :  { %v598_v39 = vsub.f32 1.5, %v597_v15 }
 0x62c   :  { %v612_v53 = vadd.f32 %v611_v48, %v609_v46  ;;  %792 = vmatpush.bf16.msra.mxu0 %v4136_v26 }
 0x62d   :  { %v599_v43 = vmul.f32 %v4404_v29, %v598_v39 }
 0x62f   :  { %v603_v44 = vsel %vm602_vm5, %v4404_v29, %v599_v43 }
 0x630   :  { %v607_v45 = vmul.f32 %v605_v34, %v603_v44 }
 0x632   :  { %v610_v49 = vmul.f32 %v608_v41, %v607_v45 }
 0x634   :  { %v613_v55 = vadd.f32 %v611_v48, %v610_v49  ;;  %v708_v48 = vld [vmem:[%s6025_s3 + $0x130] sm:$0x3] }
 0x635   :  { %v757_v52 = vperm.slane %v708_v48, 0 }
 0x636   :  { %v614_v56 = vpack.c.bf16 %v613_v55, %v612_v53 }
 0x638   :  { %3842 = vmatmul.msk.bf16.vlgmr.msrb.gmra.mxu0 %vm164_vm7, %v614_v56 }
 0x6b5   :  { %v645_v60 = vpop.f32.mrf.mxu0 }
 0x6b6   :  { %v646_v62 = vadd.f32 %v4346_v61, %v645_v60 }
 0x6b8   :  { %v650_v0 = vmax.f32 %v646_v62, 0.0 }
 0x6bd   :  { %v647_v63 = vpop.f32.mrf.mxu0 }
 0x6be   :  { %v648_v50 = vadd.f32 %v4346_v61, %v647_v63  ;;  %v760_v63 = vperm.slane %v708_v48, 1 }
 0x6c0   :  { %v651_v1 = vmax.f32 %v648_v50, 0.0 }
 0x6c2   :  { %v652_v2 = vpack.c.bf16 %v651_v1, %v650_v0 }
 0x6c4   :  { %3859 = vmatmul.msk.bf16.vlgmr.msrb.gmra.mxu3 %vm332_vm9, %v652_v2 }
 0x747   :  { %v697_v5 = vpop.f32.mrf.mxu3 }
 0x748   :  { %v702_v51 = vadd.f32 %v697_v5, %v612_v53 }
 0x74a   :  { %v706_v6 = vadd.f32 %v4347_v3, %v702_v51 }
 0x74c   :  { %v709_v7 = vsel %vm164_vm7, %v706_v6, 0.0  ;;  %v717_v8 = vmul.f32 %v706_v6, %v706_v6 }
 0x74d   :  { %710 = vadd.xlane.f32.xlu0 %v709_v7 }
 0x74e   :  { %v719_v9 = vsel %vm164_vm7, %v717_v8, 0.0 }
 0x74f   :  { %720 = vadd.xlane.f32.xlu2 %v719_v9  ;;  %v699_v10 = vpop.f32.mrf.mxu3 }
 0x750   :  { %v703_v11 = vadd.f32 %v699_v10, %v613_v55 }
 0x752   :  { %v707_v12 = vadd.f32 %v4347_v3, %v703_v11  ;;  %v4348_v3 = vld [vmem:[%s6025_s3 + $0x138] ss:$0 sm:$0xff] }
 0x754   :  { %v712_v13 = vsel %vm164_vm7, %v707_v12, 0.0  ;;  %v718_v14 = vmul.f32 %v707_v12, %v707_v12 }
 0x755   :  { %713 = vadd.xlane.f32.xlu1 %v712_v13 }
 0x756   :  { %v722_v18 = vsel %vm164_vm7, %v718_v14, 0.0 }
 0x757   :  { %723 = vadd.xlane.f32.xlu0 %v722_v18 }
 0x7c0   :  { %v711_v16 = vpop.xlane.xlu0 %710 }
 0x7c1   :  { %v715_v19 = vmul.f32 %v711_v16, %v4957_v4 }
 0x7c2   :  { %v721_v20 = vpop.xlane.xlu2 %720 }
 0x7c3   :  { %v727_v23 = vmul.f32 %v715_v19, %v715_v19  ;;  %v725_v24 = vmul.f32 %v721_v20, %v4957_v4  ;;  %v753_v55 = vsub.f32 %v706_v6, %v715_v19 }
 0x7c5   :  { %v729_v25 = vsub.f32 %v725_v24, %v727_v23 }
 0x7c7   :  { %v731_v28 = vadd.f32 1e-05, %v729_v25 }
 0x7c8   :  { %v714_v29 = vpop.xlane.xlu1 %713 }
 0x7c9   :  { %4405 = vrsqrt.f32 %v731_v28  ;;  %v716_v30 = vmul.f32 %v714_v29, %v4957_v4  ;;  %vm739_vm6 = vweird.f32 %v731_v28 }
 0x7ca   :  { %v724_v31 = vpop.xlane.xlu0 %723 }
 0x7cb   :  { %v728_v33 = vmul.f32 %v716_v30, %v716_v30  ;;  %v726_v35 = vmul.f32 %v724_v31, %v4957_v4  ;;  %v754_v59 = vsub.f32 %v707_v12, %v716_v30 }
 0x7cd   :  { %v730_v15 = vsub.f32 %v726_v35, %v728_v33 }
 0x7cf   :  { %v4406_v36 = vpop.eup %4405  ;;  %v732_v38 = vadd.f32 1e-05, %v730_v15 }
 0x7d0   :  { %v734_v39 = vmul.f32 %v4406_v36, %v731_v28  ;;  %vm740_vm5 = vweird.f32 %v4406_v36 }
 0x7d1   :  { %4407 = vrsqrt.f32 %v732_v38  ;;  %vm741_vm13 = vmor %vm739_vm6, %vm740_vm5  ;;  %vm749_vm15 = vweird.f32 %v732_v38 }
 0x7d2   :  { %v735_v40 = vmul.f32 %v4406_v36, %v734_v39 }
 0x7d4   :  { %v736_v41 = vmul.f32 0.5, %v735_v40 }
 0x7d6   :  { %v737_v43 = vsub.f32 1.5, %v736_v41 }
 0x7d7   :  { %v4408_v34 = vpop.eup %4407 }
 0x7d8   :  { %v738_v44 = vmul.f32 %v4406_v36, %v737_v43  ;;  %v744_v45 = vmul.f32 %v4408_v34, %v732_v38  ;;  %vm750_vm14 = vweird.f32 %v4408_v34 }
 0x7d9   :  { %vm751_vm12 = vmor %vm749_vm15, %vm750_vm14 }
 0x7da   :  { %v745_v46 = vmul.f32 %v4408_v34, %v744_v45  ;;  %v742_v49 = vsel %vm741_vm13, %v4406_v36, %v738_v44 }
 0x7db   :  { %v755_v57 = vmul.f32 %v753_v55, %v742_v49 }
 0x7dc   :  { %v746_v53 = vmul.f32 0.5, %v745_v46 }
 0x7dd   :  { %v758_v61 = vmul.f32 %v757_v52, %v755_v57 }
 0x7de   :  { %v747_v56 = vsub.f32 1.5, %v746_v53 }
 0x7df   :  { %v5009_v0 = vadd.f32 %v760_v63, %v758_v61 }
 0x7e0   :  { %v748_v58 = vmul.f32 %v4408_v34, %v747_v56 }
 0x7e2   :  { %v752_v60 = vsel %vm751_vm12, %v4408_v34, %v748_v58  ;;  %vm6042_vm12 = vcmask 1046528  }
 0x7e3   :  { %v756_v62 = vmul.f32 %v754_v59, %v752_v60 }
 0x7e5   :  { %v759_v50 = vmul.f32 %v757_v52, %v756_v62 }
 0x7e7   :  { %v5011_v1 = vadd.f32 %v760_v63, %v759_v50 }
 0x7e9   :  { %v763_v2 = vpack.c.bf16 %v5011_v1, %v5009_v0 }
 0x7eb   :  { %3868 = vmatmul.msk.bf16.vlgmr.msra.gmra.mxu0 %vm164_vm7, %v763_v2 }
 0x868   :  { %v794_v5 = vpop.f32.mrf.mxu0 }
 0x869   :  { %v795_v51 = vadd.f32 %v4348_v3, %v794_v5 }
 0x86b   :  { %807 = vrot.lane.b32.xlu0 %v795_v51, %s4680_s14  ;;  %801 = vrot.lane.b32.xlu1 %v795_v51, %s4681_s15 }
 0x870   :  { %v796_v6 = vpop.f32.mrf.mxu0 }
 0x871   :  { %v797_v7 = vadd.f32 %v4348_v3, %v796_v6 }
 0x873   :  { %803 = vrot.lane.b32.xlu2 %v797_v7, %s4681_s15  ;;  %815 = vrot.lane.b32.xlu0 %v797_v7, %s4679_s12  ;;  %v5023_v8 = vpack.c.bf16 %v797_v7, %v795_v51 }
 0x874   :  { %813 = vrot.lane.b32.xlu1 %v795_v51, %s4679_s12 }
 0x87b   :  { %809 = vrot.lane.b32.xlu2 %v797_v7, %s4680_s14 }
 0x87c   :  { %825 = vrot.lane.b32.xlu1 %v797_v7, %s4682_s17 }
 0x883   :  { %823 = vrot.lane.b32.xlu2 %v795_v51, %s4682_s17 }
 0x8cd   :  { %v804_v9 = vpop.permute.xlu2 %803 }
 0x8ce   :  { %829 = vrot.lane.b32.xlu2 %v804_v9, %s4682_s17 }
 0x8d5   :  { %v810_v13 = vpop.permute.xlu2 %809 }
 0x8dd   :  { %v808_v10 = vpop.permute.xlu0 %807  ;;  %v802_v11 = vpop.permute.xlu1 %801 }
 0x8de   :  { %831 = vrot.lane.b32.xlu1 %v808_v10, %s4682_s17  ;;  %827 = vrot.lane.b32.xlu0 %v802_v11, %s4682_s17  ;;  %v824_v16 = vpop.permute.xlu2 %823  ;;  %v820_v29 = vpack.c.bf16 %v804_v9, %v802_v11  ;;  %v5041_v35 = vpack.c.bf16 %v810_v13, %v808_v10 }
 0x8e5   :  { %v816_v12 = vpop.permute.xlu0 %815 }
 0x8e6   :  { %v814_v14 = vpop.permute.xlu1 %813  ;;  %837 = vrot.lane.b32.xlu1 %v816_v12, %s4682_s17  ;;  %833 = vrot.lane.b32.xlu0 %v810_v13, %s4682_s17 }
 0x8e7   :  { %835 = vrot.lane.b32.xlu2 %v814_v14, %s4682_s17  ;;  %v822_v18 = vpack.c.bf16 %v816_v12, %v814_v14 }
 0x8ee   :  { %v826_v19 = vpop.permute.xlu1 %825 }
 0x8ef   :  { %1042 = vrot.lane.b32.xlu2 %v822_v18, %s6036_s18 }
 0x908   :  { %847 = vxpose.xlu0.b32.start [1/8] (short) (narrow) %v824_v16, 8 }
 0x910   :  { %848 = vxpose.xlu0.b32.cont [2/8] (short) (narrow) %v826_v19, 8 }
 0x928   :  { %v830_v20 = vpop.permute.xlu2 %829 }
 0x941   :  { %v836_v21 = vpop.permute.xlu2 %835 }
 0x949   :  { %v1043_v23 = vpop.permute.xlu2 %1042 }
 0x94a   :  { %1064 = vmatpush.bf16.msrb.mxu0 %v1043_v23 }
 0x950   :  { %v828_v24 = vpop.permute.xlu0 %827  ;;  %v832_v25 = vpop.permute.xlu1 %831 }
 0x951   :  { %849 = vxpose.xlu0.b32.cont [3/8] (short) (narrow) %v828_v24, 8 }
 0x958   :  { %v834_v26 = vpop.permute.xlu0 %833  ;;  %v838_v28 = vpop.permute.xlu1 %837 }
 0x959   :  { %850 = vxpose.xlu0.b32.cont [4/8] (short) (narrow) %v830_v20, 8 }
 0x961   :  { %851 = vxpose.xlu0.b32.cont [5/8] (short) (narrow) %v832_v25, 8 }
 0x969   :  { %852 = vxpose.xlu0.b32.cont [6/8] (short) (narrow) %v834_v26, 8 }
 0x971   :  { %853 = vxpose.xlu0.b32.cont [7/8] (short) (narrow) %v836_v21, 8 }
 0x979   :  { %854 = vxpose.xlu0.b32.end [8/8] (short) (narrow) %v838_v28, 8 }
 0x9e5   :  { %v863_v30 = vpop.trf.xlu0 }
 0x9e6   :  { %v879_v31 = vpack.c.bf16 %v863_v30, %v863_v30 }
 0x9e7   :  { %1038 = vrot.lane.b32.xlu0 %v820_v29, %s6036_s18 }
 0x9e8   :  { %v893_v33 = vsel %vm124_vm3, %v879_v31, 0 }
 0x9e9   :  { %902 = vmatpush.bf16.msra.mxu3 %v893_v33 }
 0x9ec   :  { %3869 = vmatmul.msk.bf16.vlgmr.msra.gmra.mxu3 %vm263_vm8, %v5023_v8 }
 0x9fc   :  { %3870 = vmatmul.msk.bf16.gmra.mxu3 %vm263_vm8, %v820_v29 }
 0xa0c   :  { %3871 = vmatmul.msk.bf16.gmra.mxu3 %vm263_vm8, %v5041_v35 }
 0xa1c   :  { %3872 = vmatmul.msk.bf16.gmra.mxu3 %vm263_vm8, %v822_v18 }
 0xa6f   :  { %v904_v15 = vpop.f32.mrf.mxu3 }
 0xa70   :  { %v924_v36 = vmul.f32 0.35355338, %v904_v15 }
 0xa72   :  { %v932_v38 = vadd.f32 %v924_v36, %v4856_v17 }
 0xa74   :  { %v940_v39 = vsel %vm332_vm9, %v932_v38, -inf }
 0xa75   :  { %941 = vmax.xlane.f32.xlu2 %v940_v39 }
 0xa77   :  { %v906_v40 = vpop.f32.mrf.mxu3 }
 0xa78   :  { %v925_v41 = vmul.f32 0.35355338, %v906_v40 }
 0xa7a   :  { %v933_v43 = vadd.f32 %v925_v41, %v4863_v22 }
 0xa7c   :  { %v943_v34 = vsel %vm332_vm9, %v933_v43, -inf }
 0xa7d   :  { %944 = vmax.xlane.f32.xlu1 %v943_v34 }
 0xa7f   :  { %v909_v44 = vpop.f32.mrf.mxu3 }
 0xa80   :  { %v926_v45 = vmul.f32 0.35355338, %v909_v44 }
 0xa82   :  { %v934_v46 = vadd.f32 %v926_v45, %v4870_v27 }
 0xa84   :  { %v946_v48 = vsel %vm332_vm9, %v934_v46, -inf }
 0xa85   :  { %947 = vmax.xlane.f32.xlu2 %v946_v48 }
 0xa87   :  { %v911_v49 = vpop.f32.mrf.mxu3 }
 0xa88   :  { %v927_v53 = vmul.f32 0.35355338, %v911_v49 }
 0xa8a   :  { %v5053_v17 = vadd.f32 %v927_v53, %v4877_v32 }
 0xa8c   :  { %v949_v55 = vsel %vm332_vm9, %v5053_v17, -inf }
 0xa8d   :  { %950 = vmax.xlane.f32.xlu1 %v949_v55  ;;  %v1039_v55 = vpop.permute.xlu0 %1038 }
 0xa8f   :  { %v914_v22 = vpop.f32.mrf.mxu3 }
 0xa90   :  { %v928_v56 = vmul.f32 0.35355338, %v914_v22 }
 0xa92   :  { %v936_v52 = vadd.f32 %v928_v56, %v4887_v37 }
 0xa94   :  { %v952_v57 = vsel %vm332_vm9, %v936_v52, -inf }
 0xa95   :  { %953 = vmax.xlane.f32.xlu2 %v952_v57 }
 0xa97   :  { %v916_v27 = vpop.f32.mrf.mxu3 }
 0xa98   :  { %v929_v58 = vmul.f32 0.35355338, %v916_v27 }
 0xa9a   :  { %v937_v59 = vadd.f32 %v929_v58, %v4894_v42 }
 0xa9c   :  { %v955_v60 = vsel %vm332_vm9, %v937_v59, -inf }
 0xa9d   :  { %956 = vmax.xlane.f32.xlu1 %v955_v60 }
 0xa9f   :  { %v919_v32 = vpop.f32.mrf.mxu3 }
 0xaa0   :  { %v930_v61 = vmul.f32 0.35355338, %v919_v32 }
 0xaa2   :  { %v938_v62 = vadd.f32 %v930_v61, %v4901_v47 }
 0xaa4   :  { %v958_v63 = vsel %vm332_vm9, %v938_v62, -inf }
 0xaa5   :  { %959 = vmax.xlane.f32.xlu2 %v958_v63 }
 0xaa7   :  { %v921_v50 = vpop.f32.mrf.mxu3 }
 0xaa8   :  { %v931_v2 = vmul.f32 0.35355338, %v921_v50 }
 0xaaa   :  { %v939_v37 = vadd.f32 %v931_v2, %v4908_v54 }
 0xaac   :  { %v961_v3 = vsel %vm332_vm9, %v939_v37, -inf }
 0xaad   :  { %962 = vmax.xlane.f32.xlu1 %v961_v3 }
 0xabd   :  { %1036 = vrot.lane.b32.xlu2 %v5023_v8, %s6036_s18 }
 0xae8   :  { %v942_v42 = vpop.xlane.xlu2 %941 }
 0xae9   :  { %v964_v5 = vsub.f32 %v932_v38, %v942_v42 }
 0xaeb   :  { %v972_v51 = vmul.f32 1.442695, %v964_v5 }
 0xaed   :  { %4409 = vpow2.f32 %v972_v51 }
 0xaf0   :  { %v945_v6 = vpop.xlane.xlu1 %944 }
 0xaf1   :  { %v965_v7 = vsub.f32 %v933_v43, %v945_v6 }
 0xaf3   :  { %v5067_v47 = vpop.eup %4409  ;;  %v974_v9 = vmul.f32 1.442695, %v965_v7 }
 0xaf4   :  { %v988_v10 = vsel %vm332_vm9, %v5067_v47, 0.0 }
 0xaf5   :  { %4411 = vpow2.f32 %v974_v9  ;;  %989 = vadd.xlane.f32.xlu1 %v988_v10 }
 0xaf8   :  { %v948_v54 = vpop.xlane.xlu2 %947 }
 0xaf9   :  { %v966_v11 = vsub.f32 %v934_v46, %v948_v54 }
 0xafb   :  { %v4412_v12 = vpop.eup %4411  ;;  %v976_v13 = vmul.f32 1.442695, %v966_v11 }
 0xafc   :  { %v991_v8 = vsel %vm332_vm9, %v4412_v12, 0.0 }
 0xafd   :  { %4413 = vpow2.f32 %v976_v13  ;;  %992 = vadd.xlane.f32.xlu1 %v991_v8 }
 0xb00   :  { %v951_v16 = vpop.xlane.xlu1 %950 }
 0xb01   :  { %v967_v39 = vsub.f32 %v5053_v17, %v951_v16  ;;  %v4139_v16 = vld [vmem:[%s6024_s2 + $0x68] sm:$0xff] }
 0xb02   :  { %1147 = vmatpush.bf16.msrb.mxu1 %v4139_v16  ;;  %v3932_v16 = vld [vmem:[%s3781_s30 + $0x10] sm:$0x1] }
 0xb03   :  { %v4414_v14 = vpop.eup %4413  ;;  %v978_v40 = vmul.f32 1.442695, %v967_v39 }
 0xb04   :  { %v994_v18 = vsel %vm332_vm9, %v4414_v14, 0.0 }
 0xb05   :  { %995 = vadd.xlane.f32.xlu2 %v994_v18 }
 0xb08   :  { %v954_v19 = vpop.xlane.xlu2 %953 }
 0xb09   :  { %v968_v20 = vsub.f32 %v936_v52, %v954_v19 }
 0xb0b   :  { %v980_v21 = vmul.f32 1.442695, %v968_v20 }
 0xb0d   :  { %4415 = vpow2.f32 %v980_v21 }
 0xb10   :  { %v957_v23 = vpop.xlane.xlu1 %956 }
 0xb11   :  { %v969_v24 = vsub.f32 %v937_v59, %v957_v23 }
 0xb13   :  { %v4416_v25 = vpop.eup %4415  ;;  %v982_v26 = vmul.f32 1.442695, %v969_v24 }
 0xb14   :  { %v1000_v28 = vsel %vm332_vm9, %v4416_v25, 0.0 }
 0xb15   :  { %4417 = vpow2.f32 %v982_v26  ;;  %1001 = vadd.xlane.f32.xlu2 %v1000_v28  ;;  %v4138_v26 = vld [vmem:[%s6024_s2 + $0x60] sm:$0xff] }
 0xb16   :  { %1040 = vrot.lane.b32.xlu1 %v5041_v35, %s6036_s18  ;;  %1148 = vmatpush.bf16.msrb.mxu1 %v4138_v26  ;;  %s5202_s18 = sld [smem:[#allocation4 + $0xd]] }
 0xb18   :  { %v960_v41 = vpop.xlane.xlu2 %959 }
 0xb19   :  { %v970_v43 = vsub.f32 %v938_v62, %v960_v41 }
 0xb1b   :  { %v4418_v29 = vpop.eup %4417  ;;  %v984_v34 = vmul.f32 1.442695, %v970_v43 }
 0xb1c   :  { %v1003_v30 = vsel %vm332_vm9, %v4418_v29, 0.0  ;;  %s3787_s16 = scalar_lea.vmem %s6025_s3, %s5202_s18  ;;  %s3733_s18 = sshll.u32 %s6026_s4, 4  ;;  %s3734_s18 = int_to_ptr.hbm [resolvable:$true] %s3733_s18 }
 0xb1d   :  { %1004 = vadd.xlane.f32.xlu2 %v1003_v30 }
 0xb20   :  { %v963_v31 = vpop.xlane.xlu1 %962  ;;  %v1037_v52 = vpop.permute.xlu2 %1036 }
 0xb21   :  { %v971_v33 = vsub.f32 %v939_v37, %v963_v31 }
 0xb23   :  { %v986_v15 = vmul.f32 1.442695, %v971_v33 }
 0xb25   :  { %4419 = vpow2.f32 %v986_v15 }
 0xb26   :  { %4421 = vpow2.f32 %v978_v40 }
 0xb27   :  { %4423 = vpow2.f32 %v984_v34 }
 0xb2b   :  { %v4420_v36 = vpop.eup %4419 }
 0xb2c   :  { %v1009_v38 = vsel %vm332_vm9, %v4420_v36, 0.0  ;;  %v4422_v35 = vpop.eup %4421 }
 0xb2d   :  { %1010 = vadd.xlane.f32.xlu2 %v1009_v38  ;;  %v997_v44 = vsel %vm332_vm9, %v4422_v35, 0.0  ;;  %v4424_v45 = vpop.eup %4423 }
 0xb2e   :  { %v1006_v46 = vsel %vm332_vm9, %v4424_v45, 0.0 }
 0xb40   :  { %998 = vadd.xlane.f32.xlu1 %v997_v44 }
 0xb48   :  { %1007 = vadd.xlane.f32.xlu1 %v1006_v46  ;;  %v4141_v46 = vld [vmem:[%s6024_s2 + $0x78] sm:$0xff] }
 0xb49   :  { %1240 = vmatpush.bf16.msrb.mxu2 %v4141_v46 }
 0xb68   :  { %v990_v48 = vpop.xlane.xlu1 %989 }
 0xb70   :  { %v993_v49 = vpop.xlane.xlu1 %992 }
 0xb71   :  { %4425 = vrcp.f32 %v993_v49 }
 0xb72   :  { %4427 = vrcp.f32 %v990_v48  ;;  %v4349_v48 = vld [vmem:[%s6025_s3 + $0x140] ss:$0 sm:$0xff] }
 0xb77   :  { %v4426_v17 = vpop.eup %4425 }
 0xb78   :  { %v4428_v22 = vpop.eup %4427  ;;  %v1021_v56 = vmul.f32 %v4426_v17, %v4412_v12  ;;  %v996_v58 = vpop.xlane.xlu2 %995 }
 0xb79   :  { %v1020_v57 = vmul.f32 %v4428_v22, %v5067_v47  ;;  %4429 = vrcp.f32 %v996_v58 }
 0xb7b   :  { %v1028_v27 = vpack.c.bf16 %v1021_v56, %v1020_v57 }
 0xb7f   :  { %v4430_v32 = vpop.eup %4429 }
 0xb80   :  { %v1022_v62 = vmul.f32 %v4430_v32, %v4414_v14 }
 0xb88   :  { %v1041_v53 = vpop.permute.xlu1 %1040  ;;  %v1002_v59 = vpop.xlane.xlu2 %1001 }
 0xb89   :  { %1065 = vmatpush.bf16.msrb.mxu0 %v1041_v53 }
 0xb8d   :  { %1066 = vmatpush.bf16.msrb.mxu0 %v1039_v55 }
 0xb90   :  { %v1005_v50 = vpop.xlane.xlu2 %1004 }
 0xb91   :  { %1067 = vmatpush.bf16.msrb.mxu0 %v1037_v52 }
 0xb94   :  { %3873 = vmatmul.msk.bf16.vlgmr.msrb.gmra.mxu0 %vm332_vm9, %v1028_v27 }
 0xba0   :  { %v1011_v7 = vpop.xlane.xlu2 %1010 }
 0xbb3   :  { %v999_v60 = vpop.xlane.xlu1 %998 }
 0xbb4   :  { %4431 = vrcp.f32 %v999_v60 }
 0xbb5   :  { %4433 = vrcp.f32 %v1005_v50 }
 0xbb6   :  { %4435 = vrcp.f32 %v1002_v59 }
 0xbba   :  { %v4432_v61 = vpop.eup %4431 }
 0xbbb   :  { %v1023_v63 = vmul.f32 %v4432_v61, %v4422_v35  ;;  %v4434_v37 = vpop.eup %4433  ;;  %v1008_v51 = vpop.xlane.xlu1 %1007 }
 0xbbc   :  { %v4436_v3 = vpop.eup %4435  ;;  %v1025_v42 = vmul.f32 %v4434_v37, %v4418_v29  ;;  %4437 = vrcp.f32 %v1008_v51 }
 0xbbd   :  { %v1029_v2 = vpack.c.bf16 %v1023_v63, %v1022_v62  ;;  %v1024_v5 = vmul.f32 %v4436_v3, %v4416_v25  ;;  %4439 = vrcp.f32 %v1011_v7  ;;  %v4140_v63 = vld [vmem:[%s6024_s2 + $0x70] sm:$0xff] }
 0xbbe   :  { %1241 = vmatpush.bf16.msrb.mxu2 %v4140_v63 }
 0xbbf   :  { %3874 = vmatmul.msk.bf16.gmra.mxu0 %vm332_vm9, %v1029_v2  ;;  %v1030_v6 = vpack.c.bf16 %v1025_v42, %v1024_v5 }
 0xbc2   :  { %v4438_v47 = vpop.eup %4437 }
 0xbc3   :  { %v4440_v9 = vpop.eup %4439  ;;  %v1026_v10 = vmul.f32 %v4438_v47, %v4424_v45  ;;  %v4146_v47 = vld [vmem:[%s6024_s2 + $0xa0] sm:$0xff] }
 0xbc4   :  { %v1027_v54 = vmul.f32 %v4440_v9, %v4420_v36 }
 0xbc6   :  { %v1031_v11 = vpack.c.bf16 %v1027_v54, %v1026_v10 }
 0xbcf   :  { %3875 = vmatmul.msk.bf16.gmra.mxu0 %vm332_vm9, %v1030_v6  ;;  %v4147_v6 = vld [vmem:[%s6024_s2 + $0xa8] sm:$0xff] }
 0xbd0   :  { %1515 = vmatpush.bf16.msra.mxu2 %v4147_v6 }
 0xbd4   :  { %1516 = vmatpush.bf16.msra.mxu2 %v4146_v47 }
 0xbdf   :  { %3876 = vmatmul.msk.bf16.gmra.mxu0 %vm332_vm9, %v1031_v11 }
 0xc11   :  { %v1069_v12 = vpop.f32.mrf.mxu0 }
 0xc19   :  { %v1071_v13 = vpop.f32.mrf.mxu0 }
 0xc3c   :  { %v1074_v8 = vpop.f32.mrf.mxu0 }
 0xc44   :  { %v1076_v14 = vpop.f32.mrf.mxu0 }
 0xc45   :  { %v4209_v18 = vpack.i.bf16 %v1076_v14, %v1074_v8  ;;  %v3916_v14 = vld [vmem:[%s3765_s25 + $0x10] sm:$0x1]  ;;  %s5223_s25 = sld [smem:[#allocation4 + $0x7]] }
 0xc47   :  { %4210 = vrot.lane.b32.xlu1 %v4209_v18, %s6034_s6  ;;  %s3777_s6 = scalar_lea.vmem %s6025_s3, %s5155_s20 }
 0xc4c   :  { %v1079_v19 = vpop.f32.mrf.mxu0 }
 0xc54   :  { %v1081_v20 = vpop.f32.mrf.mxu0 }
 0xc55   :  { %v4214_v21 = vpack.i.bf16 %v1081_v20, %v1079_v19 }
 0xc57   :  { %4215 = vrot.lane.b32.xlu2 %v4214_v21, %s6032_s7  ;;  %s5214_s7 = sld [smem:[#allocation4 + $0xe]] }
 0xc5c   :  { %v1084_v23 = vpop.f32.mrf.mxu0 }
 0xc64   :  { %v1086_v24 = vpop.f32.mrf.mxu0 }
 0xc65   :  { %v4219_v25 = vpack.i.bf16 %v1086_v24, %v1084_v23  ;;  %v3912_v23 = vld [vmem:[%s3761_s28 + $0x10] sm:$0x1] }
 0xc66   :  { %v3928_v24 = vld [vmem:[%s3777_s6 + $0x10] sm:$0x1]  ;;  %s3785_s6 = scalar_lea.vmem %s6025_s3, %s5181_s10 }
 0xc67   :  { %4220 = vrot.lane.b32.xlu1 %v4219_v25, %s6030_s9 }
 0xcb1   :  { %v4216_v31 = vpop.permute.xlu2 %4215 }
 0xcb2   :  { %v4218_v36 = vunpack.i.h.bf16 %v4216_v31  ;;  %v4217_v38 = vunpack.i.l.bf16 %v4216_v31  ;;  %v1450_v31 = vrot.slane %v3932_v16, 6 }
 0xcb9   :  { %v4211_v28 = vpop.permute.xlu1 %4210 }
 0xcba   :  { %v4213_v29 = vunpack.i.h.bf16 %v4211_v28  ;;  %v4212_v30 = vunpack.i.l.bf16 %v4211_v28 }
 0xcbc   :  { %v1114_v33 = vsel %vm263_vm8, %v1071_v13, %v4213_v29  ;;  %v1113_v15 = vsel %vm263_vm8, %v1069_v12, %v4212_v30  ;;  %v3914_v12 = vld [vmem:[%s3763_s29 + $0x10] sm:$0x1]  ;;  %s3767_s29 = scalar_lea.vmem %s6025_s3, %s5160_s0  ;;  %s3769_s0 = scalar_lea.vmem %s6025_s3, %s5168_s1  ;;  %v1429_v30 = vrot.slane %v3916_v14, 6 }
 0xcbd   :  { %v1115_v43 = vsel %vm508_vm10, %v1113_v15, %v4217_v38  ;;  %v1116_v34 = vsel %vm508_vm10, %v1114_v33, %v4218_v36  ;;  %v3930_v13 = vld [vmem:[%s3779_s8 + $0x10] sm:$0x1]  ;;  %v1426_v19 = vrot.slane %v3914_v12, 7  ;;  %s3773_s8 = scalar_lea.vmem %s6025_s3, %s5204_s19 }
 0xcbe   :  { %v1447_v20 = vrot.slane %v3930_v13, 7  ;;  %v3918_v28 = vld [vmem:[%s3767_s29 + $0x10] sm:$0x1]  ;;  %s6047_s29 = smov 24  }
 0xcbf   :  { %v3934_v29 = vld [vmem:[%s3783_s22 + $0x10] sm:$0x1]  ;;  %v1467_v15 = vsel %vm118_vm0, %v3912_v23, %v1426_v19  ;;  %s3789_s22 = scalar_lea.vmem %s6025_s3, %s5214_s7  ;;  %s3775_s7 = scalar_lea.vmem %s6025_s3, %s5223_s25 }
 0xcc0   :  { %v1474_v36 = vsel %vm118_vm0, %v3928_v24, %v1447_v20  ;;  %v1468_v46 = vsel %vm120_vm1, %v1467_v15, %v1429_v30  ;;  %v1483_v20 = vld [vmem:[%s6025_s3 + $0x30] sm:$0xff]  ;;  %v4142_v30 = vld [vmem:[%s6024_s2 + $0x80] sm:$0xff] }
 0xcd9   :  { %v4221_v39 = vpop.permute.xlu1 %4220 }
 0xcda   :  { %v4223_v40 = vunpack.i.h.bf16 %v4221_v39  ;;  %v4222_v41 = vunpack.i.l.bf16 %v4221_v39  ;;  %v1157_v39 = vld [vmem:[%s6025_s3 + $0x158] sm:$0x3] }
 0xcdc   :  { %v1117_v35 = vsel %vm511_vm11, %v1115_v43, %v4222_v41  ;;  %v1118_v44 = vsel %vm511_vm11, %v1116_v34, %v4223_v40  ;;  %v3920_v40 = vld [vmem:[%s3769_s0 + $0x10] sm:$0x1] }
 0xcdd   :  { %v1119_v45 = vpack.c.bf16 %v1118_v44, %v1117_v35  ;;  %v3936_v34 = vld [vmem:[%s3785_s6 + $0x10] sm:$0x1]  ;;  %v1432_v35 = vrot.slane %v3918_v28, 5  ;;  %v1453_v44 = vrot.slane %v3934_v29, 5  ;;  %v4143_v29 = vld [vmem:[%s6024_s2 + $0x88] sm:$0xff] }
 0xcde   :  { %v4144_v28 = vld [vmem:[%s6024_s2 + $0x90] sm:$0xff] }
 0xcdf   :  { %3885 = vmatmul.msk.bf16.vlgmr.msrb.gmra.mxu1 %vm164_vm7, %v1119_v45 }
 0xd5c   :  { %v1150_v49 = vpop.f32.mrf.mxu1 }
 0xd5d   :  { %v1151_v53 = vadd.f32 %v4349_v48, %v1150_v49 }
 0xd5f   :  { %v5109_v17 = vadd.f32 %v1151_v53, %v5009_v0  ;;  %v1206_v53 = vperm.slane %v1157_v39, 0 }
 0xd61   :  { %v1158_v55 = vsel %vm164_vm7, %v5109_v17, 0.0  ;;  %v1166_v22 = vmul.f32 %v5109_v17, %v5109_v17 }
 0xd62   :  { %1159 = vadd.xlane.f32.xlu2 %v1158_v55 }
 0xd63   :  { %v1168_v56 = vsel %vm164_vm7, %v1166_v22, 0.0  ;;  %v3922_v22 = vld [vmem:[%s3771_s5 + $0x10] sm:$0x1] }
 0xd64   :  { %v1152_v52 = vpop.f32.mrf.mxu1  ;;  %1169 = vadd.xlane.f32.xlu0 %v1168_v56  ;;  %v3938_v56 = vld [vmem:[%s3787_s16 + $0x10] sm:$0x1]  ;;  %s6045_s16 = smov 8  }
 0xd65   :  { %v1153_v57 = vadd.f32 %v4349_v48, %v1152_v52  ;;  %v1475_v48 = vsel %vm120_vm1, %v1474_v36, %v1450_v31  ;;  %v1456_v52 = vrot.slane %v3936_v34, 4  ;;  %v1459_v63 = vrot.slane %v3938_v56, 3 }
 0xd67   :  { %v5117_v27 = vadd.f32 %v1153_v57, %v5011_v1 }
 0xd69   :  { %v1161_v58 = vsel %vm164_vm7, %v5117_v27, 0.0  ;;  %v1167_v0 = vmul.f32 %v5117_v27, %v5117_v27 }
 0xd6a   :  { %1162 = vadd.xlane.f32.xlu1 %v1161_v58  ;;  %v1469_v58 = vsel %vm122_vm2, %v1468_v46, %v1432_v35 }
 0xd6b   :  { %v1171_v59 = vsel %vm164_vm7, %v1167_v0, 0.0  ;;  %v1476_v0 = vsel %vm122_vm2, %v1475_v48, %v1453_v44  ;;  %vm6040_vm2 = vcmask 1045504  }
 0xd6c   :  { %1172 = vadd.xlane.f32.xlu2 %v1171_v59  ;;  %vm6041_vm15 = vmmov %vm6040_vm2 }
 0xdd5   :  { %v1160_v60 = vpop.xlane.xlu2 %1159 }
 0xdd6   :  { %v5125_v32 = vmul.f32 %v1160_v60, %v4957_v4  ;;  %v1209_v60 = vperm.slane %v1157_v39, 1 }
 0xdd7   :  { %v1170_v61 = vpop.xlane.xlu0 %1169 }
 0xdd8   :  { %v1176_v62 = vmul.f32 %v5125_v32, %v5125_v32  ;;  %v1174_v1 = vmul.f32 %v1170_v61, %v4957_v4  ;;  %v1202_v45 = vsub.f32 %v5109_v17, %v5125_v32  ;;  %v1435_v17 = vrot.slane %v3920_v40, 4  ;;  %v3924_v61 = vld [vmem:[%s3773_s8 + $0x10] sm:$0x1] }
 0xdda   :  { %v1178_v50 = vsub.f32 %v1174_v1, %v1176_v62  ;;  %v3940_v62 = vld [vmem:[%s3789_s22 + $0x10] sm:$0x1]  ;;  %v1438_v1 = vrot.slane %v3922_v22, 3  ;;  %s4689_s22 = smov 128  }
 0xddb   :  { %v1462_v6 = vrot.slane %v3940_v62, 2 }
 0xddc   :  { %v5133_v2 = vadd.f32 1e-05, %v1178_v50 }
 0xddd   :  { %v1163_v37 = vpop.xlane.xlu1 %1162 }
 0xdde   :  { %4441 = vrsqrt.f32 %v5133_v2  ;;  %v5141_v3 = vmul.f32 %v1163_v37, %v4957_v4  ;;  %vm1188_vm6 = vweird.f32 %v5133_v2  ;;  %v1470_v37 = vsel %vm124_vm3, %v1469_v58, %v1435_v17 }
 0xddf   :  { %v1173_v42 = vpop.xlane.xlu2 %1172 }
 0xde0   :  { %v1177_v5 = vmul.f32 %v5141_v3, %v5141_v3  ;;  %v1175_v51 = vmul.f32 %v1173_v42, %v4957_v4  ;;  %v1203_v59 = vsub.f32 %v5117_v27, %v5141_v3  ;;  %v1477_v27 = vsel %vm124_vm3, %v1476_v0, %v1456_v52  ;;  %v3926_v42 = vld [vmem:[%s3775_s7 + $0x10] sm:$0x1] }
 0xde1   :  { %v1478_v47 = vsel %vm126_vm4, %v1477_v27, %v1459_v63 }
 0xde2   :  { %v1179_v7 = vsub.f32 %v1175_v51, %v1177_v5  ;;  %v3942_v5 = vld [vmem:[%s3791_s24 + $0x10] sm:$0x1]  ;;  %v1441_v51 = vrot.slane %v3924_v61, 2 }
 0xde4   :  { %v5164_v9 = vpop.eup %4441  ;;  %v5166_v10 = vadd.f32 1e-05, %v1179_v7  ;;  %v1471_v7 = vsel %vm126_vm4, %v1470_v37, %v1438_v1 }
 0xde5   :  { %v1183_v54 = vmul.f32 %v5164_v9, %v5133_v2  ;;  %vm1189_vm5 = vweird.f32 %v5164_v9  ;;  %v1472_v13 = vsel %vm6040_vm2, %v1471_v7, %v1441_v51 }
 0xde6   :  { %4443 = vrsqrt.f32 %v5166_v10  ;;  %vm5234_vm13 = vmor %vm1188_vm6, %vm1189_vm5  ;;  %vm1198_vm1 = vweird.f32 %v5166_v10 }
 0xde7   :  { %v1184_v11 = vmul.f32 %v5164_v9, %v1183_v54  ;;  %v1444_v54 = vrot.slane %v3926_v42, 1  ;;  %vm6043_vm5 = vmmov %vm6042_vm12 }
 0xde9   :  { %v1185_v8 = vmul.f32 0.5, %v1184_v11  ;;  %v1465_v11 = vrot.slane %v3942_v5, 1  ;;  %v1473_v14 = vsel %vm6042_vm12, %v1472_v13, %v1444_v54 }
 0xdea   :  { %v1481_v16 = vmul.f32 5.656854, %v1473_v14 }
 0xdeb   :  { %v1186_v18 = vsub.f32 1.5, %v1185_v8  ;;  %v1479_v8 = vsel %vm6041_vm15, %v1478_v47, %v1462_v6 }
 0xdec   :  { %v4444_v21 = vpop.eup %4443  ;;  %v5298_v23 = vadd.f32 %v1483_v20, %v1481_v16  ;;  %v1658_v20 = vld [vmem:[%s6025_s3 + $0x90] sm:$0xff] }
 0xded   :  { %v1187_v25 = vmul.f32 %v5164_v9, %v1186_v18  ;;  %v1193_v26 = vmul.f32 %v4444_v21, %v5166_v10  ;;  %vm1199_vm0 = vweird.f32 %v4444_v21  ;;  %v1480_v18 = vsel %vm6043_vm5, %v1479_v8, %v1465_v11  ;;  %v1657_v8 = vld [vmem:[%s6025_s3 + $0x88] sm:$0xff] }
 0xdee   :  { %vm1200_vm14 = vmor %vm1198_vm1, %vm1199_vm0  ;;  %v1482_v19 = vmul.f32 5.656854, %v1480_v18 }
 0xdef   :  { %v1194_v33 = vmul.f32 %v4444_v21, %v1193_v26  ;;  %v1191_v41 = vsel %vm5234_vm13, %v5164_v9, %v1187_v25  ;;  %v4145_v26 = vld [vmem:[%s6024_s2 + $0x98] sm:$0xff] }
 0xdf0   :  { %v1204_v55 = vmul.f32 %v1202_v45, %v1191_v41  ;;  %1290 = vmatpush.bf16.msra.mxu1 %v4145_v26 }
 0xdf1   :  { %v1195_v43 = vmul.f32 0.5, %v1194_v33  ;;  %v4350_v33 = vld [vmem:[%s6025_s3 + $0x148] ss:$0 sm:$0xff] }
 0xdf2   :  { %v1207_v2 = vmul.f32 %v1206_v53, %v1204_v55 }
 0xdf3   :  { %v1196_v49 = vsub.f32 1.5, %v1195_v43  ;;  %v4351_v43 = vld [vmem:[%s6025_s3 + $0x168] ss:$0 sm:$0xff] }
 0xdf4   :  { %v5281_v9 = vadd.f32 %v1209_v60, %v1207_v2  ;;  %1291 = vmatpush.bf16.msra.mxu1 %v4144_v28 }
 0xdf5   :  { %v1197_v57 = vmul.f32 %v4444_v21, %v1196_v49 }
 0xdf7   :  { %v1201_v32 = vsel %vm1200_vm14, %v4444_v21, %v1197_v57  ;;  %v1484_v21 = vld [vmem:[%s6025_s3 + $0x38] sm:$0xff] }
 0xdf8   :  { %v1205_v50 = vmul.f32 %v1203_v59, %v1201_v32  ;;  %v5300_v24 = vadd.f32 %v1484_v21, %v1482_v19  ;;  %1292 = vmatpush.bf16.msra.mxu1 %v4143_v29  ;;  %v1659_v29 = vld [vmem:[%s6025_s3 + $0x98] sm:$0xff] }
 0xdfa   :  { %v1208_v3 = vmul.f32 %v1206_v53, %v1205_v50  ;;  %v1487_v25 = vpack.c.bf16 %v5300_v24, %v5298_v23 }
 0xdfc   :  { %v5283_v10 = vadd.f32 %v1209_v60, %v1208_v3  ;;  %1293 = vmatpush.bf16.msra.mxu1 %v4142_v30  ;;  %v5350_v3 = vld [vmem:[%s6025_s3 + $0x150] ss:$0 sm:$0xff] }
 0xdfe   :  { %v1212_v12 = vpack.c.bf16 %v5283_v10, %v5281_v9 }
 0xe00   :  { %3894 = vmatmul.msk.bf16.vlgmr.msrb.gmra.mxu2 %vm164_vm7, %v1212_v12 }
 0xe10   :  { %3951 = vmatmul.msk.bf16.vlgmr.msra.gmra.mxu2 %vm164_vm7, %v1487_v25 }
 0xe83   :  { %v1243_v31 = vpop.f32.mrf.mxu2 }
 0xe84   :  { %v1244_v15 = vadd.f32 %v4350_v33, %v1243_v31 }
 0xe86   :  { %v1248_v39 = vmax.f32 %v1244_v15, 0.0 }
 0xe8b   :  { %v1245_v36 = vpop.f32.mrf.mxu2 }
 0xe8c   :  { %v1246_v38 = vadd.f32 %v4350_v33, %v1245_v36  ;;  %v1660_v36 = vld [vmem:[%s6025_s3 + $0xa0] sm:$0xff] }
 0xe8e   :  { %v1249_v40 = vmax.f32 %v1246_v38, 0.0 }
 0xe90   :  { %v1250_v41 = vpack.c.bf16 %v1249_v40, %v1248_v39 }
 0xe92   :  { %3911 = vmatmul.msk.bf16.vlgmr.msra.gmra.mxu1 %vm332_vm9, %v1250_v41 }
 0xe93   :  { %v1518_v34 = vpop.f32.mrf.mxu2 }
 0xe94   :  { %v1519_v35 = vadd.f32 %v4351_v43, %v1518_v34 }
 0xe96   :  { %1531 = vrot.lane.b32.xlu0 %v1519_v35, %s4680_s14  ;;  %1525 = vrot.lane.b32.xlu1 %v1519_v35, %s4681_s15 }
 0xe9b   :  { %v1520_v44 = vpop.f32.mrf.mxu2 }
 0xe9c   :  { %v1521_v45 = vadd.f32 %v4351_v43, %v1520_v44  ;;  %v1661_v43 = vld [vmem:[%s6025_s3 + $0xa8] sm:$0xff] }
 0xe9e   :  { %1527 = vrot.lane.b32.xlu2 %v1521_v45, %s4681_s15  ;;  %1533 = vrot.lane.b32.xlu0 %v1521_v45, %s4680_s14  ;;  %v1543_v46 = vpack.c.bf16 %v1521_v45, %v1519_v35 }
 0xe9f   :  { %1537 = vrot.lane.b32.xlu1 %v1519_v35, %s4679_s12 }
 0xea6   :  { %1539 = vrot.lane.b32.xlu2 %v1521_v45, %s4679_s12  ;;  %1547 = vrot.lane.b32.xlu0 %v1519_v35, %s4682_s17 }
 0xea7   :  { %1549 = vrot.lane.b32.xlu1 %v1521_v45, %s4682_s17 }
 0xef8   :  { %v1528_v48 = vpop.permute.xlu2 %1527 }
 0xef9   :  { %1553 = vrot.lane.b32.xlu0 %v1528_v48, %s4682_s17 }
 0xf00   :  { %v1540_v22 = vpop.permute.xlu2 %1539 }
 0xf08   :  { %v1532_v49 = vpop.permute.xlu0 %1531  ;;  %v1526_v53 = vpop.permute.xlu1 %1525 }
 0xf09   :  { %v5333_v55 = vpack.c.bf16 %v1528_v48, %v1526_v53  ;;  %1555 = vrot.lane.b32.xlu1 %v1532_v49, %s4682_s17  ;;  %1551 = vrot.lane.b32.xlu2 %v1526_v53, %s4682_s17 }
 0xf0f   :  { %v1295_v37 = vpop.f32.mrf.mxu1 }
 0xf10   :  { %v1534_v56 = vpop.permute.xlu0 %1533  ;;  %v1300_v27 = vadd.f32 %v1295_v37, %v5281_v9  ;;  %v1656_v9 = vld [vmem:[%s6025_s3 + $0x80] sm:$0xff] }
 0xf11   :  { %v1538_v17 = vpop.permute.xlu1 %1537  ;;  %1561 = vrot.lane.b32.xlu1 %v1540_v22, %s4682_s17  ;;  %1557 = vrot.lane.b32.xlu2 %v1534_v56, %s4682_s17  ;;  %v5352_v42 = vpack.c.bf16 %v1534_v56, %v1532_v49  ;;  %v1663_v56 = vld [vmem:[%s6025_s3 + $0xb8] sm:$0xff] }
 0xf12   :  { %1559 = vrot.lane.b32.xlu0 %v1538_v17, %s4682_s17  ;;  %v1546_v52 = vpack.c.bf16 %v1540_v22, %v1538_v17  ;;  %v5357_v5 = vadd.f32 %v5350_v3, %v1300_v27 }
 0xf14   :  { %v1315_v51 = vmul.f32 %v5357_v5, %v5357_v5 }
 0xf16   :  { %v1317_v6 = vsel %vm164_vm7, %v1315_v51, 0.0 }
 0xf17   :  { %v5363_v7 = vpop.f32.mrf.mxu1 }
 0xf18   :  { %v1548_v57 = vpop.permute.xlu0 %1547 }
 0xf19   :  { %v1550_v58 = vpop.permute.xlu1 %1549 }
 0xf1a   :  { %1774 = vrot.lane.b32.xlu0 %v1546_v52, %s6044_s23 }
 0xf37   :  { %1571 = vxpose.xlu2.b32.start [1/8] (short) (narrow) %v1548_v57, 8 }
 0xf3f   :  { %1572 = vxpose.xlu2.b32.cont [2/8] (short) (narrow) %v1550_v58, 8 }
 0xf63   :  { %v1552_v0 = vpop.permute.xlu2 %1551 }
 0xf64   :  { %1573 = vxpose.xlu2.b32.cont [3/8] (short) (narrow) %v1552_v0, 8 }
 0xf6b   :  { %v1554_v59 = vpop.permute.xlu0 %1553  ;;  %v1558_v32 = vpop.permute.xlu2 %1557 }
 0xf6c   :  { %1574 = vxpose.xlu2.b32.cont [4/8] (short) (narrow) %v1554_v59, 8 }
 0xf7b   :  { %v1556_v60 = vpop.permute.xlu1 %1555 }
 0xf7c   :  { %1575 = vxpose.xlu2.b32.cont [5/8] (short) (narrow) %v1556_v60, 8 }
 0xf83   :  { %v1562_v1 = vpop.permute.xlu1 %1561 }
 0xf84   :  { %v1560_v61 = vpop.permute.xlu0 %1559  ;;  %1576 = vxpose.xlu2.b32.cont [6/8] (short) (narrow) %v1558_v32, 8 }
 0xf8c   :  { %v1775_v62 = vpop.permute.xlu0 %1774  ;;  %1577 = vxpose.xlu2.b32.cont [7/8] (short) (narrow) %v1560_v61, 8 }
 0xf8d   :  { %1796 = vmatpush.bf16.msrb.mxu3 %v1775_v62 }
 0xf94   :  { %1578 = vxpose.xlu2.b32.end [8/8] (short) (narrow) %v1562_v1, 8 }
 0xff5   :  { %v1587_v63 = vpop.trf.xlu2 }
 0xff6   :  { %v1603_v50 = vpack.c.bf16 %v1587_v63, %v1587_v63 }
 0xff8   :  { %v1617_v2 = vsel %vm124_vm3, %v1603_v50, 0 }
 0xff9   :  { %1626 = vmatpush.bf16.msrb.mxu1 %v1617_v2 }
 0xffc   :  { %3952 = vmatmul.msk.bf16.vlgmr.msrb.gmra.mxu1 %vm263_vm8, %v1543_v46 }
 0xffd   :  { %1768 = vrot.lane.b32.xlu2 %v1543_v46, %s6044_s23  ;;  %v1662_v46 = vld [vmem:[%s6025_s3 + $0xb0] sm:$0xff] }
0x100c   :  { %3953 = vmatmul.msk.bf16.gmra.mxu1 %vm263_vm8, %v5333_v55 }
0x101c   :  { %3954 = vmatmul.msk.bf16.gmra.mxu1 %vm263_vm8, %v5352_v42 }
0x1026   :  { %1318 = vadd.xlane.f32.xlu2 %v1317_v6 }
0x102c   :  { %3955 = vmatmul.msk.bf16.gmra.mxu1 %vm263_vm8, %v1546_v52 }
0x1079   :  { %v1628_v47 = vpop.f32.mrf.mxu1 }
0x107a   :  { %v1648_v54 = vmul.f32 0.35355338, %v1628_v47 }
0x107c   :  { %v1664_v11 = vadd.f32 %v1656_v9, %v1648_v54 }
0x107e   :  { %v1672_v12 = vsel %vm332_vm9, %v1664_v11, -inf }
0x107f   :  { %1673 = vmax.xlane.f32.xlu0 %v1672_v12 }
0x1081   :  { %v1630_v13 = vpop.f32.mrf.mxu1 }
0x1082   :  { %v1649_v14 = vmul.f32 0.35355338, %v1630_v13 }
0x1084   :  { %v1665_v18 = vadd.f32 %v1657_v8, %v1649_v14 }
0x1086   :  { %v1675_v16 = vsel %vm332_vm9, %v1665_v18, -inf }
0x1087   :  { %1676 = vmax.xlane.f32.xlu1 %v1675_v16 }
0x1089   :  { %v1633_v19 = vpop.f32.mrf.mxu1 }
0x108a   :  { %v1650_v21 = vmul.f32 0.35355338, %v1633_v19 }
0x108c   :  { %v1666_v25 = vadd.f32 %v1658_v20, %v1650_v21 }
0x108e   :  { %v1678_v26 = vsel %vm332_vm9, %v1666_v25, -inf }
0x108f   :  { %1679 = vmax.xlane.f32.xlu0 %v1678_v26 }
0x1091   :  { %v1635_v28 = vpop.f32.mrf.mxu1 }
0x1092   :  { %v1651_v30 = vmul.f32 0.35355338, %v1635_v28 }
0x1094   :  { %v5380_v31 = vadd.f32 %v1659_v29, %v1651_v30 }
0x1096   :  { %v1681_v33 = vsel %vm332_vm9, %v5380_v31, -inf }
0x1097   :  { %1682 = vmax.xlane.f32.xlu1 %v1681_v33 }
0x1099   :  { %v1638_v15 = vpop.f32.mrf.mxu1 }
0x109a   :  { %v1652_v38 = vmul.f32 0.35355338, %v1638_v15 }
0x109c   :  { %v1668_v39 = vadd.f32 %v1660_v36, %v1652_v38 }
0x109e   :  { %v1684_v40 = vsel %vm332_vm9, %v1668_v39, -inf }
0x109f   :  { %1685 = vmax.xlane.f32.xlu0 %v1684_v40 }
0x10a1   :  { %v1640_v41 = vpop.f32.mrf.mxu1 }
0x10a2   :  { %v1653_v34 = vmul.f32 0.35355338, %v1640_v41 }
0x10a4   :  { %v1669_v35 = vadd.f32 %v1661_v43, %v1653_v34 }
0x10a6   :  { %v1687_v44 = vsel %vm332_vm9, %v1669_v35, -inf }
0x10a7   :  { %1688 = vmax.xlane.f32.xlu1 %v1687_v44 }
0x10a9   :  { %v1643_v45 = vpop.f32.mrf.mxu1 }
0x10aa   :  { %v1654_v48 = vmul.f32 0.35355338, %v1643_v45  ;;  %v1769_v45 = vpop.permute.xlu2 %1768 }
0x10ac   :  { %v1670_v49 = vadd.f32 %v1662_v46, %v1654_v48 }
0x10ae   :  { %v1690_v53 = vsel %vm332_vm9, %v1670_v49, -inf }
0x10af   :  { %1691 = vmax.xlane.f32.xlu0 %v1690_v53 }
0x10b1   :  { %v1645_v22 = vpop.f32.mrf.mxu1 }
0x10b2   :  { %v1655_v17 = vmul.f32 0.35355338, %v1645_v22 }
0x10b4   :  { %v1671_v52 = vadd.f32 %v1663_v56, %v1655_v17 }
0x10b6   :  { %v1693_v57 = vsel %vm332_vm9, %v1671_v52, -inf }
0x10b7   :  { %1694 = vmax.xlane.f32.xlu1 %v1693_v57 }
0x10c3   :  { %1770 = vrot.lane.b32.xlu0 %v5333_v55, %s6044_s23 }
0x10f2   :  { %v1674_v58 = vpop.xlane.xlu0 %1673 }
0x10f3   :  { %v1696_v0 = vsub.f32 %v1664_v11, %v1674_v58 }
0x10f5   :  { %v1704_v59 = vmul.f32 1.442695, %v1696_v0 }
0x10f7   :  { %4445 = vpow2.f32 %v1704_v59 }
0x10fa   :  { %v1677_v60 = vpop.xlane.xlu1 %1676 }
0x10fb   :  { %v1697_v32 = vsub.f32 %v1665_v18, %v1677_v60 }
0x10fd   :  { %v5402_v61 = vpop.eup %4445  ;;  %v1706_v62 = vmul.f32 1.442695, %v1697_v32 }
0x10fe   :  { %v1720_v1 = vsel %vm332_vm9, %v5402_v61, 0.0 }
0x10ff   :  { %4447 = vpow2.f32 %v1706_v62  ;;  %1721 = vadd.xlane.f32.xlu1 %v1720_v1 }
0x1102   :  { %v1680_v63 = vpop.xlane.xlu0 %1679 }
0x1103   :  { %v1698_v50 = vsub.f32 %v1666_v25, %v1680_v63 }
0x1105   :  { %v4448_v2 = vpop.eup %4447  ;;  %v1708_v37 = vmul.f32 1.442695, %v1698_v50 }
0x1106   :  { %v1723_v55 = vsel %vm332_vm9, %v4448_v2, 0.0 }
0x1107   :  { %4449 = vpow2.f32 %v1708_v37  ;;  %1724 = vadd.xlane.f32.xlu1 %v1723_v55 }
0x110a   :  { %v1683_v6 = vpop.xlane.xlu1 %1682 }
0x110b   :  { %v1699_v28 = vsub.f32 %v5380_v31, %v1683_v6 }
0x110d   :  { %v4450_v27 = vpop.eup %4449  ;;  %v1710_v29 = vmul.f32 1.442695, %v1699_v28 }
0x110e   :  { %v1726_v51 = vsel %vm332_vm9, %v4450_v27, 0.0 }
0x110f   :  { %1727 = vadd.xlane.f32.xlu0 %v1726_v51 }
0x1112   :  { %v1686_v47 = vpop.xlane.xlu0 %1685 }
0x1113   :  { %v1700_v9 = vsub.f32 %v1668_v39, %v1686_v47 }
0x1115   :  { %v1712_v54 = vmul.f32 1.442695, %v1700_v9 }
0x1117   :  { %4451 = vpow2.f32 %v1712_v54 }
0x111a   :  { %v1689_v11 = vpop.xlane.xlu1 %1688 }
0x111b   :  { %v1701_v12 = vsub.f32 %v1669_v35, %v1689_v11 }
0x111d   :  { %v4452_v13 = vpop.eup %4451  ;;  %v1714_v8 = vmul.f32 1.442695, %v1701_v12 }
0x111e   :  { %v1732_v14 = vsel %vm332_vm9, %v4452_v13, 0.0 }
0x111f   :  { %4453 = vpow2.f32 %v1714_v8  ;;  %1733 = vadd.xlane.f32.xlu0 %v1732_v14 }
0x1120   :  { %1772 = vrot.lane.b32.xlu1 %v5352_v42, %s6044_s23 }
0x1122   :  { %v1692_v30 = vpop.xlane.xlu0 %1691 }
0x1123   :  { %v1702_v33 = vsub.f32 %v1670_v49, %v1692_v30 }
0x1125   :  { %v4454_v18 = vpop.eup %4453  ;;  %v1716_v15 = vmul.f32 1.442695, %v1702_v33 }
0x1126   :  { %v1735_v16 = vsel %vm332_vm9, %v4454_v18, 0.0 }
0x1127   :  { %1736 = vadd.xlane.f32.xlu0 %v1735_v16  ;;  %v1301_v16 = vadd.f32 %v5363_v7, %v5283_v10  ;;  %v4149_v10 = vld [vmem:[%s6024_s2 + $0xb8] sm:$0xff] }
0x1128   :  { %1879 = vmatpush.bf16.msrb.mxu2 %v4149_v10 }
0x112a   :  { %v1695_v19 = vpop.xlane.xlu1 %1694 }
0x112b   :  { %v1703_v20 = vsub.f32 %v1671_v52, %v1695_v19  ;;  %v5427_v19 = vadd.f32 %v5350_v3, %v1301_v16  ;;  %v4148_v3 = vld [vmem:[%s6024_s2 + $0xb0] sm:$0xff] }
0x112c   :  { %1880 = vmatpush.bf16.msrb.mxu2 %v4148_v3 }
0x112d   :  { %v1718_v21 = vmul.f32 1.442695, %v1703_v20  ;;  %v1307_v20 = vsel %vm164_vm7, %v5357_v5, 0.0 }
0x112f   :  { %4455 = vpow2.f32 %v1718_v21  ;;  %v1316_v21 = vmul.f32 %v5427_v19, %v5427_v19 }
0x1130   :  { %4457 = vpow2.f32 %v1710_v29 }
0x1131   :  { %4459 = vpow2.f32 %v1716_v15 }
0x1135   :  { %v4456_v25 = vpop.eup %4455  ;;  %v1771_v34 = vpop.permute.xlu0 %1770 }
0x1136   :  { %v1741_v26 = vsel %vm332_vm9, %v4456_v25, 0.0  ;;  %v4458_v42 = vpop.eup %4457 }
0x1137   :  { %1742 = vadd.xlane.f32.xlu0 %v1741_v26  ;;  %v1729_v36 = vsel %vm332_vm9, %v4458_v42, 0.0  ;;  %v4460_v38 = vpop.eup %4459  ;;  %v1310_v26 = vsel %vm164_vm7, %v5427_v19, 0.0 }
0x1138   :  { %v1738_v39 = vsel %vm332_vm9, %v4460_v38, 0.0 }
0x114a   :  { %1730 = vadd.xlane.f32.xlu1 %v1729_v36 }
0x1152   :  { %1739 = vadd.xlane.f32.xlu1 %v1738_v39 }
0x1172   :  { %v1722_v40 = vpop.xlane.xlu1 %1721 }
0x117a   :  { %v1725_v41 = vpop.xlane.xlu1 %1724 }
0x117b   :  { %4461 = vrcp.f32 %v1725_v41 }
0x117c   :  { %4463 = vrcp.f32 %v1722_v40 }
0x1181   :  { %v4462_v31 = vpop.eup %4461 }
0x1182   :  { %v4464_v35 = vpop.eup %4463  ;;  %v1753_v44 = vmul.f32 %v4462_v31, %v4448_v2  ;;  %v1728_v49 = vpop.xlane.xlu0 %1727 }
0x1183   :  { %v1752_v46 = vmul.f32 %v4464_v35, %v5402_v61  ;;  %4465 = vrcp.f32 %v1728_v49 }
0x1185   :  { %v1760_v48 = vpack.c.bf16 %v1753_v44, %v1752_v46  ;;  %v1319_v46 = vpop.xlane.xlu2 %1318 }
0x1186   :  { %v1323_v49 = vmul.f32 %v1319_v46, %v4957_v4 }
0x1189   :  { %v4466_v56 = vpop.eup %4465 }
0x118a   :  { %v1754_v52 = vmul.f32 %v4466_v56, %v4450_v27  ;;  %v4153_v56 = vld [vmem:[%s6024_s2 + $0xd8] sm:$0xff] }
0x118b   :  { %2008 = vmatpush.bf16.msra.mxu2 %v4153_v56 }
0x1192   :  { %v1773_v43 = vpop.permute.xlu1 %1772  ;;  %v1734_v53 = vpop.xlane.xlu0 %1733 }
0x1193   :  { %1797 = vmatpush.bf16.msrb.mxu3 %v1773_v43 }
0x1197   :  { %1798 = vmatpush.bf16.msrb.mxu3 %v1771_v34 }
0x119a   :  { %v1737_v58 = vpop.xlane.xlu0 %1736 }
0x119b   :  { %1799 = vmatpush.bf16.msrb.mxu3 %v1769_v45 }
0x119e   :  { %3956 = vmatmul.msk.bf16.vlgmr.msrb.gmra.mxu3 %vm332_vm9, %v1760_v48 }
0x11aa   :  { %v1743_v63 = vpop.xlane.xlu0 %1742 }
0x11bd   :  { %v1731_v22 = vpop.xlane.xlu1 %1730 }
0x11be   :  { %4467 = vrcp.f32 %v1731_v22 }
0x11bf   :  { %4469 = vrcp.f32 %v1737_v58 }
0x11c0   :  { %4471 = vrcp.f32 %v1734_v53 }
0x11c4   :  { %v4468_v17 = vpop.eup %4467 }
0x11c5   :  { %v1755_v57 = vmul.f32 %v4468_v17, %v4458_v42  ;;  %v4470_v59 = vpop.eup %4469  ;;  %v1740_v62 = vpop.xlane.xlu1 %1739 }
0x11c6   :  { %v4472_v60 = vpop.eup %4471  ;;  %v1757_v32 = vmul.f32 %v4470_v59, %v4454_v18  ;;  %4473 = vrcp.f32 %v1740_v62 }
0x11c7   :  { %v1761_v0 = vpack.c.bf16 %v1755_v57, %v1754_v52  ;;  %v1756_v61 = vmul.f32 %v4472_v60, %v4452_v13  ;;  %4475 = vrcp.f32 %v1743_v63  ;;  %v4152_v52 = vld [vmem:[%s6024_s2 + $0xd0] sm:$0xff] }
0x11c8   :  { %2009 = vmatpush.bf16.msra.mxu2 %v4152_v52 }
0x11c9   :  { %3957 = vmatmul.msk.bf16.gmra.mxu3 %vm332_vm9, %v1761_v0  ;;  %v1762_v1 = vpack.c.bf16 %v1757_v32, %v1756_v61 }
0x11cc   :  { %v4474_v50 = vpop.eup %4473 }
0x11cd   :  { %v4476_v2 = vpop.eup %4475  ;;  %v1758_v37 = vmul.f32 %v4474_v50, %v4460_v38 }
0x11ce   :  { %v1759_v55 = vmul.f32 %v4476_v2, %v4456_v25  ;;  %v1320_v25 = vsel %vm164_vm7, %v1316_v21, 0.0 }
0x11d0   :  { %v1763_v27 = vpack.c.bf16 %v1759_v55, %v1758_v37 }
0x11d9   :  { %3958 = vmatmul.msk.bf16.gmra.mxu3 %vm332_vm9, %v1762_v1 }
0x11e9   :  { %3959 = vmatmul.msk.bf16.gmra.mxu3 %vm332_vm9, %v1763_v27 }
0x1221   :  { %v1801_v51 = vpop.f32.mrf.mxu3 }
0x1229   :  { %v1803_v6 = vpop.f32.mrf.mxu3 }
0x124c   :  { %v1806_v47 = vpop.f32.mrf.mxu3 }
0x1254   :  { %v1808_v9 = vpop.f32.mrf.mxu3 }
0x1255   :  { %v4224_v54 = vpack.i.bf16 %v1808_v9, %v1806_v47 }
0x1257   :  { %4225 = vrot.lane.b32.xlu1 %v4224_v54, %s6045_s16 }
0x125c   :  { %v1811_v11 = vpop.f32.mrf.mxu3 }
0x1264   :  { %v1813_v12 = vpop.f32.mrf.mxu3 }
0x1265   :  { %v4229_v13 = vpack.i.bf16 %v1813_v12, %v1811_v11 }
0x1267   :  { %4230 = vrot.lane.b32.xlu0 %v4229_v13, %s6046_s26 }
0x126c   :  { %v1816_v8 = vpop.f32.mrf.mxu3 }
0x1274   :  { %v1818_v14 = vpop.f32.mrf.mxu3 }
0x1275   :  { %v4234_v18 = vpack.i.bf16 %v1818_v14, %v1816_v8 }
0x1277   :  { %4235 = vrot.lane.b32.xlu0 %v4234_v18, %s6047_s29 }
0x1281   :  { %1308 = vadd.xlane.f32.xlu1 %v1307_v20 }
0x1289   :  { %1321 = vadd.xlane.f32.xlu1 %v1320_v25 }
0x12a1   :  { %1311 = vadd.xlane.f32.xlu0 %v1310_v26 }
0x12c9   :  { %v4226_v28 = vpop.permute.xlu1 %4225 }
0x12ca   :  { %v4228_v29 = vunpack.i.h.bf16 %v4226_v28  ;;  %v4227_v30 = vunpack.i.l.bf16 %v4226_v28 }
0x12cc   :  { %v1846_v36 = vsel %vm263_vm8, %v1803_v6, %v4228_v29  ;;  %v1845_v38 = vsel %vm263_vm8, %v1801_v51, %v4227_v30  ;;  %v1306_v51 = vld [vmem:[%s6025_s3 + $0x160] sm:$0x3] }
0x12cd   :  { %v1355_v11 = vperm.slane %v1306_v51, 0  ;;  %v1358_v18 = vperm.slane %v1306_v51, 1 }
0x12d9   :  { %v4231_v7 = vpop.permute.xlu0 %4230 }
0x12da   :  { %v4233_v33 = vunpack.i.h.bf16 %v4231_v7  ;;  %v4232_v15 = vunpack.i.l.bf16 %v4231_v7 }
0x12dc   :  { %v1847_v41 = vsel %vm508_vm10, %v1845_v38, %v4232_v15  ;;  %v1848_v43 = vsel %vm508_vm10, %v1846_v36, %v4233_v33 }
0x12e9   :  { %v4236_v42 = vpop.permute.xlu0 %4235 }
0x12ea   :  { %v4238_v39 = vunpack.i.h.bf16 %v4236_v42  ;;  %v4237_v40 = vunpack.i.l.bf16 %v4236_v42 }
0x12ec   :  { %v1849_v31 = vsel %vm511_vm11, %v1847_v41, %v4237_v40  ;;  %v1850_v34 = vsel %vm511_vm11, %v1848_v43, %v4238_v39  ;;  %v4354_v40 = vld [vmem:[%s6025_s3 + $0x180] ss:$0 sm:$0xff] }
0x12ed   :  { %v1851_v35 = vpack.c.bf16 %v1850_v34, %v1849_v31 }
0x12ef   :  { %3968 = vmatmul.msk.bf16.vlgmr.msrb.gmra.mxu2 %vm164_vm7, %v1851_v35 }
0x12f4   :  { %v1309_v44 = vpop.xlane.xlu1 %1308 }
0x12f5   :  { %v1313_v45 = vmul.f32 %v1309_v44, %v4957_v4 }
0x12f7   :  { %v1325_v48 = vmul.f32 %v1313_v45, %v1313_v45  ;;  %v1351_v9 = vsub.f32 %v5357_v5, %v1313_v45  ;;  %v4353_v5 = vld [vmem:[%s6025_s3 + $0x170] ss:$0 sm:$0xff] }
0x12f9   :  { %v1327_v53 = vsub.f32 %v1323_v49, %v1325_v48  ;;  %v4151_v49 = vld [vmem:[%s6024_s2 + $0xc8] sm:$0xff] }
0x12fa   :  { %1972 = vmatpush.bf16.msra.mxu0 %v4151_v49 }
0x12fb   :  { %v1329_v22 = vadd.f32 1e-05, %v1327_v53 }
0x12fc   :  { %v1322_v58 = vpop.xlane.xlu1 %1321 }
0x12fd   :  { %4477 = vrsqrt.f32 %v1329_v22  ;;  %v1324_v60 = vmul.f32 %v1322_v58, %v4957_v4  ;;  %vm1337_vm6 = vweird.f32 %v1329_v22 }
0x1303   :  { %v4478_v17 = vpop.eup %4477 }
0x1304   :  { %v1332_v57 = vmul.f32 %v4478_v17, %v1329_v22  ;;  %vm1338_vm4 = vweird.f32 %v4478_v17  ;;  %v4150_v22 = vld [vmem:[%s6024_s2 + $0xc0] sm:$0xff] }
0x1305   :  { %vm1339_vm13 = vmor %vm1337_vm6, %vm1338_vm4  ;;  %1973 = vmatpush.bf16.msra.mxu0 %v4150_v22 }
0x1306   :  { %v1333_v61 = vmul.f32 %v4478_v17, %v1332_v57 }
0x1308   :  { %v1334_v63 = vmul.f32 0.5, %v1333_v61 }
0x130a   :  { %v1335_v50 = vsub.f32 1.5, %v1334_v63 }
0x130c   :  { %v1336_v37 = vmul.f32 %v4478_v17, %v1335_v50 }
0x130e   :  { %v1340_v6 = vsel %vm1339_vm13, %v4478_v17, %v1336_v37 }
0x130f   :  { %v1353_v12 = vmul.f32 %v1351_v9, %v1340_v6 }
0x1311   :  { %v1356_v16 = vmul.f32 %v1355_v11, %v1353_v12 }
0x1313   :  { %v1359_v25 = vadd.f32 %v1358_v18, %v1356_v16 }
0x1314   :  { %v1312_v0 = vpop.xlane.xlu0 %1311 }
0x1315   :  { %v1314_v59 = vmul.f32 %v1312_v0, %v4957_v4 }
0x1317   :  { %v1326_v32 = vmul.f32 %v1314_v59, %v1314_v59  ;;  %v1352_v8 = vsub.f32 %v5427_v19, %v1314_v59 }
0x1319   :  { %v1328_v62 = vsub.f32 %v1324_v60, %v1326_v32 }
0x131b   :  { %v1330_v1 = vadd.f32 1e-05, %v1328_v62 }
0x131d   :  { %4479 = vrsqrt.f32 %v1330_v1  ;;  %vm1347_vm1 = vweird.f32 %v1330_v1 }
0x1323   :  { %v4480_v2 = vpop.eup %4479 }
0x1324   :  { %v1342_v55 = vmul.f32 %v4480_v2, %v1330_v1  ;;  %vm1348_vm0 = vweird.f32 %v4480_v2 }
0x1325   :  { %vm1349_vm14 = vmor %vm1347_vm1, %vm1348_vm0 }
0x1326   :  { %v1343_v27 = vmul.f32 %v4480_v2, %v1342_v55 }
0x1328   :  { %v1344_v47 = vmul.f32 0.5, %v1343_v27  ;;  %v1889_v27 = vld [vmem:[%s6025_s3 + $0x1a0] sm:$0x3] }
0x1329   :  { %v1941_v16 = vperm.slane %v1889_v27, 1 }
0x132a   :  { %v1345_v54 = vsub.f32 1.5, %v1344_v47 }
0x132c   :  { %v1346_v13 = vmul.f32 %v4480_v2, %v1345_v54  ;;  %v1938_v54 = vperm.slane %v1889_v27, 0 }
0x132e   :  { %v1350_v14 = vsel %vm1349_vm14, %v4480_v2, %v1346_v13 }
0x132f   :  { %v1354_v20 = vmul.f32 %v1352_v8, %v1350_v14 }
0x1331   :  { %v1357_v21 = vmul.f32 %v1355_v11, %v1354_v20 }
0x1333   :  { %v1360_v26 = vadd.f32 %v1358_v18, %v1357_v21 }
0x1335   :  { %v5464_v10 = vpack.c.bf16 %v1360_v26, %v1359_v25 }
0x1337   :  { %3986 = vmatmul.msk.bf16.vlgmr.msra.gmra.mxu2 %vm164_vm7, %v5464_v10 }
0x1372   :  { %v1882_v3 = vpop.f32.mrf.mxu2 }
0x1373   :  { %v1883_v7 = vadd.f32 %v4353_v5, %v1882_v3 }
0x1375   :  { %v5472_v19 = vadd.f32 %v1883_v7, %v5298_v23 }
0x1377   :  { %v1890_v28 = vsel %vm164_vm7, %v5472_v19, 0.0  ;;  %v1898_v29 = vmul.f32 %v5472_v19, %v5472_v19 }
0x1378   :  { %1891 = vadd.xlane.f32.xlu0 %v1890_v28 }
0x1379   :  { %v1900_v30 = vsel %vm164_vm7, %v1898_v29, 0.0 }
0x137a   :  { %v1884_v33 = vpop.f32.mrf.mxu2  ;;  %1901 = vadd.xlane.f32.xlu2 %v1900_v30 }
0x137b   :  { %v1885_v15 = vadd.f32 %v4353_v5, %v1884_v33 }
0x137d   :  { %v5480_v42 = vadd.f32 %v1885_v15, %v5300_v24 }
0x137f   :  { %v1893_v36 = vsel %vm164_vm7, %v5480_v42, 0.0  ;;  %v1899_v23 = vmul.f32 %v5480_v42, %v5480_v42 }
0x1380   :  { %1894 = vadd.xlane.f32.xlu1 %v1893_v36 }
0x1381   :  { %v1903_v38 = vsel %vm164_vm7, %v1899_v23, 0.0 }
0x1382   :  { %1904 = vadd.xlane.f32.xlu0 %v1903_v38 }
0x13ba   :  { %v2011_v39 = vpop.f32.mrf.mxu2 }
0x13bb   :  { %v5490_v43 = vadd.f32 %v4354_v40, %v2011_v39  ;;  %v4355_v39 = vld [vmem:[%s6025_s3 + $0x178] ss:$0 sm:$0xff] }
0x13c2   :  { %v2013_v41 = vpop.f32.mrf.mxu2 }
0x13c3   :  { %v5492_v24 = vadd.f32 %v4354_v40, %v2013_v41 }
0x13c5   :  { %v4249_v31 = vpack.i.bf16 %v5492_v24, %v5490_v43  ;;  %v2253_v34 = vpack.c.bf16 %v5492_v24, %v5490_v43 }
0x13c7   :  { %4250 = vrot.lane.b32.xlu0 %v4249_v31, %s4679_s12  ;;  %4245 = vrot.lane.b32.xlu2 %v4249_v31, %s4680_s14 }
0x13c8   :  { %4240 = vrot.lane.b32.xlu1 %v4249_v31, %s4681_s15 }
0x13eb   :  { %v1892_v35 = vpop.xlane.xlu0 %1891 }
0x13ec   :  { %v1896_v44 = vmul.f32 %v1892_v35, %v4957_v4 }
0x13ed   :  { %v1902_v45 = vpop.xlane.xlu2 %1901 }
0x13ee   :  { %v1908_v46 = vmul.f32 %v1896_v44, %v1896_v44  ;;  %v1906_v48 = vmul.f32 %v1902_v45, %v4957_v4  ;;  %v1934_v47 = vsub.f32 %v5472_v19, %v1896_v44 }
0x13f0   :  { %v1910_v53 = vsub.f32 %v1906_v48, %v1908_v46 }
0x13f2   :  { %v1912_v56 = vadd.f32 1e-05, %v1910_v53 }
0x13f3   :  { %v1895_v17 = vpop.xlane.xlu1 %1894 }
0x13f4   :  { %4481 = vrsqrt.f32 %v1912_v56  ;;  %v1897_v52 = vmul.f32 %v1895_v17, %v4957_v4  ;;  %vm1920_vm15 = vweird.f32 %v1912_v56 }
0x13f5   :  { %v1905_v57 = vpop.xlane.xlu0 %1904 }
0x13f6   :  { %v1909_v58 = vmul.f32 %v1897_v52, %v1897_v52  ;;  %v1907_v0 = vmul.f32 %v1905_v57, %v4957_v4  ;;  %v1935_v13 = vsub.f32 %v5480_v42, %v1897_v52 }
0x13f8   :  { %v1911_v59 = vsub.f32 %v1907_v0, %v1909_v58 }
0x13fa   :  { %v4482_v60 = vpop.eup %4481  ;;  %v1913_v32 = vadd.f32 1e-05, %v1911_v59 }
0x13fb   :  { %v1915_v61 = vmul.f32 %v4482_v60, %v1912_v56  ;;  %vm1921_vm2 = vweird.f32 %v4482_v60 }
0x13fc   :  { %4483 = vrsqrt.f32 %v1913_v32  ;;  %vm1922_vm12 = vmor %vm1920_vm15, %vm1921_vm2  ;;  %vm1930_vm4 = vweird.f32 %v1913_v32 }
0x13fd   :  { %v1916_v62 = vmul.f32 %v4482_v60, %v1915_v61  ;;  %2060 = vxpose.xlu1.b32.start [1/8] (short) (narrow) %v5490_v43, 8  ;;  %v2152_v43 = vld [vmem:[%s6025_s3 + $0xf8] sm:$0xff] }
0x13ff   :  { %v1917_v1 = vmul.f32 0.5, %v1916_v62 }
0x1401   :  { %v1918_v63 = vsub.f32 1.5, %v1917_v1  ;;  %v2145_v1 = vld [vmem:[%s6025_s3 + $0xc0] sm:$0xff] }
0x1402   :  { %v4484_v50 = vpop.eup %4483 }
0x1403   :  { %v1919_v2 = vmul.f32 %v4482_v60, %v1918_v63  ;;  %v1925_v37 = vmul.f32 %v4484_v50, %v1913_v32  ;;  %vm1931_vm5 = vweird.f32 %v4484_v50 }
0x1404   :  { %vm1932_vm6 = vmor %vm1930_vm4, %vm1931_vm5 }
0x1405   :  { %v1926_v55 = vmul.f32 %v4484_v50, %v1925_v37  ;;  %2061 = vxpose.xlu1.b32.cont [2/8] (short) (narrow) %v5492_v24, 8  ;;  %v1923_v51 = vsel %vm1922_vm12, %v4482_v60, %v1919_v2 }
0x1406   :  { %v1936_v11 = vmul.f32 %v1934_v47, %v1923_v51 }
0x1407   :  { %v1927_v6 = vmul.f32 0.5, %v1926_v55  ;;  %v2146_v55 = vld [vmem:[%s6025_s3 + $0xc8] sm:$0xff] }
0x1408   :  { %v1939_v14 = vmul.f32 %v1938_v54, %v1936_v11 }
0x1409   :  { %v1928_v9 = vsub.f32 1.5, %v1927_v6 }
0x140a   :  { %v5518_v21 = vadd.f32 %v1941_v16, %v1939_v14 }
0x140b   :  { %v1929_v12 = vmul.f32 %v4484_v50, %v1928_v9  ;;  %v2147_v9 = vld [vmem:[%s6025_s3 + $0xd0] sm:$0xff] }
0x140d   :  { %v1933_v8 = vsel %vm1932_vm6, %v4484_v50, %v1929_v12 }
0x140e   :  { %v1937_v18 = vmul.f32 %v1935_v13, %v1933_v8  ;;  %v2148_v8 = vld [vmem:[%s6025_s3 + $0xd8] sm:$0xff] }
0x1410   :  { %v1940_v20 = vmul.f32 %v1938_v54, %v1937_v18 }
0x1412   :  { %v5520_v25 = vadd.f32 %v1941_v16, %v1940_v20 }
0x1414   :  { %v1944_v26 = vpack.c.bf16 %v5520_v25, %v5518_v21 }
0x1416   :  { %3977 = vmatmul.msk.bf16.vlgmr.msra.gmra.mxu0 %vm164_vm7, %v1944_v26  ;;  %v2149_v26 = vld [vmem:[%s6025_s3 + $0xe0] sm:$0xff] }
0x1421   :  { %v4246_v5 = vpop.permute.xlu2 %4245 }
0x1422   :  { %v4248_v3 = vunpack.i.h.bf16 %v4246_v5  ;;  %v4247_v7 = vunpack.i.l.bf16 %v4246_v5 }
0x1424   :  { %v5525_v19 = vpack.c.bf16 %v4248_v3, %v4247_v7 }
0x1439   :  { %v4251_v28 = vpop.permute.xlu0 %4250 }
0x143a   :  { %v4241_v29 = vpop.permute.xlu1 %4240  ;;  %v4253_v30 = vunpack.i.h.bf16 %v4251_v28  ;;  %v4252_v33 = vunpack.i.l.bf16 %v4251_v28 }
0x143b   :  { %v4243_v15 = vunpack.i.h.bf16 %v4241_v29  ;;  %v4242_v42 = vunpack.i.l.bf16 %v4241_v29 }
0x143c   :  { %v2256_v36 = vpack.c.bf16 %v4253_v30, %v4252_v33 }
0x143d   :  { %v5527_v23 = vpack.c.bf16 %v4243_v15, %v4242_v42  ;;  %2062 = vxpose.xlu1.b32.cont [3/8] (short) (narrow) %v4242_v42, 8 }
0x1445   :  { %2063 = vxpose.xlu1.b32.cont [4/8] (short) (narrow) %v4243_v15, 8 }
0x144d   :  { %2064 = vxpose.xlu1.b32.cont [5/8] (short) (narrow) %v4247_v7, 8 }
0x1455   :  { %2065 = vxpose.xlu1.b32.cont [6/8] (short) (narrow) %v4248_v3, 8 }
0x145d   :  { %2066 = vxpose.xlu1.b32.cont [7/8] (short) (narrow) %v4252_v33, 8 }
0x1465   :  { %2067 = vxpose.xlu1.b32.end [8/8] (short) (narrow) %v4253_v30, 8  ;;  %v2151_v30 = vld [vmem:[%s6025_s3 + $0xf0] sm:$0xff] }
0x1493   :  { %v1975_v38 = vpop.f32.mrf.mxu0 }
0x1494   :  { %v1976_v41 = vadd.f32 %v4355_v39, %v1975_v38 }
0x149b   :  { %v1977_v40 = vpop.f32.mrf.mxu0 }
0x149c   :  { %v1978_v31 = vadd.f32 %v4355_v39, %v1977_v40 }
0x149e   :  { %v4259_v35 = vpack.i.bf16 %v1978_v31, %v1976_v41  ;;  %v2056_v48 = vpack.c.bf16 %v1978_v31, %v1976_v41 }
0x14a0   :  { %4260 = vrot.lane.b32.xlu2 %v4259_v35, %s4680_s14  ;;  %4255 = vrot.lane.b32.xlu0 %v4259_v35, %s4681_s15 }
0x14a8   :  { %4265 = vrot.lane.b32.xlu0 %v4259_v35, %s4679_s12  ;;  %2267 = vrot.lane.b32.xlu2 %v2256_v36, %s4682_s17 }
0x14d1   :  { %v2076_v44 = vpop.trf.xlu1 }
0x14d2   :  { %v2092_v45 = vpack.c.bf16 %v2076_v44, %v2076_v44 }
0x14d4   :  { %v2106_v46 = vsel %vm124_vm3, %v2092_v45, 0 }
0x14d5   :  { %2115 = vmatpush.bf16.msrb.mxu0 %v2106_v46 }
0x14d8   :  { %3987 = vmatmul.msk.bf16.vlgmr.msrb.gmra.mxu0 %vm263_vm8, %v2056_v48  ;;  %v2150_v48 = vld [vmem:[%s6025_s3 + $0xe8] sm:$0xff] }
0x14fa   :  { %v4261_v49 = vpop.permute.xlu2 %4260 }
0x14fb   :  { %v4263_v57 = vunpack.i.h.bf16 %v4261_v49  ;;  %v4262_v58 = vunpack.i.l.bf16 %v4261_v49 }
0x14fd   :  { %v2058_v0 = vpack.c.bf16 %v4263_v57, %v4262_v58 }
0x1502   :  { %v2268_v53 = vpop.permute.xlu2 %2267 }
0x1503   :  { %2289 = vmatpush.bf16.msrb.mxu2 %v2268_v53 }
0x1512   :  { %v4256_v22 = vpop.permute.xlu0 %4255 }
0x1513   :  { %v4258_v56 = vunpack.i.h.bf16 %v4256_v22  ;;  %v4257_v17 = vunpack.i.l.bf16 %v4256_v22 }
0x1515   :  { %v2057_v52 = vpack.c.bf16 %v4258_v56, %v4257_v17 }
0x1517   :  { %3988 = vmatmul.msk.bf16.gmra.mxu0 %vm263_vm8, %v2057_v52 }
0x151a   :  { %v4266_v59 = vpop.permute.xlu0 %4265 }
0x151b   :  { %v4268_v60 = vunpack.i.h.bf16 %v4266_v59  ;;  %v4267_v32 = vunpack.i.l.bf16 %v4266_v59 }
0x151d   :  { %v2059_v61 = vpack.c.bf16 %v4268_v60, %v4267_v32 }
0x1527   :  { %3989 = vmatmul.msk.bf16.gmra.mxu0 %vm263_vm8, %v2058_v0 }
0x1537   :  { %3990 = vmatmul.msk.bf16.gmra.mxu0 %vm263_vm8, %v2059_v61 }
0x1555   :  { %v2117_v62 = vpop.f32.mrf.mxu0 }
0x1556   :  { %v2137_v63 = vmul.f32 0.35355338, %v2117_v62 }
0x1558   :  { %v2153_v50 = vadd.f32 %v2145_v1, %v2137_v63 }
0x155a   :  { %v2161_v2 = vsel %vm332_vm9, %v2153_v50, -inf }
0x155b   :  { %2162 = vmax.xlane.f32.xlu2 %v2161_v2 }
0x155d   :  { %v2119_v37 = vpop.f32.mrf.mxu0 }
0x155e   :  { %v2138_v27 = vmul.f32 0.35355338, %v2119_v37 }
0x1560   :  { %v2154_v51 = vadd.f32 %v2146_v55, %v2138_v27 }
0x1562   :  { %v2164_v6 = vsel %vm332_vm9, %v2154_v51, -inf }
0x1563   :  { %2165 = vmax.xlane.f32.xlu0 %v2164_v6 }
0x1594   :  { %v2122_v47 = vpop.f32.mrf.mxu0 }
0x1595   :  { %v2139_v54 = vmul.f32 0.35355338, %v2122_v47 }
0x1597   :  { %v2155_v11 = vadd.f32 %v2147_v9, %v2139_v54 }
0x1599   :  { %v2167_v12 = vsel %vm332_vm9, %v2155_v11, -inf }
0x159a   :  { %2168 = vmax.xlane.f32.xlu2 %v2167_v12 }
0x159c   :  { %v2124_v13 = vpop.f32.mrf.mxu0 }
0x159d   :  { %v2140_v14 = vmul.f32 0.35355338, %v2124_v13 }
0x159f   :  { %v2156_v18 = vadd.f32 %v2148_v8, %v2140_v14 }
0x15a1   :  { %v2170_v16 = vsel %vm332_vm9, %v2156_v18, -inf }
0x15a2   :  { %2171 = vmax.xlane.f32.xlu0 %v2170_v16 }
0x15a4   :  { %v2127_v20 = vpop.f32.mrf.mxu0 }
0x15a5   :  { %v2141_v5 = vmul.f32 0.35355338, %v2127_v20 }
0x15a7   :  { %v2157_v3 = vadd.f32 %v2149_v26, %v2141_v5 }
0x15a9   :  { %v2173_v7 = vsel %vm332_vm9, %v2157_v3, -inf }
0x15aa   :  { %2174 = vmax.xlane.f32.xlu2 %v2173_v7 }
0x15ac   :  { %v2129_v28 = vpop.f32.mrf.mxu0 }
0x15ad   :  { %v2142_v46 = vmul.f32 0.35355338, %v2129_v28 }
0x15af   :  { %v2158_v49 = vadd.f32 %v2150_v48, %v2142_v46 }
0x15b1   :  { %v2176_v56 = vsel %vm332_vm9, %v2158_v49, -inf }
0x15b4   :  { %v2132_v29 = vpop.f32.mrf.mxu0 }
0x15b5   :  { %v2143_v33 = vmul.f32 0.35355338, %v2132_v29 }
0x15b7   :  { %v2159_v15 = vadd.f32 %v2151_v30, %v2143_v33 }
0x15b9   :  { %v2179_v42 = vsel %vm332_vm9, %v2159_v15, -inf }
0x15ba   :  { %2180 = vmax.xlane.f32.xlu2 %v2179_v42 }
0x15bc   :  { %v2134_v53 = vpop.f32.mrf.mxu0 }
0x15bd   :  { %v2144_v22 = vmul.f32 0.35355338, %v2134_v53 }
0x15bf   :  { %v2160_v24 = vadd.f32 %v2152_v43, %v2144_v22 }
0x15ce   :  { %v2163_v36 = vpop.xlane.xlu2 %2162 }
0x15cf   :  { %v2185_v38 = vsub.f32 %v2153_v50, %v2163_v36 }
0x15d1   :  { %v2193_v39 = vmul.f32 1.442695, %v2185_v38 }
0x15d2   :  { %2263 = vrot.lane.b32.xlu2 %v5527_v23, %s4682_s17 }
0x15d3   :  { %4485 = vpow2.f32 %v2193_v39 }
0x15d6   :  { %v2166_v40 = vpop.xlane.xlu0 %2165 }
0x15d7   :  { %v2186_v41 = vsub.f32 %v2154_v51, %v2166_v40 }
0x15d9   :  { %v5567_v31 = vpop.eup %4485  ;;  %v2195_v35 = vmul.f32 1.442695, %v2186_v41 }
0x15da   :  { %v2209_v44 = vsel %vm332_vm9, %v5567_v31, 0.0  ;;  %2261 = vrot.lane.b32.xlu2 %v2253_v34, %s4682_s17  ;;  %v2182_v34 = vsel %vm332_vm9, %v2160_v24, -inf }
0x15db   :  { %4487 = vpow2.f32 %v2195_v35  ;;  %2210 = vadd.xlane.f32.xlu0 %v2209_v44 }
0x15e1   :  { %v5575_v45 = vpop.eup %4487 }
0x15e2   :  { %v2212_v23 = vsel %vm332_vm9, %v5575_v45, 0.0 }
0x15e3   :  { %2213 = vadd.xlane.f32.xlu0 %v2212_v23 }
0x15eb   :  { %2177 = vmax.xlane.f32.xlu0 %v2176_v56 }
0x15f3   :  { %2183 = vmax.xlane.f32.xlu0 %v2182_v34 }
0x1607   :  { %2265 = vrot.lane.b32.xlu0 %v5525_v19, %s4682_s17 }
0x160d   :  { %v2169_v17 = vpop.xlane.xlu2 %2168 }
0x160e   :  { %v2187_v52 = vsub.f32 %v2155_v11, %v2169_v17 }
0x1610   :  { %v2197_v57 = vmul.f32 1.442695, %v2187_v52 }
0x1612   :  { %4489 = vpow2.f32 %v2197_v57 }
0x1615   :  { %v2172_v58 = vpop.xlane.xlu0 %2171 }
0x1616   :  { %v2188_v0 = vsub.f32 %v2156_v18, %v2172_v58 }
0x1618   :  { %v4490_v59 = vpop.eup %4489  ;;  %v2199_v60 = vmul.f32 1.442695, %v2188_v0 }
0x1619   :  { %v2215_v32 = vsel %vm332_vm9, %v4490_v59, 0.0 }
0x161a   :  { %4491 = vpow2.f32 %v2199_v60  ;;  %2216 = vadd.xlane.f32.xlu1 %v2215_v32 }
0x161d   :  { %v2175_v61 = vpop.xlane.xlu2 %2174 }
0x161e   :  { %v2189_v62 = vsub.f32 %v2157_v3, %v2175_v61 }
0x1620   :  { %v4492_v1 = vpop.eup %4491  ;;  %v2201_v50 = vmul.f32 1.442695, %v2189_v62 }
0x1621   :  { %v2218_v63 = vsel %vm332_vm9, %v4492_v1, 0.0 }
0x1622   :  { %2219 = vadd.xlane.f32.xlu2 %v2218_v63  ;;  %4493 = vpow2.f32 %v2201_v50 }
0x1628   :  { %v4494_v19 = vpop.eup %4493 }
0x1629   :  { %v2221_v27 = vsel %vm332_vm9, %v4494_v19, 0.0 }
0x162d   :  { %v2181_v2 = vpop.xlane.xlu2 %2180 }
0x162e   :  { %v2191_v37 = vsub.f32 %v2159_v15, %v2181_v2 }
0x1630   :  { %v2205_v55 = vmul.f32 1.442695, %v2191_v37 }
0x1631   :  { %2222 = vadd.xlane.f32.xlu0 %v2221_v27 }
0x1632   :  { %4495 = vpow2.f32 %v2205_v55 }
0x1635   :  { %v2264_v5 = vpop.permute.xlu2 %2263 }
0x1638   :  { %v4496_v51 = vpop.eup %4495 }
0x1639   :  { %v2227_v6 = vsel %vm332_vm9, %v4496_v51, 0.0 }
0x163a   :  { %2228 = vadd.xlane.f32.xlu0 %v2227_v6 }
0x163d   :  { %v2262_v30 = vpop.permute.xlu2 %2261 }
0x164e   :  { %v2211_v47 = vpop.xlane.xlu0 %2210 }
0x1656   :  { %v2214_v9 = vpop.xlane.xlu0 %2213 }
0x165e   :  { %v2178_v54 = vpop.xlane.xlu0 %2177 }
0x165f   :  { %v2190_v11 = vsub.f32 %v2158_v49, %v2178_v54 }
0x1661   :  { %v2203_v12 = vmul.f32 1.442695, %v2190_v11 }
0x1663   :  { %4497 = vpow2.f32 %v2203_v12 }
0x1666   :  { %v2184_v13 = vpop.xlane.xlu0 %2183 }
0x1667   :  { %v2192_v8 = vsub.f32 %v2160_v24, %v2184_v13 }
0x1669   :  { %v4498_v14 = vpop.eup %4497  ;;  %v2207_v18 = vmul.f32 1.442695, %v2192_v8 }
0x166a   :  { %v2224_v16 = vsel %vm332_vm9, %v4498_v14, 0.0 }
0x166b   :  { %4499 = vpow2.f32 %v2207_v18  ;;  %2225 = vadd.xlane.f32.xlu2 %v2224_v16 }
0x166c   :  { %4501 = vrcp.f32 %v2214_v9 }
0x166d   :  { %4503 = vrcp.f32 %v2211_v47 }
0x1671   :  { %v4500_v20 = vpop.eup %4499 }
0x1672   :  { %v2230_v26 = vsel %vm332_vm9, %v4500_v20, 0.0  ;;  %v4502_v7 = vpop.eup %4501 }
0x1673   :  { %2231 = vadd.xlane.f32.xlu2 %v2230_v26  ;;  %v4504_v28 = vpop.eup %4503  ;;  %v2242_v29 = vmul.f32 %v4502_v7, %v5575_v45  ;;  %v4356_v26 = vld [vmem:[%s6025_s3 + $0x188] ss:$0 sm:$0xff] }
0x1674   :  { %v2241_v33 = vmul.f32 %v4504_v28, %v5567_v31 }
0x1676   :  { %v2249_v15 = vpack.c.bf16 %v2242_v29, %v2241_v33 }
0x1679   :  { %v2266_v3 = vpop.permute.xlu0 %2265 }
0x167a   :  { %2290 = vmatpush.bf16.msrb.mxu2 %v2266_v3 }
0x167e   :  { %2291 = vmatpush.bf16.msrb.mxu2 %v2264_v5 }
0x1682   :  { %2292 = vmatpush.bf16.msrb.mxu2 %v2262_v30 }
0x1685   :  { %3991 = vmatmul.msk.bf16.vlgmr.msrb.gmra.mxu2 %vm332_vm9, %v2249_v15 }
0x168d   :  { %v2217_v42 = vpop.xlane.xlu1 %2216 }
0x168e   :  { %4505 = vrcp.f32 %v2217_v42 }
0x1694   :  { %v4506_v38 = vpop.eup %4505 }
0x1695   :  { %v2220_v36 = vpop.xlane.xlu2 %2219  ;;  %v2243_v40 = vmul.f32 %v4506_v38, %v4490_v59 }
0x1696   :  { %4507 = vrcp.f32 %v2220_v36 }
0x169c   :  { %v4508_v39 = vpop.eup %4507 }
0x169d   :  { %v2244_v41 = vmul.f32 %v4508_v39, %v4492_v1  ;;  %v4155_v1 = vld [vmem:[%s6024_s2 + $0xe8] sm:$0xff] }
0x169e   :  { %2372 = vmatpush.bf16.msra.mxu1 %v4155_v1 }
0x169f   :  { %v2250_v35 = vpack.c.bf16 %v2244_v41, %v2243_v40 }
0x16a1   :  { %3992 = vmatmul.msk.bf16.gmra.mxu2 %vm332_vm9, %v2250_v35 }
0x16a4   :  { %v2223_v44 = vpop.xlane.xlu0 %2222 }
0x16a5   :  { %4509 = vrcp.f32 %v2223_v44 }
0x16ab   :  { %v4510_v31 = vpop.eup %4509 }
0x16ac   :  { %v2245_v23 = vmul.f32 %v4510_v31, %v4494_v19  ;;  %v4154_v19 = vld [vmem:[%s6024_s2 + $0xe0] sm:$0xff]  ;;  %v4156_v31 = vld [vmem:[%s6024_s2 + $0xf0] sm:$0xff] }
0x16ad   :  { %v2229_v22 = vpop.xlane.xlu0 %2228  ;;  %2373 = vmatpush.bf16.msra.mxu1 %v4154_v19 }
0x16de   :  { %v2226_v45 = vpop.xlane.xlu2 %2225 }
0x16df   :  { %4511 = vrcp.f32 %v2226_v45 }
0x16e5   :  { %v4512_v46 = vpop.eup %4511 }
0x16e6   :  { %v2246_v48 = vmul.f32 %v4512_v46, %v4498_v14  ;;  %v2232_v49 = vpop.xlane.xlu2 %2231 }
0x16e7   :  { %4513 = vrcp.f32 %v2232_v49 }
0x16e8   :  { %v2251_v53 = vpack.c.bf16 %v2246_v48, %v2245_v23  ;;  %4515 = vrcp.f32 %v2229_v22 }
0x16ea   :  { %3993 = vmatmul.msk.bf16.gmra.mxu2 %vm332_vm9, %v2251_v53 }
0x16ed   :  { %v4514_v56 = vpop.eup %4513 }
0x16ee   :  { %v4516_v43 = vpop.eup %4515  ;;  %v2248_v24 = vmul.f32 %v4514_v56, %v4500_v20  ;;  %v4157_v20 = vld [vmem:[%s6024_s2 + $0xf8] sm:$0xff] }
0x16ef   :  { %v2247_v34 = vmul.f32 %v4516_v43, %v4496_v51  ;;  %2465 = vmatpush.bf16.msra.mxu3 %v4157_v20 }
0x16f1   :  { %v2252_v17 = vpack.c.bf16 %v2248_v24, %v2247_v34 }
0x16f3   :  { %2466 = vmatpush.bf16.msra.mxu3 %v4156_v31 }
0x16fa   :  { %3994 = vmatmul.msk.bf16.gmra.mxu2 %vm332_vm9, %v2252_v17 }
0x1708   :  { %v2294_v52 = vpop.f32.mrf.mxu2 }
0x1710   :  { %v2296_v57 = vpop.f32.mrf.mxu2 }
0x1724   :  { %v2299_v58 = vpop.f32.mrf.mxu2 }
0x172c   :  { %v2301_v0 = vpop.f32.mrf.mxu2 }
0x172d   :  { %v4269_v59 = vpack.i.bf16 %v2301_v0, %v2299_v58 }
0x172f   :  { %4270 = vrot.lane.b32.xlu0 %v4269_v59, %s6045_s16 }
0x176d   :  { %v2304_v60 = vpop.f32.mrf.mxu2 }
0x1775   :  { %v2306_v32 = vpop.f32.mrf.mxu2 }
0x1776   :  { %v4274_v61 = vpack.i.bf16 %v2306_v32, %v2304_v60  ;;  %v2382_v60 = vld [vmem:[%s6025_s3 + $0x1a8] sm:$0x3] }
0x1778   :  { %4275 = vrot.lane.b32.xlu2 %v4274_v61, %s6046_s26 }
0x177d   :  { %v2309_v62 = vpop.f32.mrf.mxu2 }
0x1785   :  { %v2311_v63 = vpop.f32.mrf.mxu2 }
0x1786   :  { %v4279_v50 = vpack.i.bf16 %v2311_v63, %v2309_v62  ;;  %v2431_v63 = vperm.slane %v2382_v60, 0 }
0x1788   :  { %4280 = vrot.lane.b32.xlu0 %v4279_v50, %s6047_s29 }
0x17a1   :  { %v4271_v2 = vpop.permute.xlu0 %4270 }
0x17a2   :  { %v4273_v55 = vunpack.i.h.bf16 %v4271_v2  ;;  %v4272_v27 = vunpack.i.l.bf16 %v4271_v2 }
0x17a4   :  { %v2339_v9 = vsel %vm263_vm8, %v2296_v57, %v4273_v55  ;;  %v2338_v54 = vsel %vm263_vm8, %v2294_v52, %v4272_v27 }
0x17d2   :  { %v4276_v37 = vpop.permute.xlu2 %4275 }
0x17d3   :  { %v4278_v51 = vunpack.i.h.bf16 %v4276_v37  ;;  %v4277_v6 = vunpack.i.l.bf16 %v4276_v37 }
0x17d5   :  { %v2340_v13 = vsel %vm508_vm10, %v2338_v54, %v4277_v6  ;;  %v2341_v8 = vsel %vm508_vm10, %v2339_v9, %v4278_v51  ;;  %v2434_v51 = vperm.slane %v2382_v60, 1 }
0x17fa   :  { %v4281_v47 = vpop.permute.xlu0 %4280 }
0x17fb   :  { %v4283_v11 = vunpack.i.h.bf16 %v4281_v47  ;;  %v4282_v12 = vunpack.i.l.bf16 %v4281_v47 }
0x17fd   :  { %v2342_v14 = vsel %vm511_vm11, %v2340_v13, %v4282_v12  ;;  %v2343_v18 = vsel %vm511_vm11, %v2341_v8, %v4283_v11  ;;  %v4161_v11 = vld [vmem:[%s6024_s2 + $0x118] sm:$0xff]  ;;  %v4160_v12 = vld [vmem:[%s6024_s2 + $0x110] sm:$0xff]  ;;  %v4159_v13 = vld [vmem:[%s6024_s2 + $0x108] sm:$0xff] }
0x17fe   :  { %v2344_v16 = vpack.c.bf16 %v2343_v18, %v2342_v14  ;;  %2515 = vmatpush.bf16.msrb.mxu1 %v4161_v11  ;;  %v4158_v8 = vld [vmem:[%s6024_s2 + $0x100] sm:$0xff]  ;;  %v4357_v18 = vld [vmem:[%s6025_s3 + $0x190] ss:$0 sm:$0xff] }
0x1800   :  { %4003 = vmatmul.msk.bf16.vlgmr.msra.gmra.mxu1 %vm164_vm7, %v2344_v16 }
0x1802   :  { %2516 = vmatpush.bf16.msrb.mxu1 %v4160_v12 }
0x1806   :  { %2517 = vmatpush.bf16.msrb.mxu1 %v4159_v13 }
0x180a   :  { %2518 = vmatpush.bf16.msrb.mxu1 %v4158_v8 }
0x187d   :  { %v2375_v5 = vpop.f32.mrf.mxu1 }
0x187e   :  { %v2376_v3 = vadd.f32 %v4356_v26, %v2375_v5 }
0x1880   :  { %v2380_v7 = vadd.f32 %v2376_v3, %v5518_v21 }
0x1882   :  { %v2383_v28 = vsel %vm164_vm7, %v2380_v7, 0.0  ;;  %v2391_v29 = vmul.f32 %v2380_v7, %v2380_v7 }
0x1883   :  { %2384 = vadd.xlane.f32.xlu2 %v2383_v28  ;;  %v4358_v28 = vld [vmem:[%s6025_s3 + $0x198] ss:$0 sm:$0xff] }
0x1884   :  { %v2393_v30 = vsel %vm164_vm7, %v2391_v29, 0.0 }
0x1885   :  { %v2377_v33 = vpop.f32.mrf.mxu1  ;;  %2394 = vadd.xlane.f32.xlu1 %v2393_v30 }
0x1886   :  { %v2378_v15 = vadd.f32 %v4356_v26, %v2377_v33 }
0x1888   :  { %v2381_v42 = vadd.f32 %v2378_v15, %v5520_v25 }
0x188a   :  { %v2386_v36 = vsel %vm164_vm7, %v2381_v42, 0.0  ;;  %v2392_v38 = vmul.f32 %v2381_v42, %v2381_v42 }
0x188b   :  { %2387 = vadd.xlane.f32.xlu0 %v2386_v36 }
0x188c   :  { %v2396_v39 = vsel %vm164_vm7, %v2392_v38, 0.0 }
0x188d   :  { %2397 = vadd.xlane.f32.xlu1 %v2396_v39 }
0x18f6   :  { %v2385_v40 = vpop.xlane.xlu2 %2384 }
0x18f7   :  { %v2389_v21 = vmul.f32 %v2385_v40, %v4957_v4 }
0x18f8   :  { %v2395_v41 = vpop.xlane.xlu1 %2394 }
0x18f9   :  { %v2401_v35 = vmul.f32 %v2389_v21, %v2389_v21  ;;  %v2399_v44 = vmul.f32 %v2395_v41, %v4957_v4  ;;  %v2427_v62 = vsub.f32 %v2380_v7, %v2389_v21 }
0x18fb   :  { %v2403_v45 = vsub.f32 %v2399_v44, %v2401_v35 }
0x18fd   :  { %v2405_v25 = vadd.f32 1e-05, %v2403_v45 }
0x18fe   :  { %v2388_v46 = vpop.xlane.xlu0 %2387 }
0x18ff   :  { %4517 = vrsqrt.f32 %v2405_v25  ;;  %v2390_v23 = vmul.f32 %v2388_v46, %v4957_v4  ;;  %vm2413_vm0 = vweird.f32 %v2405_v25 }
0x1900   :  { %v2398_v48 = vpop.xlane.xlu1 %2397 }
0x1901   :  { %v2402_v49 = vmul.f32 %v2390_v23, %v2390_v23  ;;  %v2400_v53 = vmul.f32 %v2398_v48, %v4957_v4  ;;  %v2428_v2 = vsub.f32 %v2381_v42, %v2390_v23 }
0x1903   :  { %v2404_v22 = vsub.f32 %v2400_v53, %v2402_v49  ;;  %v4162_v49 = vld [vmem:[%s6024_s2 + $0x120] sm:$0xff] }
0x1905   :  { %v4518_v56 = vpop.eup %4517  ;;  %v2406_v43 = vadd.f32 1e-05, %v2404_v22 }
0x1906   :  { %v2408_v24 = vmul.f32 %v4518_v56, %v2405_v25  ;;  %vm2414_vm13 = vweird.f32 %v4518_v56  ;;  %v4163_v25 = vld [vmem:[%s6024_s2 + $0x128] sm:$0xff] }
0x1907   :  { %4519 = vrsqrt.f32 %v2406_v43  ;;  %vm2415_vm1 = vmor %vm2413_vm0, %vm2414_vm13  ;;  %vm2423_vm2 = vweird.f32 %v2406_v43  ;;  %2614 = vmatpush.bf16.msrb.mxu3 %v4163_v25 }
0x1908   :  { %v2409_v34 = vmul.f32 %v4518_v56, %v2408_v24 }
0x190a   :  { %v2410_v17 = vmul.f32 0.5, %v2409_v34 }
0x190b   :  { %2615 = vmatpush.bf16.msrb.mxu3 %v4162_v49 }
0x190c   :  { %v2411_v52 = vsub.f32 1.5, %v2410_v17 }
0x190d   :  { %v4520_v57 = vpop.eup %4519 }
0x190e   :  { %v2412_v58 = vmul.f32 %v4518_v56, %v2411_v52  ;;  %v2418_v0 = vmul.f32 %v4520_v57, %v2406_v43  ;;  %vm2424_vm14 = vweird.f32 %v4520_v57 }
0x190f   :  { %vm2425_vm15 = vmor %vm2423_vm2, %vm2424_vm14 }
0x1910   :  { %v2419_v59 = vmul.f32 %v4520_v57, %v2418_v0  ;;  %v2416_v32 = vsel %vm2415_vm1, %v4518_v56, %v2412_v58 }
0x1911   :  { %v2429_v50 = vmul.f32 %v2427_v62, %v2416_v32 }
0x1912   :  { %v2420_v61 = vmul.f32 0.5, %v2419_v59 }
0x1913   :  { %v2432_v55 = vmul.f32 %v2431_v63, %v2429_v50 }
0x1914   :  { %v2421_v1 = vsub.f32 1.5, %v2420_v61 }
0x1915   :  { %v2435_v47 = vadd.f32 %v2434_v51, %v2432_v55 }
0x1916   :  { %v2422_v19 = vmul.f32 %v4520_v57, %v2421_v1 }
0x1918   :  { %v2426_v37 = vsel %vm2425_vm15, %v4520_v57, %v2422_v19 }
0x1919   :  { %v2430_v27 = vmul.f32 %v2428_v2, %v2426_v37 }
0x191b   :  { %v2433_v6 = vmul.f32 %v2431_v63, %v2430_v27  ;;  %v2531_v63 = vld [vmem:[%s6025_s3 + $0x1b0] sm:$0x3] }
0x191c   :  { %v2580_v55 = vperm.slane %v2531_v63, 0  ;;  %v2583_v11 = vperm.slane %v2531_v63, 1 }
0x191d   :  { %v2436_v9 = vadd.f32 %v2434_v51, %v2433_v6 }
0x191f   :  { %v2437_v54 = vpack.c.bf16 %v2436_v9, %v2435_v47 }
0x1921   :  { %4012 = vmatmul.msk.bf16.vlgmr.msra.gmra.mxu3 %vm164_vm7, %v2437_v54 }
0x19a4   :  { %v2468_v14 = vpop.f32.mrf.mxu3 }
0x19a5   :  { %v2469_v16 = vadd.f32 %v4357_v18, %v2468_v14 }
0x19a7   :  { %v2473_v5 = vmax.f32 %v2469_v16, 0.0 }
0x19ac   :  { %v2470_v20 = vpop.f32.mrf.mxu3 }
0x19ad   :  { %v2471_v26 = vadd.f32 %v4357_v18, %v2470_v20  ;;  %v4359_v18 = vld [vmem:[%s6025_s3 + $0x1b8] ss:$0 sm:$0xff] }
0x19af   :  { %v2474_v3 = vmax.f32 %v2471_v26, 0.0 }
0x19b1   :  { %v2475_v7 = vpack.c.bf16 %v2474_v3, %v2473_v5 }
0x19b3   :  { %4029 = vmatmul.msk.bf16.vlgmr.msrb.gmra.mxu1 %vm332_vm9, %v2475_v7 }
0x1a30   :  { %v2520_v29 = vpop.f32.mrf.mxu1 }
0x1a31   :  { %v2525_v30 = vadd.f32 %v2520_v29, %v2435_v47 }
0x1a33   :  { %v2529_v33 = vadd.f32 %v4358_v28, %v2525_v30 }
0x1a35   :  { %v2532_v15 = vsel %vm164_vm7, %v2529_v33, 0.0  ;;  %v2540_v42 = vmul.f32 %v2529_v33, %v2529_v33 }
0x1a36   :  { %2533 = vadd.xlane.f32.xlu1 %v2532_v15 }
0x1a37   :  { %v2542_v36 = vsel %vm164_vm7, %v2540_v42, 0.0 }
0x1a38   :  { %2543 = vadd.xlane.f32.xlu2 %v2542_v36  ;;  %v2522_v38 = vpop.f32.mrf.mxu1 }
0x1a39   :  { %v2526_v39 = vadd.f32 %v2522_v38, %v2436_v9 }
0x1a3b   :  { %v2530_v40 = vadd.f32 %v4358_v28, %v2526_v39 }
0x1a3d   :  { %v2535_v21 = vsel %vm164_vm7, %v2530_v40, 0.0  ;;  %v2541_v41 = vmul.f32 %v2530_v40, %v2530_v40 }
0x1a3e   :  { %2536 = vadd.xlane.f32.xlu1 %v2535_v21 }
0x1a3f   :  { %v2545_v35 = vsel %vm164_vm7, %v2541_v41, 0.0 }
0x1a40   :  { %2546 = vadd.xlane.f32.xlu0 %v2545_v35 }
0x1aa9   :  { %v2534_v44 = vpop.xlane.xlu1 %2533 }
0x1aaa   :  { %v2538_v45 = vmul.f32 %v2534_v44, %v4957_v4 }
0x1aab   :  { %v2544_v31 = vpop.xlane.xlu2 %2543 }
0x1aac   :  { %v2550_v46 = vmul.f32 %v2538_v45, %v2538_v45  ;;  %v2548_v23 = vmul.f32 %v2544_v31, %v4957_v4  ;;  %v2576_v2 = vsub.f32 %v2529_v33, %v2538_v45 }
0x1aae   :  { %v2552_v48 = vsub.f32 %v2548_v23, %v2550_v46 }
0x1ab0   :  { %v2554_v53 = vadd.f32 1e-05, %v2552_v48 }
0x1ab1   :  { %v2537_v22 = vpop.xlane.xlu1 %2536 }
0x1ab2   :  { %4521 = vrsqrt.f32 %v2554_v53  ;;  %v2539_v56 = vmul.f32 %v2537_v22, %v4957_v4  ;;  %vm2562_vm5 = vweird.f32 %v2554_v53  ;;  %v4609_v22 = vld [vmem:[%s6025_s3 + $0x80] sm:$0xff] }
0x1ab3   :  { %v2547_v43 = vpop.xlane.xlu0 %2546 }
0x1ab4   :  { %v2551_v24 = vmul.f32 %v2539_v56, %v2539_v56  ;;  %v2549_v34 = vmul.f32 %v2547_v43, %v4957_v4  ;;  %v2577_v6 = vsub.f32 %v2530_v40, %v2539_v56 }
0x1ab6   :  { %v2553_v17 = vsub.f32 %v2549_v34, %v2551_v24 }
0x1ab8   :  { %v4522_v52 = vpop.eup %4521  ;;  %v2555_v57 = vadd.f32 1e-05, %v2553_v17  ;;  %v4610_v17 = vld [vmem:[%s6025_s3 + $0x88] sm:$0xff] }
0x1ab9   :  { %v2557_v58 = vmul.f32 %v4522_v52, %v2554_v53  ;;  %vm2563_vm12 = vweird.f32 %v4522_v52 }
0x1aba   :  { %4523 = vrsqrt.f32 %v2555_v57  ;;  %vm2564_vm4 = vmor %vm2562_vm5, %vm2563_vm12  ;;  %vm2572_vm13 = vweird.f32 %v2555_v57 }
0x1abb   :  { %v2558_v0 = vmul.f32 %v4522_v52, %v2557_v58 }
0x1abd   :  { %v2559_v59 = vmul.f32 0.5, %v2558_v0 }
0x1abf   :  { %v2560_v60 = vsub.f32 1.5, %v2559_v59  ;;  %v4611_v59 = vld [vmem:[%s6025_s3 + $0x90] sm:$0xff] }
0x1ac0   :  { %v4524_v32 = vpop.eup %4523 }
0x1ac1   :  { %v2561_v61 = vmul.f32 %v4522_v52, %v2560_v60  ;;  %v2567_v62 = vmul.f32 %v4524_v32, %v2555_v57  ;;  %vm2573_vm6 = vweird.f32 %v4524_v32 }
0x1ac2   :  { %vm2574_vm0 = vmor %vm2572_vm13, %vm2573_vm6 }
0x1ac3   :  { %v2568_v1 = vmul.f32 %v4524_v32, %v2567_v62  ;;  %v2565_v50 = vsel %vm2564_vm4, %v4522_v52, %v2561_v61 }
0x1ac4   :  { %v2578_v27 = vmul.f32 %v2576_v2, %v2565_v50 }
0x1ac5   :  { %v2569_v19 = vmul.f32 0.5, %v2568_v1  ;;  %v4612_v1 = vld [vmem:[%s6025_s3 + $0x98] sm:$0xff] }
0x1ac6   :  { %v2581_v9 = vmul.f32 %v2580_v55, %v2578_v27 }
0x1ac7   :  { %v2570_v37 = vsub.f32 1.5, %v2569_v19 }
0x1ac8   :  { %v5676_v13 = vadd.f32 %v2583_v11, %v2581_v9 }
0x1ac9   :  { %v2571_v51 = vmul.f32 %v4524_v32, %v2570_v37  ;;  %v4613_v37 = vld [vmem:[%s6025_s3 + $0xa0] sm:$0xff] }
0x1acb   :  { %v2575_v47 = vsel %vm2574_vm0, %v4524_v32, %v2571_v51 }
0x1acc   :  { %v2579_v54 = vmul.f32 %v2577_v6, %v2575_v47  ;;  %v4614_v47 = vld [vmem:[%s6025_s3 + $0xa8] sm:$0xff] }
0x1ace   :  { %v2582_v12 = vmul.f32 %v2580_v55, %v2579_v54 }
0x1ad0   :  { %v5678_v8 = vadd.f32 %v2583_v11, %v2582_v12 }
0x1ad2   :  { %v2586_v14 = vpack.c.bf16 %v5678_v8, %v5676_v13 }
0x1ad4   :  { %4038 = vmatmul.msk.bf16.vlgmr.msrb.gmra.mxu3 %vm164_vm7, %v2586_v14  ;;  %v4615_v14 = vld [vmem:[%s6025_s3 + $0xb0] sm:$0xff] }
0x1b57   :  { %v2617_v16 = vpop.f32.mrf.mxu3 }
0x1b58   :  { %v2618_v20 = vadd.f32 %v4359_v18, %v2617_v16 }
0x1b5a   :  { %2630 = vrot.lane.b32.xlu0 %v2618_v20, %s4680_s14  ;;  %2624 = vrot.lane.b32.xlu1 %v2618_v20, %s4681_s15 }
0x1b5f   :  { %v2619_v26 = vpop.f32.mrf.mxu3 }
0x1b60   :  { %v2620_v5 = vadd.f32 %v4359_v18, %v2619_v26 }
0x1b62   :  { %v2642_v3 = vpack.c.bf16 %v2620_v5, %v2618_v20  ;;  %2626 = vrot.lane.b32.xlu2 %v2620_v5, %s4681_s15  ;;  %2636 = vrot.lane.b32.xlu0 %v2618_v20, %s4679_s12 }
0x1b63   :  { %2632 = vrot.lane.b32.xlu1 %v2620_v5, %s4680_s14 }
0x1b6a   :  { %2638 = vrot.lane.b32.xlu2 %v2620_v5, %s4679_s12  ;;  %2648 = vrot.lane.b32.xlu0 %v2620_v5, %s4682_s17  ;;  %v4616_v5 = vld [vmem:[%s6025_s3 + $0xb8] sm:$0xff] }
0x1b6b   :  { %2646 = vrot.lane.b32.xlu1 %v2618_v20, %s4682_s17 }
0x1bbc   :  { %v2627_v7 = vpop.permute.xlu2 %2626 }
0x1bbd   :  { %2652 = vrot.lane.b32.xlu1 %v2627_v7, %s4682_s17 }
0x1bc4   :  { %v2639_v33 = vpop.permute.xlu2 %2638 }
0x1bcc   :  { %v2631_v28 = vpop.permute.xlu0 %2630  ;;  %v2625_v29 = vpop.permute.xlu1 %2624 }
0x1bcd   :  { %v5695_v30 = vpack.c.bf16 %v2627_v7, %v2625_v29  ;;  %2654 = vrot.lane.b32.xlu0 %v2631_v28, %s4682_s17  ;;  %2650 = vrot.lane.b32.xlu2 %v2625_v29, %s4682_s17 }
0x1bd4   :  { %v2637_v15 = vpop.permute.xlu0 %2636 }
0x1bd5   :  { %v2633_v42 = vpop.permute.xlu1 %2632  ;;  %2660 = vrot.lane.b32.xlu0 %v2639_v33, %s4682_s17  ;;  %2658 = vrot.lane.b32.xlu1 %v2637_v15, %s4682_s17  ;;  %v2645_v38 = vpack.c.bf16 %v2639_v33, %v2637_v15 }
0x1bd6   :  { %v5701_v36 = vpack.c.bf16 %v2633_v42, %v2631_v28  ;;  %2656 = vrot.lane.b32.xlu2 %v2633_v42, %s4682_s17 }
0x1bdc   :  { %v2649_v40 = vpop.permute.xlu0 %2648 }
0x1bdd   :  { %2865 = vrot.lane.b32.xlu1 %v2645_v38, %s6044_s23  ;;  %v2647_v39 = vpop.permute.xlu1 %2646 }
0x1bfc   :  { %2670 = vxpose.xlu2.b32.start [1/8] (short) (narrow) %v2647_v39, 8 }
0x1c04   :  { %2671 = vxpose.xlu2.b32.cont [2/8] (short) (narrow) %v2649_v40, 8 }
0x1c27   :  { %v2651_v21 = vpop.permute.xlu2 %2650 }
0x1c28   :  { %2672 = vxpose.xlu2.b32.cont [3/8] (short) (narrow) %v2651_v21, 8 }
0x1c2f   :  { %v2653_v41 = vpop.permute.xlu1 %2652 }
0x1c30   :  { %2673 = vxpose.xlu2.b32.cont [4/8] (short) (narrow) %v2653_v41, 8  ;;  %v2657_v44 = vpop.permute.xlu2 %2656 }
0x1c3f   :  { %v2655_v35 = vpop.permute.xlu0 %2654 }
0x1c40   :  { %2674 = vxpose.xlu2.b32.cont [5/8] (short) (narrow) %v2655_v35, 8 }
0x1c47   :  { %v2659_v45 = vpop.permute.xlu1 %2658  ;;  %v2661_v25 = vpop.permute.xlu0 %2660 }
0x1c48   :  { %2675 = vxpose.xlu2.b32.cont [6/8] (short) (narrow) %v2657_v44, 8 }
0x1c4f   :  { %v2866_v31 = vpop.permute.xlu1 %2865 }
0x1c50   :  { %2887 = vmatpush.bf16.msra.mxu0 %v2866_v31  ;;  %2676 = vxpose.xlu2.b32.cont [7/8] (short) (narrow) %v2659_v45, 8 }
0x1c58   :  { %2677 = vxpose.xlu2.b32.end [8/8] (short) (narrow) %v2661_v25, 8 }
0x1cb9   :  { %v2686_v46 = vpop.trf.xlu2 }
0x1cba   :  { %v2702_v23 = vpack.c.bf16 %v2686_v46, %v2686_v46 }
0x1cbc   :  { %v2716_v48 = vsel %vm124_vm3, %v2702_v23, 0 }
0x1cbd   :  { %2725 = vmatpush.bf16.msra.mxu1 %v2716_v48 }
0x1cc0   :  { %4039 = vmatmul.msk.bf16.vlgmr.msra.gmra.mxu1 %vm263_vm8, %v2642_v3 }
0x1cc1   :  { %2859 = vrot.lane.b32.xlu2 %v2642_v3, %s6044_s23 }
0x1cd0   :  { %4040 = vmatmul.msk.bf16.gmra.mxu1 %vm263_vm8, %v5695_v30 }
0x1ce0   :  { %4041 = vmatmul.msk.bf16.gmra.mxu1 %vm263_vm8, %v5701_v36 }
0x1cf0   :  { %4042 = vmatmul.msk.bf16.gmra.mxu1 %vm263_vm8, %v2645_v38 }
0x1d3d   :  { %v2727_v49 = vpop.f32.mrf.mxu1 }
0x1d3e   :  { %v2747_v53 = vmul.f32 0.35355338, %v2727_v49 }
0x1d40   :  { %v2755_v56 = vadd.f32 %v4609_v22, %v2747_v53 }
0x1d42   :  { %v2763_v43 = vsel %vm332_vm9, %v2755_v56, -inf }
0x1d43   :  { %2764 = vmax.xlane.f32.xlu1 %v2763_v43 }
0x1d45   :  { %v2729_v24 = vpop.f32.mrf.mxu1 }
0x1d46   :  { %v2748_v34 = vmul.f32 0.35355338, %v2729_v24 }
0x1d48   :  { %v2756_v52 = vadd.f32 %v4610_v17, %v2748_v34 }
0x1d4a   :  { %v2766_v57 = vsel %vm332_vm9, %v2756_v52, -inf }
0x1d4b   :  { %2767 = vmax.xlane.f32.xlu0 %v2766_v57 }
0x1d4d   :  { %v2732_v58 = vpop.f32.mrf.mxu1 }
0x1d4e   :  { %v2749_v0 = vmul.f32 0.35355338, %v2732_v58 }
0x1d50   :  { %v2757_v60 = vadd.f32 %v4611_v59, %v2749_v0 }
0x1d52   :  { %v2769_v32 = vsel %vm332_vm9, %v2757_v60, -inf }
0x1d53   :  { %2770 = vmax.xlane.f32.xlu1 %v2769_v32 }
0x1d55   :  { %v2734_v61 = vpop.f32.mrf.mxu1 }
0x1d56   :  { %v2750_v62 = vmul.f32 0.35355338, %v2734_v61 }
0x1d58   :  { %v5728_v63 = vadd.f32 %v4612_v1, %v2750_v62 }
0x1d5a   :  { %v2772_v50 = vsel %vm332_vm9, %v5728_v63, -inf }
0x1d5b   :  { %2773 = vmax.xlane.f32.xlu0 %v2772_v50 }
0x1d5d   :  { %v2737_v19 = vpop.f32.mrf.mxu1 }
0x1d5e   :  { %v2751_v2 = vmul.f32 0.35355338, %v2737_v19 }
0x1d60   :  { %v2759_v55 = vadd.f32 %v4613_v37, %v2751_v2 }
0x1d62   :  { %v2775_v27 = vsel %vm332_vm9, %v2759_v55, -inf }
0x1d63   :  { %2776 = vmax.xlane.f32.xlu1 %v2775_v27 }
0x1d65   :  { %v2739_v51 = vpop.f32.mrf.mxu1 }
0x1d66   :  { %v2752_v6 = vmul.f32 0.35355338, %v2739_v51 }
0x1d68   :  { %v2760_v9 = vadd.f32 %v4614_v47, %v2752_v6  ;;  %v2860_v47 = vpop.permute.xlu2 %2859 }
0x1d6a   :  { %v2778_v54 = vsel %vm332_vm9, %v2760_v9, -inf }
0x1d6b   :  { %2779 = vmax.xlane.f32.xlu0 %v2778_v54 }
0x1d6d   :  { %v2742_v11 = vpop.f32.mrf.mxu1 }
0x1d6e   :  { %v2753_v12 = vmul.f32 0.35355338, %v2742_v11 }
0x1d70   :  { %v2761_v18 = vadd.f32 %v4615_v14, %v2753_v12 }
0x1d72   :  { %v2781_v16 = vsel %vm332_vm9, %v2761_v18, -inf }
0x1d73   :  { %2782 = vmax.xlane.f32.xlu1 %v2781_v16 }
0x1d75   :  { %v2744_v20 = vpop.f32.mrf.mxu1 }
0x1d76   :  { %v2754_v26 = vmul.f32 0.35355338, %v2744_v20 }
0x1d78   :  { %v2762_v3 = vadd.f32 %v4616_v5, %v2754_v26 }
0x1d7a   :  { %v2784_v7 = vsel %vm332_vm9, %v2762_v3, -inf }
0x1d7b   :  { %2785 = vmax.xlane.f32.xlu0 %v2784_v7 }
0x1d8c   :  { %2861 = vrot.lane.b32.xlu1 %v5695_v30, %s6044_s23 }
0x1db6   :  { %v2765_v28 = vpop.xlane.xlu1 %2764 }
0x1db7   :  { %v2787_v29 = vsub.f32 %v2755_v56, %v2765_v28 }
0x1db9   :  { %v2795_v33 = vmul.f32 1.442695, %v2787_v29 }
0x1dbb   :  { %4525 = vpow2.f32 %v2795_v33 }
0x1dbe   :  { %v2768_v15 = vpop.xlane.xlu0 %2767 }
0x1dbf   :  { %v2788_v42 = vsub.f32 %v2756_v52, %v2768_v15 }
0x1dc1   :  { %v5750_v38 = vpop.eup %4525  ;;  %v2797_v39 = vmul.f32 1.442695, %v2788_v42 }
0x1dc2   :  { %v2811_v40 = vsel %vm332_vm9, %v5750_v38, 0.0 }
0x1dc3   :  { %4527 = vpow2.f32 %v2797_v39  ;;  %2812 = vadd.xlane.f32.xlu0 %v2811_v40 }
0x1dc6   :  { %v2771_v21 = vpop.xlane.xlu1 %2770 }
0x1dc7   :  { %v2789_v41 = vsub.f32 %v2757_v60, %v2771_v21 }
0x1dc9   :  { %v4528_v35 = vpop.eup %4527  ;;  %v2799_v44 = vmul.f32 1.442695, %v2789_v41 }
0x1dca   :  { %v2814_v30 = vsel %vm332_vm9, %v4528_v35, 0.0 }
0x1dcb   :  { %4529 = vpow2.f32 %v2799_v44  ;;  %2815 = vadd.xlane.f32.xlu0 %v2814_v30 }
0x1dce   :  { %v2774_v34 = vpop.xlane.xlu0 %2773 }
0x1dcf   :  { %v2790_v17 = vsub.f32 %v5728_v63, %v2774_v34  ;;  %v4168_v34 = vld [vmem:[%s6024_s2 + $0x150] sm:$0xff] }
0x1dd1   :  { %v4530_v45 = vpop.eup %4529 }
0x1dd2   :  { %v2817_v31 = vsel %vm332_vm9, %v4530_v45, 0.0 }
0x1dd3   :  { %2818 = vadd.xlane.f32.xlu1 %v2817_v31 }
0x1dd6   :  { %v2777_v25 = vpop.xlane.xlu1 %2776 }
0x1dd7   :  { %v2791_v46 = vsub.f32 %v2759_v55, %v2777_v25 }
0x1dd9   :  { %v2803_v23 = vmul.f32 1.442695, %v2791_v46 }
0x1ddb   :  { %4531 = vpow2.f32 %v2803_v23 }
0x1dde   :  { %v2780_v52 = vpop.xlane.xlu0 %2779 }
0x1ddf   :  { %2863 = vrot.lane.b32.xlu0 %v5701_v36, %s6044_s23  ;;  %v2801_v36 = vmul.f32 1.442695, %v2790_v17  ;;  %v2792_v57 = vsub.f32 %v2760_v9, %v2780_v52 }
0x1de1   :  { %v5758_v48 = vpop.eup %4531  ;;  %v2805_v58 = vmul.f32 1.442695, %v2792_v57 }
0x1de2   :  { %v2823_v49 = vsel %vm332_vm9, %v5758_v48, 0.0 }
0x1de3   :  { %2824 = vadd.xlane.f32.xlu1 %v2823_v49 }
0x1de6   :  { %v2783_v53 = vpop.xlane.xlu1 %2782 }
0x1de7   :  { %v2793_v22 = vsub.f32 %v2761_v18, %v2783_v53 }
0x1de9   :  { %v2807_v56 = vmul.f32 1.442695, %v2793_v22 }
0x1deb   :  { %4533 = vpow2.f32 %v2807_v56  ;;  %v4165_v56 = vld [vmem:[%s6024_s2 + $0x138] sm:$0xff] }
0x1dec   :  { %4535 = vpow2.f32 %v2801_v36  ;;  %2970 = vmatpush.bf16.msra.mxu3 %v4165_v56 }
0x1ded   :  { %4537 = vpow2.f32 %v2805_v58 }
0x1dee   :  { %v2786_v0 = vpop.xlane.xlu0 %2785 }
0x1def   :  { %v2794_v60 = vsub.f32 %v2762_v3, %v2786_v0 }
0x1df1   :  { %v5762_v43 = vpop.eup %4533  ;;  %v2809_v61 = vmul.f32 1.442695, %v2794_v60 }
0x1df2   :  { %v2829_v24 = vsel %vm332_vm9, %v5762_v43, 0.0  ;;  %v4536_v59 = vpop.eup %4535 }
0x1df3   :  { %2830 = vadd.xlane.f32.xlu1 %v2829_v24  ;;  %v2820_v32 = vsel %vm332_vm9, %v4536_v59, 0.0  ;;  %v4538_v62 = vpop.eup %4537  ;;  %4539 = vpow2.f32 %v2809_v61  ;;  %v4169_v24 = vld [vmem:[%s6024_s2 + $0x158] sm:$0xff] }
0x1df4   :  { %v2826_v1 = vsel %vm332_vm9, %v4538_v62, 0.0 }
0x1df9   :  { %v4540_v50 = vpop.eup %4539 }
0x1dfa   :  { %v2832_v63 = vsel %vm332_vm9, %v4540_v50, 0.0 }
0x1dfe   :  { %v2862_v27 = vpop.permute.xlu1 %2861 }
0x1e09   :  { %2821 = vadd.xlane.f32.xlu0 %v2820_v32 }
0x1e11   :  { %2827 = vadd.xlane.f32.xlu0 %v2826_v1 }
0x1e19   :  { %2833 = vadd.xlane.f32.xlu0 %v2832_v63 }
0x1e36   :  { %v2813_v19 = vpop.xlane.xlu0 %2812 }
0x1e3e   :  { %v2816_v2 = vpop.xlane.xlu0 %2815 }
0x1e3f   :  { %4541 = vrcp.f32 %v2816_v2 }
0x1e40   :  { %4543 = vrcp.f32 %v2813_v19 }
0x1e45   :  { %v4542_v55 = vpop.eup %4541 }
0x1e46   :  { %v4544_v51 = vpop.eup %4543  ;;  %v2844_v6 = vmul.f32 %v4542_v55, %v4528_v35  ;;  %v2819_v11 = vpop.xlane.xlu1 %2818 }
0x1e47   :  { %v2843_v9 = vmul.f32 %v4544_v51, %v5750_v38  ;;  %4545 = vrcp.f32 %v2819_v11 }
0x1e49   :  { %v2851_v54 = vpack.c.bf16 %v2844_v6, %v2843_v9 }
0x1e4d   :  { %v4546_v14 = vpop.eup %4545 }
0x1e4e   :  { %v2845_v16 = vmul.f32 %v4546_v14, %v4530_v45 }
0x1e51   :  { %v2864_v37 = vpop.permute.xlu0 %2863 }
0x1e52   :  { %2888 = vmatpush.bf16.msra.mxu0 %v2864_v37  ;;  %v4360_v37 = vld [vmem:[%s6025_s3 + $0x1c0] ss:$0 sm:$0xff] }
0x1e56   :  { %2889 = vmatpush.bf16.msra.mxu0 %v2862_v27  ;;  %v2825_v3 = vpop.xlane.xlu1 %2824 }
0x1e5a   :  { %2890 = vmatpush.bf16.msra.mxu0 %v2860_v47 }
0x1e5d   :  { %4043 = vmatmul.msk.bf16.vlgmr.msra.gmra.mxu0 %vm332_vm9, %v2851_v54 }
0x1e66   :  { %v2831_v38 = vpop.xlane.xlu1 %2830 }
0x1e7c   :  { %v2822_v12 = vpop.xlane.xlu0 %2821 }
0x1e7d   :  { %4547 = vrcp.f32 %v2822_v12 }
0x1e83   :  { %v4548_v18 = vpop.eup %4547 }
0x1e84   :  { %v2846_v20 = vmul.f32 %v4548_v18, %v4536_v59  ;;  %v2828_v26 = vpop.xlane.xlu0 %2827 }
0x1e85   :  { %4549 = vrcp.f32 %v2828_v26 }
0x1e86   :  { %v2852_v5 = vpack.c.bf16 %v2846_v20, %v2845_v16  ;;  %4551 = vrcp.f32 %v2825_v3  ;;  %v4361_v16 = vld [vmem:[%s6025_s3 + $0x1d0] ss:$0 sm:$0xff]  ;;  %v4167_v3 = vld [vmem:[%s6024_s2 + $0x148] sm:$0xff] }
0x1e87   :  { %3063 = vmatpush.bf16.msra.mxu2 %v4167_v3 }
0x1e88   :  { %4044 = vmatmul.msk.bf16.gmra.mxu0 %vm332_vm9, %v2852_v5 }
0x1e8b   :  { %v4550_v7 = vpop.eup %4549 }
0x1e8c   :  { %v4552_v28 = vpop.eup %4551  ;;  %v2848_v29 = vmul.f32 %v4550_v7, %v4538_v62  ;;  %v2834_v15 = vpop.xlane.xlu0 %2833 }
0x1e8d   :  { %v2847_v33 = vmul.f32 %v4552_v28, %v5758_v48  ;;  %4553 = vrcp.f32 %v2834_v15 }
0x1e8e   :  { %4555 = vrcp.f32 %v2831_v38 }
0x1e8f   :  { %v2853_v42 = vpack.c.bf16 %v2848_v29, %v2847_v33 }
0x1e93   :  { %v4554_v39 = vpop.eup %4553 }
0x1e94   :  { %v4556_v40 = vpop.eup %4555  ;;  %v2850_v21 = vmul.f32 %v4554_v39, %v4540_v50  ;;  %v4166_v39 = vld [vmem:[%s6024_s2 + $0x140] sm:$0xff] }
0x1e95   :  { %v2849_v41 = vmul.f32 %v4556_v40, %v5762_v43  ;;  %v4164_v43 = vld [vmem:[%s6024_s2 + $0x130] sm:$0xff]  ;;  %3064 = vmatpush.bf16.msra.mxu2 %v4166_v39 }
0x1e96   :  { %2971 = vmatpush.bf16.msra.mxu3 %v4164_v43 }
0x1e97   :  { %v2854_v35 = vpack.c.bf16 %v2850_v21, %v2849_v41 }
0x1e98   :  { %4045 = vmatmul.msk.bf16.gmra.mxu0 %vm332_vm9, %v2853_v42 }
0x1e9a   :  { %3095 = vmatpush.bf16.msrb.mxu3 %v4169_v24 }
0x1e9e   :  { %3096 = vmatpush.bf16.msrb.mxu3 %v4168_v34 }
0x1ea8   :  { %4046 = vmatmul.msk.bf16.gmra.mxu0 %vm332_vm9, %v2854_v35 }
0x1eda   :  { %v2892_v44 = vpop.f32.mrf.mxu0 }
0x1ee2   :  { %v2894_v30 = vpop.f32.mrf.mxu0 }
0x1f05   :  { %v2897_v45 = vpop.f32.mrf.mxu0 }
0x1f0d   :  { %v2899_v31 = vpop.f32.mrf.mxu0 }
0x1f0e   :  { %v4284_v25 = vpack.i.bf16 %v2899_v31, %v2897_v45 }
0x1f10   :  { %4285 = vrot.lane.b32.xlu1 %v4284_v25, %s6045_s16 }
0x1f15   :  { %v2902_v46 = vpop.f32.mrf.mxu0 }
0x1f1d   :  { %v2904_v23 = vpop.f32.mrf.mxu0 }
0x1f1e   :  { %v4289_v48 = vpack.i.bf16 %v2904_v23, %v2902_v46 }
0x1f20   :  { %4290 = vrot.lane.b32.xlu0 %v4289_v48, %s6046_s26 }
0x1f25   :  { %v2907_v49 = vpop.f32.mrf.mxu0 }
0x1f2d   :  { %v2909_v53 = vpop.f32.mrf.mxu0 }
0x1f2e   :  { %v4294_v22 = vpack.i.bf16 %v2909_v53, %v2907_v49 }
0x1f30   :  { %4295 = vrot.lane.b32.xlu1 %v4294_v22, %s6047_s29 }
0x1f82   :  { %v4286_v17 = vpop.permute.xlu1 %4285 }
0x1f83   :  { %v4288_v52 = vunpack.i.h.bf16 %v4286_v17  ;;  %v4287_v57 = vunpack.i.l.bf16 %v4286_v17 }
0x1f85   :  { %v2937_v60 = vsel %vm263_vm8, %v2894_v30, %v4288_v52  ;;  %v2936_v32 = vsel %vm263_vm8, %v2892_v44, %v4287_v57 }
0x1f92   :  { %v4291_v36 = vpop.permute.xlu0 %4290 }
0x1f93   :  { %v4293_v58 = vunpack.i.h.bf16 %v4291_v36  ;;  %v4292_v0 = vunpack.i.l.bf16 %v4291_v36  ;;  %v2980_v36 = vld [vmem:[%s6025_s3 + $0x1f0] sm:$0x3] }
0x1f95   :  { %v2939_v1 = vsel %vm508_vm10, %v2937_v60, %v4293_v58  ;;  %v2938_v50 = vsel %vm508_vm10, %v2936_v32, %v4292_v0 }
0x1fa2   :  { %v4296_v59 = vpop.permute.xlu1 %4295 }
0x1fa3   :  { %v4298_v61 = vunpack.i.h.bf16 %v4296_v59  ;;  %v4297_v62 = vunpack.i.l.bf16 %v4296_v59 }
0x1fa5   :  { %v2940_v63 = vsel %vm511_vm11, %v2938_v50, %v4297_v62  ;;  %v2941_v19 = vsel %vm511_vm11, %v2939_v1, %v4298_v61  ;;  %v3029_v61 = vperm.slane %v2980_v36, 0 }
0x1fa6   :  { %v2942_v2 = vpack.c.bf16 %v2941_v19, %v2940_v63 }
0x1fa8   :  { %4055 = vmatmul.msk.bf16.vlgmr.msra.gmra.mxu3 %vm164_vm7, %v2942_v2 }
0x1fb8   :  { %4073 = vmatmul.msk.bf16.vlgmr.msrb.gmra.mxu3 %vm164_vm7, %v5464_v10 }
0x202b   :  { %v2973_v55 = vpop.f32.mrf.mxu3 }
0x202c   :  { %v2974_v27 = vadd.f32 %v4360_v37, %v2973_v55 }
0x202e   :  { %v5805_v51 = vadd.f32 %v2974_v27, %v5676_v13 }
0x2030   :  { %v2981_v6 = vsel %vm164_vm7, %v5805_v51, 0.0  ;;  %v2989_v47 = vmul.f32 %v5805_v51, %v5805_v51 }
0x2031   :  { %2982 = vadd.xlane.f32.xlu0 %v2981_v6 }
0x2032   :  { %v2991_v9 = vsel %vm164_vm7, %v2989_v47, 0.0 }
0x2033   :  { %v2975_v54 = vpop.f32.mrf.mxu3  ;;  %2992 = vadd.xlane.f32.xlu2 %v2991_v9 }
0x2034   :  { %v2976_v10 = vadd.f32 %v4360_v37, %v2975_v54 }
0x2036   :  { %v5813_v11 = vadd.f32 %v2976_v10, %v5678_v8 }
0x2038   :  { %v2984_v12 = vsel %vm164_vm7, %v5813_v11, 0.0  ;;  %v2990_v13 = vmul.f32 %v5813_v11, %v5813_v11 }
0x2039   :  { %2985 = vadd.xlane.f32.xlu1 %v2984_v12 }
0x203a   :  { %v2994_v14 = vsel %vm164_vm7, %v2990_v13, 0.0 }
0x203b   :  { %v3098_v18 = vpop.f32.mrf.mxu3  ;;  %2995 = vadd.xlane.f32.xlu0 %v2994_v14  ;;  %v4362_v14 = vld [vmem:[%s6025_s3 + $0x1c8] ss:$0 sm:$0xff] }
0x203c   :  { %v5825_v8 = vadd.f32 %v4361_v16, %v3098_v18 }
0x2043   :  { %v3100_v20 = vpop.f32.mrf.mxu3 }
0x2044   :  { %v5823_v26 = vadd.f32 %v4361_v16, %v3100_v20 }
0x2046   :  { %v4309_v5 = vpack.i.bf16 %v5823_v26, %v5825_v8 }
0x204b   :  { %4310 = vrot.lane.b32.xlu2 %v4309_v5, %s4679_s12 }
0x204f   :  { %4305 = vrot.lane.b32.xlu0 %v4309_v5, %s4680_s14 }
0x2052   :  { %4300 = vrot.lane.b32.xlu1 %v4309_v5, %s4681_s15 }
0x2087   :  { %3147 = vxpose.xlu1.b32.start [1/8] (short) (narrow) %v5825_v8, 8 }
0x208f   :  { %3148 = vxpose.xlu1.b32.cont [2/8] (short) (narrow) %v5823_v26, 8 }
0x20a4   :  { %v2983_v7 = vpop.xlane.xlu0 %2982 }
0x20a5   :  { %v2987_v28 = vmul.f32 %v2983_v7, %v4957_v4 }
0x20a6   :  { %v2993_v29 = vpop.xlane.xlu2 %2992 }
0x20a7   :  { %v2999_v33 = vmul.f32 %v2987_v28, %v2987_v28  ;;  %v2997_v15 = vmul.f32 %v2993_v29, %v4957_v4  ;;  %v3025_v0 = vsub.f32 %v5805_v51, %v2987_v28  ;;  %v3032_v51 = vperm.slane %v2980_v36, 1 }
0x20a9   :  { %v3001_v42 = vsub.f32 %v2997_v15, %v2999_v33 }
0x20ab   :  { %v3003_v38 = vadd.f32 1e-05, %v3001_v42 }
0x20ac   :  { %v2986_v40 = vpop.xlane.xlu1 %2985 }
0x20ad   :  { %4557 = vrsqrt.f32 %v3003_v38  ;;  %v2988_v21 = vmul.f32 %v2986_v40, %v4957_v4  ;;  %vm3011_vm14 = vweird.f32 %v3003_v38 }
0x20ae   :  { %v4311_v41 = vpop.permute.xlu2 %4310  ;;  %v2996_v35 = vpop.xlane.xlu0 %2995 }
0x20af   :  { %v3000_v44 = vmul.f32 %v2988_v21, %v2988_v21  ;;  %v4313_v30 = vunpack.i.h.bf16 %v4311_v41  ;;  %v4312_v45 = vunpack.i.l.bf16 %v4311_v41  ;;  %v2998_v31 = vmul.f32 %v2996_v35, %v4957_v4 }
0x20b0   :  { %v3026_v37 = vsub.f32 %v5813_v11, %v2988_v21  ;;  %v3332_v11 = vpack.c.bf16 %v5823_v26, %v5825_v8 }
0x20b1   :  { %v5844_v25 = vpack.c.bf16 %v4313_v30, %v4312_v45  ;;  %v3002_v46 = vsub.f32 %v2998_v31, %v3000_v44 }
0x20b3   :  { %v4558_v23 = vpop.eup %4557  ;;  %v3004_v49 = vadd.f32 1e-05, %v3002_v46 }
0x20b4   :  { %v3006_v48 = vmul.f32 %v4558_v23, %v3003_v38  ;;  %vm3012_vm1 = vweird.f32 %v4558_v23 }
0x20b5   :  { %4559 = vrsqrt.f32 %v3004_v49  ;;  %vm3013_vm2 = vmor %vm3011_vm14, %vm3012_vm1  ;;  %vm3021_vm12 = vweird.f32 %v3004_v49 }
0x20b6   :  { %v3007_v53 = vmul.f32 %v4558_v23, %v3006_v48 }
0x20b8   :  { %v3008_v22 = vmul.f32 0.5, %v3007_v53 }
0x20ba   :  { %v3009_v56 = vsub.f32 1.5, %v3008_v22 }
0x20bb   :  { %v4560_v43 = vpop.eup %4559 }
0x20bc   :  { %v3010_v24 = vmul.f32 %v4558_v23, %v3009_v56  ;;  %v3016_v34 = vmul.f32 %v4560_v43, %v3004_v49  ;;  %vm3022_vm15 = vweird.f32 %v4560_v43 }
0x20bd   :  { %vm3023_vm5 = vmor %vm3021_vm12, %vm3022_vm15 }
0x20be   :  { %v3017_v17 = vmul.f32 %v4560_v43, %v3016_v34  ;;  %v3014_v52 = vsel %vm3013_vm2, %v4558_v23, %v3010_v24  ;;  %v4618_v23 = vld [vmem:[%s6025_s3 + $0xc8] sm:$0xff]  ;;  %v4619_v34 = vld [vmem:[%s6025_s3 + $0xd0] sm:$0xff] }
0x20bf   :  { %v3027_v62 = vmul.f32 %v3025_v0, %v3014_v52 }
0x20c0   :  { %v3018_v57 = vmul.f32 0.5, %v3017_v17 }
0x20c1   :  { %v4306_v58 = vpop.permute.xlu0 %4305  ;;  %v3030_v6 = vmul.f32 %v3029_v61, %v3027_v62 }
0x20c2   :  { %v4308_v59 = vunpack.i.h.bf16 %v4306_v58  ;;  %v4307_v60 = vunpack.i.l.bf16 %v4306_v58  ;;  %v3019_v32 = vsub.f32 1.5, %v3018_v57 }
0x20c3   :  { %v5855_v54 = vadd.f32 %v3032_v51, %v3030_v6 }
0x20c4   :  { %v5850_v1 = vpack.c.bf16 %v4308_v59, %v4307_v60  ;;  %v4301_v50 = vpop.permute.xlu1 %4300  ;;  %v3020_v63 = vmul.f32 %v4560_v43, %v3019_v32 }
0x20c5   :  { %v4303_v19 = vunpack.i.h.bf16 %v4301_v50  ;;  %v4302_v2 = vunpack.i.l.bf16 %v4301_v50 }
0x20c6   :  { %v3024_v55 = vsel %vm3023_vm5, %v4560_v43, %v3020_v63 }
0x20c7   :  { %v5853_v27 = vpack.c.bf16 %v4303_v19, %v4302_v2  ;;  %3149 = vxpose.xlu1.b32.cont [3/8] (short) (narrow) %v4302_v2, 8  ;;  %v3028_v47 = vmul.f32 %v3026_v37, %v3024_v55  ;;  %v4621_v55 = vld [vmem:[%s6025_s3 + $0xe0] sm:$0xff] }
0x20c9   :  { %v3031_v9 = vmul.f32 %v3029_v61, %v3028_v47 }
0x20cb   :  { %v5857_v10 = vadd.f32 %v3032_v51, %v3031_v9 }
0x20cd   :  { %v3035_v12 = vpack.c.bf16 %v5857_v10, %v5855_v54 }
0x20cf   :  { %3150 = vxpose.xlu1.b32.cont [4/8] (short) (narrow) %v4303_v19, 8  ;;  %4064 = vmatmul.msk.bf16.vlgmr.msra.gmra.mxu2 %vm164_vm7, %v3035_v12 }
0x20d7   :  { %3151 = vxpose.xlu1.b32.cont [5/8] (short) (narrow) %v4307_v60, 8  ;;  %v4620_v60 = vld [vmem:[%s6025_s3 + $0xd8] sm:$0xff] }
0x20df   :  { %3152 = vxpose.xlu1.b32.cont [6/8] (short) (narrow) %v4308_v59, 8 }
0x20e7   :  { %3153 = vxpose.xlu1.b32.cont [7/8] (short) (narrow) %v4312_v45, 8 }
0x20ef   :  { %3154 = vxpose.xlu1.b32.end [8/8] (short) (narrow) %v4313_v30, 8  ;;  %v4617_v30 = vld [vmem:[%s6025_s3 + $0xc0] sm:$0xff] }
0x2149   :  { %3340 = vrot.lane.b32.xlu1 %v3332_v11, %s4682_s17 }
0x2152   :  { %v3066_v13 = vpop.f32.mrf.mxu2 }
0x2153   :  { %v3067_v20 = vadd.f32 %v4362_v14, %v3066_v13 }
0x215a   :  { %v3068_v18 = vpop.f32.mrf.mxu2 }
0x215b   :  { %v3163_v16 = vpop.trf.xlu1  ;;  %v3069_v5 = vadd.f32 %v4362_v14, %v3068_v18  ;;  %v4622_v18 = vld [vmem:[%s6025_s3 + $0xe8] sm:$0xff] }
0x215c   :  { %v3179_v3 = vpack.c.bf16 %v3163_v16, %v3163_v16 }
0x215d   :  { %v4324_v28 = vpack.i.bf16 %v3069_v5, %v3067_v20  ;;  %v3143_v29 = vpack.c.bf16 %v3069_v5, %v3067_v20  ;;  %v4623_v5 = vld [vmem:[%s6025_s3 + $0xf0] sm:$0xff] }
0x215e   :  { %v3193_v7 = vsel %vm124_vm3, %v3179_v3, 0 }
0x215f   :  { %3202 = vmatpush.bf16.msrb.mxu2 %v3193_v7  ;;  %4325 = vrot.lane.b32.xlu2 %v4324_v28, %s4679_s12 }
0x2160   :  { %4315 = vrot.lane.b32.xlu0 %v4324_v28, %s4681_s15 }
0x2162   :  { %4074 = vmatmul.msk.bf16.vlgmr.msrb.gmra.mxu2 %vm263_vm8, %v3143_v29 }
0x2167   :  { %3346 = vrot.lane.b32.xlu2 %v5844_v25, %s4682_s17 }
0x2168   :  { %4320 = vrot.lane.b32.xlu0 %v4324_v28, %s4680_s14 }
0x21b9   :  { %v4326_v26 = vpop.permute.xlu2 %4325 }
0x21ba   :  { %v4328_v49 = vunpack.i.h.bf16 %v4326_v26  ;;  %v4327_v53 = vunpack.i.l.bf16 %v4326_v26 }
0x21bc   :  { %v3146_v56 = vpack.c.bf16 %v4328_v49, %v4327_v53 }
0x21c1   :  { %v3347_v8 = vpop.permute.xlu2 %3346 }
0x21c2   :  { %3368 = vmatpush.bf16.msra.mxu3 %v3347_v8  ;;  %v4624_v8 = vld [vmem:[%s6025_s3 + $0xf8] sm:$0xff] }
0x21d2   :  { %v4316_v33 = vpop.permute.xlu0 %4315 }
0x21d3   :  { %v4318_v15 = vunpack.i.h.bf16 %v4316_v33  ;;  %v4317_v42 = vunpack.i.l.bf16 %v4316_v33 }
0x21d5   :  { %v3144_v38 = vpack.c.bf16 %v4318_v15, %v4317_v42 }
0x21d7   :  { %4075 = vmatmul.msk.bf16.gmra.mxu2 %vm263_vm8, %v3144_v38 }
0x21da   :  { %v4321_v39 = vpop.permute.xlu0 %4320 }
0x21db   :  { %v4323_v40 = vunpack.i.h.bf16 %v4321_v39  ;;  %v4322_v21 = vunpack.i.l.bf16 %v4321_v39 }
0x21dd   :  { %v3145_v41 = vpack.c.bf16 %v4323_v40, %v4322_v21 }
0x21e5   :  { %v3204_v35 = vpop.f32.mrf.mxu2 }
0x21e6   :  { %v3224_v44 = vmul.f32 0.35355338, %v3204_v35 }
0x21e7   :  { %4076 = vmatmul.msk.bf16.gmra.mxu2 %vm263_vm8, %v3145_v41 }
0x21e8   :  { %v3232_v45 = vadd.f32 %v4617_v30, %v3224_v44 }
0x21ea   :  { %v3240_v31 = vsel %vm332_vm9, %v3232_v45, -inf }
0x21eb   :  { %3241 = vmax.xlane.f32.xlu0 %v3240_v31 }
0x21ed   :  { %v3206_v25 = vpop.f32.mrf.mxu2 }
0x21ee   :  { %v3225_v46 = vmul.f32 0.35355338, %v3206_v25 }
0x21f0   :  { %v3233_v48 = vadd.f32 %v4618_v23, %v3225_v46 }
0x21f2   :  { %v3243_v22 = vsel %vm332_vm9, %v3233_v48, -inf }
0x21f3   :  { %3244 = vmax.xlane.f32.xlu2 %v3243_v22 }
0x21f7   :  { %4077 = vmatmul.msk.bf16.gmra.mxu2 %vm263_vm8, %v3146_v56 }
0x225a   :  { %v3209_v43 = vpop.f32.mrf.mxu2 }
0x225b   :  { %v3226_v24 = vmul.f32 0.35355338, %v3209_v43 }
0x225d   :  { %v3234_v17 = vadd.f32 %v4619_v34, %v3226_v24 }
0x225e   :  { %v3242_v36 = vpop.xlane.xlu0 %3241 }
0x225f   :  { %v3264_v52 = vsub.f32 %v3232_v45, %v3242_v36  ;;  %v3246_v57 = vsel %vm332_vm9, %v3234_v17, -inf }
0x2260   :  { %3247 = vmax.xlane.f32.xlu2 %v3246_v57 }
0x2261   :  { %v3272_v58 = vmul.f32 1.442695, %v3264_v52 }
0x2262   :  { %v3211_v0 = vpop.f32.mrf.mxu2 }
0x2263   :  { %v3227_v59 = vmul.f32 0.35355338, %v3211_v0  ;;  %4561 = vpow2.f32 %v3272_v58 }
0x2265   :  { %v3235_v32 = vadd.f32 %v4620_v60, %v3227_v59 }
0x2266   :  { %v3245_v61 = vpop.xlane.xlu2 %3244 }
0x2267   :  { %v3265_v62 = vsub.f32 %v3233_v48, %v3245_v61  ;;  %v3249_v50 = vsel %vm332_vm9, %v3235_v32, -inf }
0x2268   :  { %3250 = vmax.xlane.f32.xlu0 %v3249_v50 }
0x2269   :  { %v3274_v63 = vmul.f32 1.442695, %v3265_v62  ;;  %v5894_v37 = vpop.eup %4561 }
0x226a   :  { %v3214_v19 = vpop.f32.mrf.mxu2  ;;  %v3288_v6 = vsel %vm332_vm9, %v5894_v37, 0.0 }
0x226b   :  { %v3228_v2 = vmul.f32 0.35355338, %v3214_v19  ;;  %4563 = vpow2.f32 %v3274_v63  ;;  %v3341_v19 = vpop.permute.xlu1 %3340 }
0x226d   :  { %v3236_v51 = vadd.f32 %v4621_v55, %v3228_v2 }
0x226f   :  { %v3252_v47 = vsel %vm332_vm9, %v3236_v51, -inf }
0x2270   :  { %3289 = vadd.xlane.f32.xlu0 %v3288_v6  ;;  %3253 = vmax.xlane.f32.xlu2 %v3252_v47 }
0x2271   :  { %v5902_v12 = vpop.eup %4563 }
0x2272   :  { %v3216_v9 = vpop.f32.mrf.mxu2  ;;  %v3291_v13 = vsel %vm332_vm9, %v5902_v12, 0.0 }
0x2273   :  { %v3229_v11 = vmul.f32 0.35355338, %v3216_v9 }
0x2275   :  { %v3237_v16 = vadd.f32 %v4622_v18, %v3229_v11 }
0x2277   :  { %v3255_v7 = vsel %vm332_vm9, %v3237_v16, -inf }
0x2278   :  { %3292 = vadd.xlane.f32.xlu0 %v3291_v13 }
0x227a   :  { %v3219_v14 = vpop.f32.mrf.mxu2 }
0x227b   :  { %v3230_v20 = vmul.f32 0.35355338, %v3219_v14 }
0x227d   :  { %v3238_v3 = vadd.f32 %v4623_v5, %v3230_v20 }
0x227f   :  { %v3258_v28 = vsel %vm332_vm9, %v3238_v3, -inf }
0x2280   :  { %3256 = vmax.xlane.f32.xlu0 %v3255_v7  ;;  %3259 = vmax.xlane.f32.xlu2 %v3258_v28 }
0x2282   :  { %v3221_v29 = vpop.f32.mrf.mxu2 }
0x2283   :  { %v3231_v26 = vmul.f32 0.35355338, %v3221_v29 }
0x2285   :  { %v3239_v33 = vadd.f32 %v4624_v8, %v3231_v26 }
0x2287   :  { %v3261_v15 = vsel %vm332_vm9, %v3239_v33, -inf }
0x2288   :  { %3262 = vmax.xlane.f32.xlu0 %v3261_v15 }
0x2298   :  { %3342 = vrot.lane.b32.xlu2 %v5853_v27, %s4682_s17 }
0x229c   :  { %3344 = vrot.lane.b32.xlu0 %v5850_v1, %s4682_s17 }
0x22d3   :  { %v3248_v42 = vpop.xlane.xlu2 %3247 }
0x22d4   :  { %v3266_v38 = vsub.f32 %v3234_v17, %v3248_v42 }
0x22d6   :  { %v3276_v39 = vmul.f32 1.442695, %v3266_v38 }
0x22d8   :  { %4565 = vpow2.f32 %v3276_v39 }
0x22db   :  { %v3251_v40 = vpop.xlane.xlu0 %3250 }
0x22dc   :  { %v3267_v21 = vsub.f32 %v3235_v32, %v3251_v40 }
0x22de   :  { %v4566_v41 = vpop.eup %4565  ;;  %v3278_v35 = vmul.f32 1.442695, %v3267_v21 }
0x22df   :  { %v3294_v44 = vsel %vm332_vm9, %v4566_v41, 0.0 }
0x22e0   :  { %4567 = vpow2.f32 %v3278_v35  ;;  %3295 = vadd.xlane.f32.xlu2 %v3294_v44 }
0x22e3   :  { %v3290_v30 = vpop.xlane.xlu0 %3289  ;;  %v3254_v45 = vpop.xlane.xlu2 %3253 }
0x22e4   :  { %v3268_v31 = vsub.f32 %v3236_v51, %v3254_v45 }
0x22e6   :  { %v4568_v25 = vpop.eup %4567  ;;  %v3280_v27 = vmul.f32 1.442695, %v3268_v31 }
0x22e7   :  { %v3297_v46 = vsel %vm332_vm9, %v4568_v25, 0.0 }
0x22e8   :  { %4569 = vpow2.f32 %v3280_v27  ;;  %3298 = vadd.xlane.f32.xlu0 %v3297_v46  ;;  %v4170_v27 = vld [vmem:[%s6024_s2 + $0x160] sm:$0xff] }
0x22eb   :  { %v3293_v1 = vpop.xlane.xlu0 %3292 }
0x22ee   :  { %v4570_v23 = vpop.eup %4569 }
0x22ef   :  { %v3300_v48 = vsel %vm332_vm9, %v4570_v23, 0.0 }
0x22f0   :  { %3301 = vadd.xlane.f32.xlu2 %v3300_v48 }
0x22f3   :  { %v3257_v49 = vpop.xlane.xlu0 %3256  ;;  %v3260_v53 = vpop.xlane.xlu2 %3259 }
0x22f4   :  { %v3269_v22 = vsub.f32 %v3237_v16, %v3257_v49  ;;  %v3270_v56 = vsub.f32 %v3238_v3, %v3260_v53 }
0x22f6   :  { %v3282_v43 = vmul.f32 1.442695, %v3269_v22  ;;  %v3284_v24 = vmul.f32 1.442695, %v3270_v56 }
0x22f8   :  { %4571 = vpow2.f32 %v3282_v43 }
0x22f9   :  { %4573 = vpow2.f32 %v3284_v24 }
0x22fb   :  { %v3263_v34 = vpop.xlane.xlu0 %3262  ;;  %v3343_v62 = vpop.permute.xlu2 %3342 }
0x22fc   :  { %v3271_v17 = vsub.f32 %v3239_v33, %v3263_v34 }
0x22fe   :  { %v4572_v36 = vpop.eup %4571  ;;  %v3286_v52 = vmul.f32 1.442695, %v3271_v17 }
0x22ff   :  { %v4574_v57 = vpop.eup %4573  ;;  %v3303_v58 = vsel %vm332_vm9, %v4572_v36, 0.0 }
0x2300   :  { %4575 = vpow2.f32 %v3286_v52  ;;  %v3306_v0 = vsel %vm332_vm9, %v4574_v57, 0.0  ;;  %3304 = vadd.xlane.f32.xlu0 %v3303_v58 }
0x2301   :  { %3307 = vadd.xlane.f32.xlu2 %v3306_v0  ;;  %4577 = vrcp.f32 %v3293_v1  ;;  %v4173_v0 = vld [vmem:[%s6024_s2 + $0x178] sm:$0xff] }
0x2302   :  { %4579 = vrcp.f32 %v3290_v30  ;;  %3544 = vmatpush.bf16.msrb.mxu0 %v4173_v0 }
0x2306   :  { %v4576_v59 = vpop.eup %4575 }
0x2307   :  { %v3309_v60 = vsel %vm332_vm9, %v4576_v59, 0.0  ;;  %v4578_v61 = vpop.eup %4577 }
0x2308   :  { %3310 = vadd.xlane.f32.xlu0 %v3309_v60  ;;  %v4580_v50 = vpop.eup %4579  ;;  %v3321_v63 = vmul.f32 %v4578_v61, %v5902_v12 }
0x2309   :  { %v3320_v2 = vmul.f32 %v4580_v50, %v5894_v37 }
0x230b   :  { %v3328_v55 = vpack.c.bf16 %v3321_v63, %v3320_v2 }
0x230e   :  { %v3345_v32 = vpop.permute.xlu0 %3344 }
0x230f   :  { %3369 = vmatpush.bf16.msra.mxu3 %v3345_v32 }
0x2313   :  { %3370 = vmatpush.bf16.msra.mxu3 %v3343_v62 }
0x2317   :  { %3371 = vmatpush.bf16.msra.mxu3 %v3341_v19 }
0x231a   :  { %4078 = vmatmul.msk.bf16.vlgmr.msra.gmra.mxu3 %vm332_vm9, %v3328_v55 }
0x2353   :  { %v3296_v51 = vpop.xlane.xlu2 %3295 }
0x2354   :  { %4581 = vrcp.f32 %v3296_v51 }
0x235a   :  { %v4582_v47 = vpop.eup %4581 }
0x235b   :  { %v3299_v6 = vpop.xlane.xlu0 %3298  ;;  %v3322_v11 = vmul.f32 %v4582_v47, %v4566_v41 }
0x235c   :  { %4583 = vrcp.f32 %v3299_v6 }
0x2362   :  { %v4584_v9 = vpop.eup %4583 }
0x2363   :  { %v3323_v13 = vmul.f32 %v4584_v9, %v4568_v25  ;;  %v3302_v18 = vpop.xlane.xlu2 %3301  ;;  %v4171_v25 = vld [vmem:[%s6024_s2 + $0x168] sm:$0xff] }
0x2364   :  { %4585 = vrcp.f32 %v3302_v18  ;;  %3451 = vmatpush.bf16.msrb.mxu1 %v4171_v25 }
0x2365   :  { %v3329_v14 = vpack.c.bf16 %v3323_v13, %v3322_v11 }
0x2367   :  { %4079 = vmatmul.msk.bf16.gmra.mxu3 %vm332_vm9, %v3329_v14 }
0x2368   :  { %3452 = vmatpush.bf16.msrb.mxu1 %v4170_v27 }
0x236a   :  { %v4586_v37 = vpop.eup %4585 }
0x236b   :  { %v3324_v20 = vmul.f32 %v4586_v37, %v4570_v23 }
0x2373   :  { %v3305_v12 = vpop.xlane.xlu0 %3304 }
0x2374   :  { %4587 = vrcp.f32 %v3305_v12  ;;  %v3308_v28 = vpop.xlane.xlu2 %3307 }
0x237a   :  { %v4588_v16 = vpop.eup %4587 }
0x237b   :  { %v3325_v5 = vmul.f32 %v4588_v16, %v4572_v36  ;;  %v3311_v3 = vpop.xlane.xlu0 %3310 }
0x237c   :  { %4589 = vrcp.f32 %v3311_v3 }
0x237d   :  { %v3330_v7 = vpack.c.bf16 %v3325_v5, %v3324_v20  ;;  %4591 = vrcp.f32 %v3308_v28 }
0x237f   :  { %4080 = vmatmul.msk.bf16.gmra.mxu3 %vm332_vm9, %v3330_v7 }
0x2382   :  { %v4590_v29 = vpop.eup %4589 }
0x2383   :  { %v4592_v26 = vpop.eup %4591  ;;  %v3327_v8 = vmul.f32 %v4590_v29, %v4576_v59  ;;  %v4363_v59 = vld [vmem:[%s6025_s3 + $0x1d8] ss:$0 sm:$0xff] }
0x2384   :  { %v3326_v33 = vmul.f32 %v4592_v26, %v4574_v57 }
0x2386   :  { %v3331_v15 = vpack.c.bf16 %v3327_v8, %v3326_v33 }
0x238f   :  { %4081 = vmatmul.msk.bf16.gmra.mxu3 %vm332_vm9, %v3331_v15 }
0x239d   :  { %v3373_v42 = vpop.f32.mrf.mxu3 }
0x23a5   :  { %v3375_v38 = vpop.f32.mrf.mxu3 }
0x23ea   :  { %v3378_v39 = vpop.f32.mrf.mxu3 }
0x23f2   :  { %v3380_v40 = vpop.f32.mrf.mxu3 }
0x23f3   :  { %v4329_v21 = vpack.i.bf16 %v3380_v40, %v3378_v39 }
0x23f5   :  { %4330 = vrot.lane.b32.xlu2 %v4329_v21, %s6045_s16  ;;  %v3461_v21 = vld [vmem:[%s6025_s3 + $0x1f8] sm:$0x3] }
0x2402   :  { %v3383_v41 = vpop.f32.mrf.mxu3 }
0x240a   :  { %v3385_v35 = vpop.f32.mrf.mxu3 }
0x240b   :  { %v4334_v44 = vpack.i.bf16 %v3385_v35, %v3383_v41 }
0x240d   :  { %4335 = vrot.lane.b32.xlu0 %v4334_v44, %s6046_s26 }
0x2412   :  { %v3388_v30 = vpop.f32.mrf.mxu3 }
0x241a   :  { %v3390_v45 = vpop.f32.mrf.mxu3 }
0x241b   :  { %v4339_v31 = vpack.i.bf16 %v3390_v45, %v3388_v30  ;;  %v3510_v45 = vperm.slane %v3461_v21, 0 }
0x241d   :  { %4340 = vrot.lane.b32.xlu2 %v4339_v31, %s6047_s29 }
0x244f   :  { %v4331_v46 = vpop.permute.xlu2 %4330 }
0x2450   :  { %v4333_v1 = vunpack.i.h.bf16 %v4331_v46  ;;  %v4332_v23 = vunpack.i.l.bf16 %v4331_v46 }
0x2452   :  { %v3418_v56 = vsel %vm263_vm8, %v3375_v38, %v4333_v1  ;;  %v3417_v43 = vsel %vm263_vm8, %v3373_v42, %v4332_v23  ;;  %v3513_v1 = vperm.slane %v3461_v21, 1 }
0x2477   :  { %v4341_v48 = vpop.permute.xlu2 %4340 }
0x2478   :  { %v4343_v24 = vunpack.i.h.bf16 %v4341_v48  ;;  %v4342_v34 = vunpack.i.l.bf16 %v4341_v48 }
0x247f   :  { %v4336_v49 = vpop.permute.xlu0 %4335 }
0x2480   :  { %v4338_v53 = vunpack.i.h.bf16 %v4336_v49  ;;  %v4337_v22 = vunpack.i.l.bf16 %v4336_v49 }
0x2482   :  { %v3420_v17 = vsel %vm508_vm10, %v3418_v56, %v4338_v53  ;;  %v3419_v36 = vsel %vm508_vm10, %v3417_v43, %v4337_v22  ;;  %v4177_v43 = vld [vmem:[%s6024_s2 + $0x198] sm:$0xff] }
0x2483   :  { %v3421_v52 = vsel %vm511_vm11, %v3419_v36, %v4342_v34  ;;  %v3422_v57 = vsel %vm511_vm11, %v3420_v17, %v4343_v24  ;;  %3594 = vmatpush.bf16.msra.mxu1 %v4177_v43  ;;  %v4176_v24 = vld [vmem:[%s6024_s2 + $0x190] sm:$0xff]  ;;  %v4175_v34 = vld [vmem:[%s6024_s2 + $0x188] sm:$0xff]  ;;  %v4174_v17 = vld [vmem:[%s6024_s2 + $0x180] sm:$0xff] }
0x2484   :  { %v3423_v58 = vpack.c.bf16 %v3422_v57, %v3421_v52  ;;  %v4364_v52 = vld [vmem:[%s6025_s3 + $0x1e0] ss:$0 sm:$0xff] }
0x2486   :  { %4090 = vmatmul.msk.bf16.vlgmr.msrb.gmra.mxu1 %vm164_vm7, %v3423_v58 }
0x2487   :  { %3595 = vmatpush.bf16.msra.mxu1 %v4176_v24 }
0x248b   :  { %3596 = vmatpush.bf16.msra.mxu1 %v4175_v34 }
0x248f   :  { %3597 = vmatpush.bf16.msra.mxu1 %v4174_v17  ;;  %v4366_v17 = vld [vmem:[%s6025_s3 + $0x100] ss:$0 sm:$0xff] }
0x2503   :  { %v3454_v60 = vpop.f32.mrf.mxu1 }
0x2504   :  { %v3455_v32 = vadd.f32 %v4363_v59, %v3454_v60 }
0x2506   :  { %v3459_v61 = vadd.f32 %v3455_v32, %v5855_v54 }
0x2508   :  { %v3462_v62 = vsel %vm164_vm7, %v3459_v61, 0.0  ;;  %v3470_v50 = vmul.f32 %v3459_v61, %v3459_v61 }
0x2509   :  { %3463 = vadd.xlane.f32.xlu0 %v3462_v62 }
0x250a   :  { %v3472_v63 = vsel %vm164_vm7, %v3470_v50, 0.0 }
0x250b   :  { %v3456_v19 = vpop.f32.mrf.mxu1  ;;  %3473 = vadd.xlane.f32.xlu1 %v3472_v63 }
0x250c   :  { %v3457_v2 = vadd.f32 %v4363_v59, %v3456_v19 }
0x250e   :  { %v3460_v55 = vadd.f32 %v3457_v2, %v5857_v10  ;;  %v4172_v10 = vld [vmem:[%s6024_s2 + $0x170] sm:$0xff] }
0x250f   :  { %3545 = vmatpush.bf16.msrb.mxu0 %v4172_v10 }
0x2510   :  { %v3465_v51 = vsel %vm164_vm7, %v3460_v55, 0.0  ;;  %v3471_v6 = vmul.f32 %v3460_v55, %v3460_v55 }
0x2511   :  { %3466 = vadd.xlane.f32.xlu2 %v3465_v51 }
0x2512   :  { %v3475_v47 = vsel %vm164_vm7, %v3471_v6, 0.0 }
0x2513   :  { %3476 = vadd.xlane.f32.xlu0 %v3475_v47 }
0x257c   :  { %v3464_v9 = vpop.xlane.xlu0 %3463 }
0x257d   :  { %v3468_v54 = vmul.f32 %v3464_v9, %v4957_v4 }
0x257e   :  { %v3474_v11 = vpop.xlane.xlu1 %3473 }
0x257f   :  { %v3480_v13 = vmul.f32 %v3468_v54, %v3468_v54  ;;  %v3478_v14 = vmul.f32 %v3474_v11, %v4957_v4  ;;  %v3506_v44 = vsub.f32 %v3459_v61, %v3468_v54  ;;  %v4365_v61 = vld [vmem:[%s6025_s3 + $0x1e8] ss:$0 sm:$0xff] }
0x2581   :  { %v3482_v18 = vsub.f32 %v3478_v14, %v3480_v13 }
0x2583   :  { %v3484_v12 = vadd.f32 1e-05, %v3482_v18 }
0x2584   :  { %v3467_v37 = vpop.xlane.xlu2 %3466 }
0x2585   :  { %4593 = vrsqrt.f32 %v3484_v12  ;;  %v3469_v16 = vmul.f32 %v3467_v37, %v4957_v4  ;;  %vm3492_vm8 = vweird.f32 %v3484_v12  ;;  %v4179_v37 = vld [vmem:[%s6024_s2 + $0x1a8] sm:$0xff] }
0x2586   :  { %v3477_v20 = vpop.xlane.xlu0 %3476  ;;  %3693 = vmatpush.bf16.msra.mxu0 %v4179_v37 }
0x2587   :  { %v3481_v5 = vmul.f32 %v3469_v16, %v3469_v16  ;;  %v3479_v3 = vmul.f32 %v3477_v20, %v4957_v4  ;;  %v3507_v27 = vsub.f32 %v3460_v55, %v3469_v16 }
0x2589   :  { %v3483_v7 = vsub.f32 %v3479_v3, %v3481_v5  ;;  %v4178_v5 = vld [vmem:[%s6024_s2 + $0x1a0] sm:$0xff] }
0x258a   :  { %3694 = vmatpush.bf16.msra.mxu0 %v4178_v5 }
0x258b   :  { %v4594_v28 = vpop.eup %4593  ;;  %v3485_v29 = vadd.f32 1e-05, %v3483_v7 }
0x258c   :  { %v3487_v26 = vmul.f32 %v4594_v28, %v3484_v12  ;;  %vm3493_vm3 = vweird.f32 %v4594_v28 }
0x258d   :  { %4595 = vrsqrt.f32 %v3485_v29  ;;  %vm3494_vm11 = vmor %vm3492_vm8, %vm3493_vm3  ;;  %vm3502_vm6 = vweird.f32 %v3485_v29 }
0x258e   :  { %v3488_v8 = vmul.f32 %v4594_v28, %v3487_v26 }
0x2590   :  { %v3489_v33 = vmul.f32 0.5, %v3488_v8 }
0x2592   :  { %v3490_v15 = vsub.f32 1.5, %v3489_v33 }
0x2593   :  { %v4596_v42 = vpop.eup %4595 }
0x2594   :  { %v3491_v38 = vmul.f32 %v4594_v28, %v3490_v15  ;;  %v3497_v39 = vmul.f32 %v4596_v42, %v3485_v29  ;;  %vm3503_vm4 = vweird.f32 %v4596_v42 }
0x2595   :  { %vm3504_vm13 = vmor %vm3502_vm6, %vm3503_vm4 }
0x2596   :  { %v3498_v40 = vmul.f32 %v4596_v42, %v3497_v39  ;;  %v3495_v41 = vsel %vm3494_vm11, %v4594_v28, %v3491_v38 }
0x2597   :  { %v3508_v31 = vmul.f32 %v3506_v44, %v3495_v41 }
0x2598   :  { %v3499_v35 = vmul.f32 0.5, %v3498_v40 }
0x2599   :  { %v3511_v23 = vmul.f32 %v3510_v45, %v3508_v31 }
0x259a   :  { %v3500_v30 = vsub.f32 1.5, %v3499_v35 }
0x259b   :  { %v3514_v53 = vadd.f32 %v3513_v1, %v3511_v23 }
0x259c   :  { %v3501_v25 = vmul.f32 %v4596_v42, %v3500_v30  ;;  %v3610_v30 = vld [vmem:[%s6025_s3 + $0x200] sm:$0x3]  ;;  %s4688_s3 = smov [#allocation5]  }
0x259d   :  { %s3731_s26 = sshll.u32 %s4688_s3, 4  ;;  %s3732_s26 = int_to_ptr.vmem [resolvable:$true] %s3731_s26 }
0x259e   :  { %v3505_v46 = vsel %vm3504_vm13, %v4596_v42, %v3501_v25 }
0x259f   :  { %v3509_v48 = vmul.f32 %v3507_v27, %v3505_v46  ;;  %v3659_v27 = vperm.slane %v3610_v30, 0 }
0x25a1   :  { %v3512_v49 = vmul.f32 %v3510_v45, %v3509_v48 }
0x25a3   :  { %v3515_v22 = vadd.f32 %v3513_v1, %v3512_v49  ;;  %v3662_v49 = vperm.slane %v3610_v30, 1 }
0x25a5   :  { %v3516_v56 = vpack.c.bf16 %v3515_v22, %v3514_v53 }
0x25a7   :  { %4099 = vmatmul.msk.bf16.vlgmr.msrb.gmra.mxu0 %vm164_vm7, %v3516_v56 }
0x2624   :  { %v3547_v36 = vpop.f32.mrf.mxu0 }
0x2625   :  { %v3548_v57 = vadd.f32 %v4364_v52, %v3547_v36 }
0x2627   :  { %v3552_v59 = vmax.f32 %v3548_v57, 0.0 }
0x262c   :  { %v3549_v58 = vpop.f32.mrf.mxu0 }
0x262d   :  { %v3550_v0 = vadd.f32 %v4364_v52, %v3549_v58 }
0x262f   :  { %v3553_v60 = vmax.f32 %v3550_v0, 0.0 }
0x2631   :  { %v3554_v32 = vpack.c.bf16 %v3553_v60, %v3552_v59 }
0x2633   :  { %4116 = vmatmul.msk.bf16.vlgmr.msra.gmra.mxu1 %vm332_vm9, %v3554_v32 }
0x26b0   :  { %v3599_v62 = vpop.f32.mrf.mxu1 }
0x26b1   :  { %v3604_v50 = vadd.f32 %v3599_v62, %v3514_v53 }
0x26b3   :  { %v3608_v63 = vadd.f32 %v4365_v61, %v3604_v50 }
0x26b5   :  { %v3611_v19 = vsel %vm164_vm7, %v3608_v63, 0.0  ;;  %v3619_v2 = vmul.f32 %v3608_v63, %v3608_v63 }
0x26b6   :  { %3612 = vadd.xlane.f32.xlu2 %v3611_v19 }
0x26b7   :  { %v3621_v55 = vsel %vm164_vm7, %v3619_v2, 0.0 }
0x26b8   :  { %3622 = vadd.xlane.f32.xlu0 %v3621_v55  ;;  %v3601_v51 = vpop.f32.mrf.mxu1 }
0x26b9   :  { %v3605_v6 = vadd.f32 %v3601_v51, %v3515_v22 }
0x26bb   :  { %v3609_v47 = vadd.f32 %v4365_v61, %v3605_v6 }
0x26bd   :  { %v3614_v9 = vsel %vm164_vm7, %v3609_v47, 0.0  ;;  %v3620_v54 = vmul.f32 %v3609_v47, %v3609_v47 }
0x26be   :  { %3615 = vadd.xlane.f32.xlu1 %v3614_v9 }
0x26bf   :  { %v3624_v11 = vsel %vm164_vm7, %v3620_v54, 0.0 }
0x26c0   :  { %3625 = vadd.xlane.f32.xlu2 %v3624_v11 }
0x2729   :  { %v3613_v13 = vpop.xlane.xlu2 %3612 }
0x272a   :  { %v3617_v14 = vmul.f32 %v3613_v13, %v4957_v4 }
0x272b   :  { %v3623_v18 = vpop.xlane.xlu0 %3622 }
0x272c   :  { %v3629_v12 = vmul.f32 %v3617_v14, %v3617_v14  ;;  %v3627_v10 = vmul.f32 %v3623_v18, %v4957_v4  ;;  %v3655_v31 = vsub.f32 %v3608_v63, %v3617_v14 }
0x272e   :  { %v3631_v16 = vsub.f32 %v3627_v10, %v3629_v12 }
0x2730   :  { %v3633_v20 = vadd.f32 1e-05, %v3631_v16 }
0x2731   :  { %v3616_v3 = vpop.xlane.xlu1 %3615 }
0x2732   :  { %4597 = vrsqrt.f32 %v3633_v20  ;;  %v3618_v7 = vmul.f32 %v3616_v3, %v4957_v4  ;;  %vm3641_vm0 = vweird.f32 %v3633_v20 }
0x2733   :  { %v3626_v28 = vpop.xlane.xlu2 %3625 }
0x2734   :  { %v3630_v29 = vmul.f32 %v3618_v7, %v3618_v7  ;;  %v3628_v26 = vmul.f32 %v3626_v28, %v4957_v4  ;;  %v3656_v23 = vsub.f32 %v3609_v47, %v3618_v7 }
0x2736   :  { %v3632_v8 = vsub.f32 %v3628_v26, %v3630_v29 }
0x2738   :  { %v4598_v33 = vpop.eup %4597  ;;  %v3634_v15 = vadd.f32 1e-05, %v3632_v8 }
0x2739   :  { %v3636_v42 = vmul.f32 %v4598_v33, %v3633_v20  ;;  %vm3642_vm9 = vweird.f32 %v4598_v33 }
0x273a   :  { %4599 = vrsqrt.f32 %v3634_v15  ;;  %vm3643_vm1 = vmor %vm3641_vm0, %vm3642_vm9  ;;  %vm3651_vm2 = vweird.f32 %v3634_v15 }
0x273b   :  { %v3637_v38 = vmul.f32 %v4598_v33, %v3636_v42 }
0x273d   :  { %v3638_v39 = vmul.f32 0.5, %v3637_v38 }
0x273f   :  { %v3639_v40 = vsub.f32 1.5, %v3638_v39 }
0x2740   :  { %v4600_v21 = vpop.eup %4599 }
0x2741   :  { %v3640_v41 = vmul.f32 %v4598_v33, %v3639_v40  ;;  %v3646_v35 = vmul.f32 %v4600_v21, %v3634_v15  ;;  %vm3652_vm14 = vweird.f32 %v4600_v21 }
0x2742   :  { %vm3653_vm15 = vmor %vm3651_vm2, %vm3652_vm14 }
0x2743   :  { %v3647_v44 = vmul.f32 %v4600_v21, %v3646_v35  ;;  %v3644_v4 = vsel %vm3643_vm1, %v4598_v33, %v3640_v41 }
0x2744   :  { %v3657_v46 = vmul.f32 %v3655_v31, %v3644_v4 }
0x2745   :  { %v3648_v45 = vmul.f32 0.5, %v3647_v44 }
0x2746   :  { %v3660_v53 = vmul.f32 %v3659_v27, %v3657_v46 }
0x2747   :  { %v3649_v25 = vsub.f32 1.5, %v3648_v45 }
0x2748   :  { %v3663_v43 = vadd.f32 %v3662_v49, %v3660_v53 }
0x2749   :  { %v3650_v1 = vmul.f32 %v4600_v21, %v3649_v25 }
0x274b   :  { %v3654_v48 = vsel %vm3653_vm15, %v4600_v21, %v3650_v1 }
0x274c   :  { %v3658_v22 = vmul.f32 %v3656_v23, %v3654_v48 }
0x274e   :  { %v3661_v56 = vmul.f32 %v3659_v27, %v3658_v22 }
0x2750   :  { %v3664_v24 = vadd.f32 %v3662_v49, %v3661_v56 }
0x2752   :  { %v3665_v34 = vpack.c.bf16 %v3664_v24, %v3663_v43 }
0x2754   :  { %4125 = vmatmul.msk.bf16.vlgmr.msra.gmra.mxu0 %vm164_vm7, %v3665_v34 }
0x27d1   :  { %v3696_v36 = vpop.f32.mrf.mxu0 }
0x27d2   :  { %v3697_v52 = vadd.f32 %v4366_v17, %v3696_v36 }
0x27d4   :  { %v3701_v57 = vsel %vm508_vm10, %v3697_v52, -inf }
0x27d5   :  { %3702 = vmax.xlane.f32.xlu1 %v3701_v57 }
0x27d9   :  { %v3698_v58 = vpop.f32.mrf.mxu0 }
0x27da   :  { %v3699_v0 = vadd.f32 %v4366_v17, %v3698_v58 }
0x27dc   :  { %v3704_v59 = vsel %vm508_vm10, %v3699_v0, -inf }
0x27dd   :  { %3705 = vmax.xlane.f32.xlu0 %v3704_v59 }
0x2848   :  { %v3703_v60 = vpop.xlane.xlu1 %3702 }
0x2849   :  { %v3707_v32 = vsub.f32 %v3697_v52, %v3703_v60 }
0x284b   :  { %v3709_v61 = vmul.f32 1.442695, %v3707_v32 }
0x284d   :  { %4601 = vpow2.f32 %v3709_v61 }
0x2850   :  { %v3706_v62 = vpop.xlane.xlu0 %3705 }
0x2851   :  { %v3708_v50 = vsub.f32 %v3699_v0, %v3706_v62 }
0x2853   :  { %v4602_v63 = vpop.eup %4601  ;;  %v3711_v19 = vmul.f32 1.442695, %v3708_v50 }
0x2854   :  { %v3713_v2 = vsel %vm508_vm10, %v4602_v63, 0.0 }
0x2855   :  { %4603 = vpow2.f32 %v3711_v19  ;;  %3714 = vadd.xlane.f32.xlu2 %v3713_v2 }
0x285b   :  { %v4604_v55 = vpop.eup %4603 }
0x285c   :  { %v3716_v51 = vsel %vm508_vm10, %v4604_v55, 0.0 }
0x285d   :  { %3717 = vadd.xlane.f32.xlu1 %v3716_v51 }
0x28c8   :  { %v3715_v6 = vpop.xlane.xlu2 %3714 }
0x28c9   :  { %4605 = vlog2.f32 %v3715_v6 }
0x28cf   :  { %v4606_v47 = vpop.eup %4605 }
0x28d0   :  { %v3720_v9 = vmul.f32 0.6931472, %v4606_v47  ;;  %v3718_v54 = vpop.xlane.xlu1 %3717 }
0x28d1   :  { %4607 = vlog2.f32 %v3718_v54 }
0x28d2   :  { %v3723_v11 = vsub.f32 %v3707_v32, %v3720_v9 }
0x28d4   :  { %3725 = vst.msk [vmem:[#allocation5] sm:$0xff] %vm508_vm10, %v3723_v11 }
0x28d7   :  { %v4608_v13 = vpop.eup %4607 }
0x28d8   :  { %v3722_v14 = vmul.f32 0.6931472, %v4608_v13 }
0x28da   :  { %v3724_v18 = vsub.f32 %v3708_v50, %v3722_v14 }
0x28dc   :  { %3726 = vst.msk [vmem:[#allocation5 + $0x8] sm:$0xff] %vm508_vm10, %v3724_v18 }
0x28dd   :  { %3739 = dma.vmem_to_hbm [thread:$0]  %s3732_s26, 256, %s3734_s18, [#allocation6], %s4689_s22, %s4689_s22, %s6045_s16  }
0x28de   :  { %4675 = dma.done.wait [#allocation6], 256  }
0x28df   :  { %4676 = vsyncadd [#allocation6], 4294967040 }
0x28e0   :  { %3744 = vsyncpa [#allocation6], 1 }

</bundles_post_ra>
